<compile_context>
chip_gen: v5e
topology: v5e:2x2
jax: 0.10.0
libtpu: 0.0.40
codegen_flags: <defaults>
</compile_context>

<pallas_src>
import jax
import jax.numpy as jnp
from jax.experimental import pallas as pl
from jax.experimental.pallas import tpu as pltpu

EPS = 1e-5  # PyTorch BatchNorm default eps
# Scoped VMEM: raised above the 16/32 MiB defaults but kept under v7x's
# 64 MiB physical VMEM (inputs are double-buffered by the pipeline).
VMEM_LIMIT = 48 * 1024 * 1024


def _conv_taps(img, w_taps, TB, H, W, C):
    """img: (TB, Hp, Wp, C) bf16; w_taps: (9, C, F_pad) bf16.

    3x3 'SAME' conv as 9 accumulating MXU matmuls (f32 accumulation).
    Returns (TB*H*W, F_pad) f32.  No im2col concat, no K padding.
    """
    acc = None
    for dh in range(3):
        for dw in range(3):
            tap = img[:, dh:dh + H, dw:dw + W, :].reshape(TB * H * W, C)
            part = jnp.dot(tap, w_taps[3 * dh + dw],
                           preferred_element_type=jnp.float32)
            acc = part if acc is None else acc + part
    return acc


# ---------------------------------------------------------------------------
# Pass 1: streaming conv + BatchNorm2d batch-statistic partials (per TB slab)
# ---------------------------------------------------------------------------
def make_conv_stats_kernel(TB, H, W, C):
    def kernel(x_ref, w_ref, sum_ref, sq_ref):
        img = x_ref[...]                       # (TB, Hp, Wp, C) bf16
        w_taps = w_ref[...]                    # (9, C, F_pad) bf16
        y = _conv_taps(img, w_taps, TB, H, W, C)     # (TB*HW, F_pad) f32
        sum_ref[0] = jnp.sum(y, axis=0, keepdims=True)       # (1, F_pad)
        sq_ref[0] = jnp.sum(y * y, axis=0, keepdims=True)    # (1, F_pad)
    return kernel


# ---------------------------------------------------------------------------
# Pass 2: streaming conv + BN2d affine + ReLU + global-avg-pool (per TB slab)
# ---------------------------------------------------------------------------
def make_conv_pool_kernel(TB, H, W, C):
    inv_hw = 1.0 / float(H * W)

    def kernel(x_ref, w_ref, scale_ref, shift_ref, pooled_ref):
        img = x_ref[...]
        w_taps = w_ref[...]
        y = _conv_taps(img, w_taps, TB, H, W, C)               # (TB*HW, F_pad)
        yr = jnp.maximum(y * scale_ref[...] + shift_ref[...], 0.0)
        pooled = jnp.sum(yr.reshape(TB, H * W, -1), axis=1) * inv_hw
        pooled_ref[0] = pooled                                 # (TB, F_pad)
    return kernel


# ---------------------------------------------------------------------------
# MLPHead: Linear -> BatchNorm1d (batch stats) -> ReLU -> Linear
# ---------------------------------------------------------------------------
def head_kernel(pooled_ref, w1_ref, b1_ref, g1_ref, be1_ref, w2_ref, b2_ref,
                out_ref):
    pooled = pooled_ref[...]                                   # (B, F_pad) f32
    z = jnp.dot(pooled, w1_ref[...],
                preferred_element_type=jnp.float32) + b1_ref[...]
    mu = jnp.mean(z, axis=0, keepdims=True)
    var = jnp.mean((z - mu) ** 2, axis=0, keepdims=True)
    zr = jnp.maximum((z - mu) * jax.lax.rsqrt(var + EPS)
                     * g1_ref[...] + be1_ref[...], 0.0)
    out_ref[...] = jnp.dot(zr, w2_ref[...],
                           preferred_element_type=jnp.float32) + b2_ref[...]


# ---------------------------------------------------------------------------
# Wrapper
# ---------------------------------------------------------------------------
def byol_resnet_forward(x, params, tb=None):
    B, C, H, W = x.shape
    F = params["conv_w"].shape[0]
    Hd = params["w1"].shape[1]
    P = params["w2"].shape[1]
    Hp, Wp = H + 2, W + 2
    F_pad = ((F + 127) // 128) * 128
    Hd_pad = ((Hd + 127) // 128) * 128
    P_pad = ((P + 127) // 128) * 128

    # Images per grid step: sized against a conservative VMEM budget
    # (double-buffered bf16 image block + f32 conv activation per step).
    if tb is None:
        per_img = 2 * (Hp * Wp * C * 2) + H * W * F_pad * 4
        tb = max(1, min(B, (8 * 1024 * 1024) // max(per_img, 1)))
        while B % tb:
            tb -= 1
    G = B // tb

    # Layout glue only: NCHW f32 -> padded NHWC bf16 (~0.5x input bytes).
    xp = jnp.pad(jnp.transpose(x, (0, 2, 3, 1)).astype(jnp.bfloat16),
                 ((0, 0), (1, 1), (1, 1), (0, 0)))             # (B,Hp,Wp,C)
    # Conv weight as 9 per-tap (C, F_pad) matmul operands, bf16, lane-padded.
    w_taps = jnp.transpose(params["conv_w"], (2, 3, 1, 0)).reshape(9, C, F)
    w_taps = jnp.pad(w_taps, ((0, 0), (0, 0), (0, F_pad - F))
                     ).astype(jnp.bfloat16)

    img_spec = pl.BlockSpec((tb, Hp, Wp, C), lambda g: (g, 0, 0, 0))
    wt_spec = pl.BlockSpec((9, C, F_pad), lambda g: (0, 0, 0))
    f_spec = pl.BlockSpec((1, F_pad), lambda g: (0, 0))

    # ---- Pass 1: conv + BN2d batch-statistic partials (parallel over batch) -
    sums, sqs = pl.pallas_call(
        make_conv_stats_kernel(tb, H, W, C),
        out_shape=(jax.ShapeDtypeStruct((G, 1, F_pad), jnp.float32),
                   jax.ShapeDtypeStruct((G, 1, F_pad), jnp.float32)),
        grid=(G,),
        in_specs=[img_spec, wt_spec],
        out_specs=(pl.BlockSpec((1, 1, F_pad), lambda g: (g, 0, 0)),
                   pl.BlockSpec((1, 1, F_pad), lambda g: (g, 0, 0))),
        compiler_params=pltpu.CompilerParams(
            dimension_semantics=("parallel",), vmem_limit_bytes=VMEM_LIMIT),
    )(xp, w_taps)

    # Fold BN2d batch statistics into a per-channel affine (tiny f32 math).
    n = float(B * H * W)
    mean = jnp.sum(sums[:, 0, :], axis=0, keepdims=True) / n           # (1,F_pad)
    var = jnp.sum(sqs[:, 0, :], axis=0, keepdims=True) / n - mean * mean
    var = jnp.maximum(var, 0.0)          # guard one-pass cancellation
    g2 = jnp.pad(params["bn2_g"], (0, F_pad - F)).reshape(1, F_pad)
    bt2 = jnp.pad(params["bn2_b"], (0, F_pad - F)).reshape(1, F_pad)
    scale = g2 * jax.lax.rsqrt(var + EPS)
    shift = bt2 - mean * scale           # padded lanes: scale=shift=0 -> stay 0

    # ---- Pass 2: conv + BN affine + ReLU + pool (parallel over batch) -------
    pooled = pl.pallas_call(
        make_conv_pool_kernel(tb, H, W, C),
        out_shape=jax.ShapeDtypeStruct((G, tb, F_pad), jnp.float32),
        grid=(G,),
        in_specs=[img_spec, wt_spec, f_spec, f_spec],
        out_specs=pl.BlockSpec((1, tb, F_pad), lambda g: (g, 0, 0)),
        compiler_params=pltpu.CompilerParams(
            dimension_semantics=("parallel",), vmem_limit_bytes=VMEM_LIMIT),
    )(xp, w_taps, scale, shift)
    pooled = pooled.reshape(B, F_pad)                          # (B, F_pad) f32

    # ---- MLPHead on the pooled tensor (single micro pallas_call) ------------
    w1p = jnp.pad(params["w1"], ((0, F_pad - F), (0, Hd_pad - Hd)))
    b1p = jnp.pad(params["b1"], (0, Hd_pad - Hd)).reshape(1, Hd_pad)
    g1p = jnp.pad(params["bn1_g"], (0, Hd_pad - Hd)).reshape(1, Hd_pad)
    be1p = jnp.pad(params["bn1_b"], (0, Hd_pad - Hd)).reshape(1, Hd_pad)
    w2p = jnp.pad(params["w2"], ((0, Hd_pad - Hd), (0, P_pad - P)))
    b2p = jnp.pad(params["b2"], (0, P_pad - P)).reshape(1, P_pad)

    hd_spec = pl.BlockSpec((1, Hd_pad), lambda i: (0, 0))
    out_pad = pl.pallas_call(
        head_kernel,
        out_shape=jax.ShapeDtypeStruct((B, P_pad), jnp.float32),
        grid=(1,),
        in_specs=[pl.BlockSpec((B, F_pad), lambda i: (0, 0)),
                  pl.BlockSpec((F_pad, Hd_pad), lambda i: (0, 0)),
                  hd_spec, hd_spec, hd_spec,
                  pl.BlockSpec((Hd_pad, P_pad), lambda i: (0, 0)),
                  pl.BlockSpec((1, P_pad), lambda i: (0, 0))],
        out_specs=pl.BlockSpec((B, P_pad), lambda i: (0, 0)),
        compiler_params=pltpu.CompilerParams(vmem_limit_bytes=VMEM_LIMIT),
    )(pooled, w1p, b1p, g1p, be1p, w2p, b2p)

    return out_pad[:, :P]


# ---------------------------------------------------------------------------
# Pure-JAX reference (same math, same bf16 conv inputs / f32 accumulate)
# ---------------------------------------------------------------------------
def ref_forward(x, params):
    y = jax.lax.conv_general_dilated(
        x.astype(jnp.bfloat16), params["conv_w"].astype(jnp.bfloat16),
        (1, 1), "SAME", dimension_numbers=("NCHW", "OIHW", "NCHW"),
        preferred_element_type=jnp.float32)
    mu = y.mean(axis=(0, 2, 3), keepdims=True)
    var = ((y - mu) ** 2).mean(axis=(0, 2, 3), keepdims=True)
    y = ((y - mu) * jax.lax.rsqrt(var + EPS)
         * params["bn2_g"][None, :, None, None]
         + params["bn2_b"][None, :, None, None])
    y = jnp.maximum(y, 0.0)
    h = y.mean(axis=(2, 3))                                    # (B, F)
    z = h @ params["w1"] + params["b1"]
    mu1 = z.mean(axis=0, keepdims=True)
    v1 = ((z - mu1) ** 2).mean(axis=0, keepdims=True)
    z = (z - mu1) * jax.lax.rsqrt(v1 + EPS) * params["bn1_g"] + params["bn1_b"]
    z = jnp.maximum(z, 0.0)
    return z @ params["w2"] + params["b2"]


if __name__ == "__main__":
    # Small deterministic shapes: batch=2, channels=4, spatial=16,
    # encoder features=32 (fc.in_features), mlp_hidden=32, projection=16.
    B, C, H, W = 2, 4, 16, 16
    F, HID, PROJ = 32, 32, 16

    key = jax.random.PRNGKey(0)
    ks = jax.random.split(key, 8)
    params = {
        "conv_w": jax.random.normal(ks[0], (F, C, 3, 3), jnp.float32) * 0.1,
        "bn2_g": jnp.ones((F,), jnp.float32),
        "bn2_b": jnp.zeros((F,), jnp.float32),
        "w1": jax.random.normal(ks[2], (F, HID), jnp.float32) * 0.1,
        "b1": jax.random.normal(ks[3], (HID,), jnp.float32) * 0.1,
        "bn1_g": jnp.ones((HID,), jnp.float32),
        "bn1_b": jnp.zeros((HID,), jnp.float32),
        "w2": jax.random.normal(ks[4], (HID, PROJ), jnp.float32) * 0.1,
        "b2": jax.random.normal(ks[5], (PROJ,), jnp.float32) * 0.1,
    }
    x = jax.random.normal(ks[6], (B, C, H, W), jnp.float32)

    out = jax.block_until_ready(byol_resnet_forward(x, params))
    ref = jax.block_until_ready(ref_forward(x, params))
    assert out.shape == (B, PROJ)
    assert jnp.allclose(out, ref, rtol=1e-3, atol=1e-3), (
        f"max abs err {jnp.max(jnp.abs(out - ref))}")
    print("KERNEL_OK")
</pallas_src>

<mosaic_0001>
module attributes {stable_mosaic.version = 11 : i64} {
  func.func @kernel(%arg0: i32, %arg1: memref<2x18x18x4xbf16, #tpu.memory_space<vmem>>, %arg2: memref<9x4x128xbf16, #tpu.memory_space<vmem>>, %arg3: memref<1x1x128xf32, #tpu.memory_space<vmem>>, %arg4: memref<1x1x128xf32, #tpu.memory_space<vmem>>) attributes {dimension_semantics = [#tpu.dimension_semantics<parallel>], iteration_bounds = array<i64: 1>, scalar_prefetch = 0 : i64, scratch_operands = 0 : i64, tpu.core_type = #tpu.core_type<tc>, window_params = [{transform_indices = @transform_0, window_bounds = array<i64: 2, 18, 18, 4>}, {pipeline_mode = #tpu.pipeline_mode<synchronous>, transform_indices = @transform_1, window_bounds = array<i64: 9, 4, 128>}, {transform_indices = @transform_2, window_bounds = array<i64: 1, 1, 128>}, {transform_indices = @transform_3, window_bounds = array<i64: 1, 1, 128>}]} {
    %c0 = arith.constant 0 : index
    %c0_0 = arith.constant 0 : index
    %c0_1 = arith.constant 0 : index
    %c0_2 = arith.constant 0 : index
    %0 = vector.load %arg1[%c0, %c0_0, %c0_1, %c0_2] : memref<2x18x18x4xbf16, #tpu.memory_space<vmem>>, vector<2x18x18x4xbf16>
    %c0_3 = arith.constant 0 : index
    %c0_4 = arith.constant 0 : index
    %c0_5 = arith.constant 0 : index
    %1 = vector.load %arg2[%c0_3, %c0_4, %c0_5] : memref<9x4x128xbf16, #tpu.memory_space<vmem>>, vector<9x4x128xbf16>
    %2 = vector.extract_strided_slice %0 {offsets = [0, 0, 0, 0], sizes = [2, 16, 16, 4], strides = [1, 1, 1, 1]} : vector<2x18x18x4xbf16> to vector<2x16x16x4xbf16>
    %3 = vector.shape_cast %2 : vector<2x16x16x4xbf16> to vector<512x4xbf16>
    %4 = vector.extract_strided_slice %1 {offsets = [0, 0, 0], sizes = [1, 4, 128], strides = [1, 1, 1]} : vector<9x4x128xbf16> to vector<1x4x128xbf16>
    %5 = vector.shape_cast %4 : vector<1x4x128xbf16> to vector<4x128xbf16>
    %cst = arith.constant dense<0.000000e+00> : vector<512x128xf32>
    %6 = tpu.matmul %3, %5, %cst {dimension_numbers = #tpu.dot_dimension_numbers<[1], [0], [0], [1], [0, 0, 1, 1], [], []>} : vector<512x4xbf16>, vector<4x128xbf16>, vector<512x128xf32> -> vector<512x128xf32>
    %7 = vector.extract_strided_slice %0 {offsets = [0, 0, 1, 0], sizes = [2, 16, 16, 4], strides = [1, 1, 1, 1]} : vector<2x18x18x4xbf16> to vector<2x16x16x4xbf16>
    %8 = vector.shape_cast %7 : vector<2x16x16x4xbf16> to vector<512x4xbf16>
    %9 = vector.extract_strided_slice %1 {offsets = [1, 0, 0], sizes = [1, 4, 128], strides = [1, 1, 1]} : vector<9x4x128xbf16> to vector<1x4x128xbf16>
    %10 = vector.shape_cast %9 : vector<1x4x128xbf16> to vector<4x128xbf16>
    %cst_6 = arith.constant dense<0.000000e+00> : vector<512x128xf32>
    %11 = tpu.matmul %8, %10, %cst_6 {dimension_numbers = #tpu.dot_dimension_numbers<[1], [0], [0], [1], [0, 0, 1, 1], [], []>} : vector<512x4xbf16>, vector<4x128xbf16>, vector<512x128xf32> -> vector<512x128xf32>
    %12 = arith.addf %6, %11 : vector<512x128xf32>
    %13 = vector.extract_strided_slice %0 {offsets = [0, 0, 2, 0], sizes = [2, 16, 16, 4], strides = [1, 1, 1, 1]} : vector<2x18x18x4xbf16> to vector<2x16x16x4xbf16>
    %14 = vector.shape_cast %13 : vector<2x16x16x4xbf16> to vector<512x4xbf16>
    %15 = vector.extract_strided_slice %1 {offsets = [2, 0, 0], sizes = [1, 4, 128], strides = [1, 1, 1]} : vector<9x4x128xbf16> to vector<1x4x128xbf16>
    %16 = vector.shape_cast %15 : vector<1x4x128xbf16> to vector<4x128xbf16>
    %cst_7 = arith.constant dense<0.000000e+00> : vector<512x128xf32>
    %17 = tpu.matmul %14, %16, %cst_7 {dimension_numbers = #tpu.dot_dimension_numbers<[1], [0], [0], [1], [0, 0, 1, 1], [], []>} : vector<512x4xbf16>, vector<4x128xbf16>, vector<512x128xf32> -> vector<512x128xf32>
    %18 = arith.addf %12, %17 : vector<512x128xf32>
    %19 = vector.extract_strided_slice %0 {offsets = [0, 1, 0, 0], sizes = [2, 16, 16, 4], strides = [1, 1, 1, 1]} : vector<2x18x18x4xbf16> to vector<2x16x16x4xbf16>
    %20 = vector.shape_cast %19 : vector<2x16x16x4xbf16> to vector<512x4xbf16>
    %21 = vector.extract_strided_slice %1 {offsets = [3, 0, 0], sizes = [1, 4, 128], strides = [1, 1, 1]} : vector<9x4x128xbf16> to vector<1x4x128xbf16>
    %22 = vector.shape_cast %21 : vector<1x4x128xbf16> to vector<4x128xbf16>
    %cst_8 = arith.constant dense<0.000000e+00> : vector<512x128xf32>
    %23 = tpu.matmul %20, %22, %cst_8 {dimension_numbers = #tpu.dot_dimension_numbers<[1], [0], [0], [1], [0, 0, 1, 1], [], []>} : vector<512x4xbf16>, vector<4x128xbf16>, vector<512x128xf32> -> vector<512x128xf32>
    %24 = arith.addf %18, %23 : vector<512x128xf32>
    %25 = vector.extract_strided_slice %0 {offsets = [0, 1, 1, 0], sizes = [2, 16, 16, 4], strides = [1, 1, 1, 1]} : vector<2x18x18x4xbf16> to vector<2x16x16x4xbf16>
    %26 = vector.shape_cast %25 : vector<2x16x16x4xbf16> to vector<512x4xbf16>
    %27 = vector.extract_strided_slice %1 {offsets = [4, 0, 0], sizes = [1, 4, 128], strides = [1, 1, 1]} : vector<9x4x128xbf16> to vector<1x4x128xbf16>
    %28 = vector.shape_cast %27 : vector<1x4x128xbf16> to vector<4x128xbf16>
    %cst_9 = arith.constant dense<0.000000e+00> : vector<512x128xf32>
    %29 = tpu.matmul %26, %28, %cst_9 {dimension_numbers = #tpu.dot_dimension_numbers<[1], [0], [0], [1], [0, 0, 1, 1], [], []>} : vector<512x4xbf16>, vector<4x128xbf16>, vector<512x128xf32> -> vector<512x128xf32>
    %30 = arith.addf %24, %29 : vector<512x128xf32>
    %31 = vector.extract_strided_slice %0 {offsets = [0, 1, 2, 0], sizes = [2, 16, 16, 4], strides = [1, 1, 1, 1]} : vector<2x18x18x4xbf16> to vector<2x16x16x4xbf16>
    %32 = vector.shape_cast %31 : vector<2x16x16x4xbf16> to vector<512x4xbf16>
    %33 = vector.extract_strided_slice %1 {offsets = [5, 0, 0], sizes = [1, 4, 128], strides = [1, 1, 1]} : vector<9x4x128xbf16> to vector<1x4x128xbf16>
    %34 = vector.shape_cast %33 : vector<1x4x128xbf16> to vector<4x128xbf16>
    %cst_10 = arith.constant dense<0.000000e+00> : vector<512x128xf32>
    %35 = tpu.matmul %32, %34, %cst_10 {dimension_numbers = #tpu.dot_dimension_numbers<[1], [0], [0], [1], [0, 0, 1, 1], [], []>} : vector<512x4xbf16>, vector<4x128xbf16>, vector<512x128xf32> -> vector<512x128xf32>
    %36 = arith.addf %30, %35 : vector<512x128xf32>
    %37 = vector.extract_strided_slice %0 {offsets = [0, 2, 0, 0], sizes = [2, 16, 16, 4], strides = [1, 1, 1, 1]} : vector<2x18x18x4xbf16> to vector<2x16x16x4xbf16>
    %38 = vector.shape_cast %37 : vector<2x16x16x4xbf16> to vector<512x4xbf16>
    %39 = vector.extract_strided_slice %1 {offsets = [6, 0, 0], sizes = [1, 4, 128], strides = [1, 1, 1]} : vector<9x4x128xbf16> to vector<1x4x128xbf16>
    %40 = vector.shape_cast %39 : vector<1x4x128xbf16> to vector<4x128xbf16>
    %cst_11 = arith.constant dense<0.000000e+00> : vector<512x128xf32>
    %41 = tpu.matmul %38, %40, %cst_11 {dimension_numbers = #tpu.dot_dimension_numbers<[1], [0], [0], [1], [0, 0, 1, 1], [], []>} : vector<512x4xbf16>, vector<4x128xbf16>, vector<512x128xf32> -> vector<512x128xf32>
    %42 = arith.addf %36, %41 : vector<512x128xf32>
    %43 = vector.extract_strided_slice %0 {offsets = [0, 2, 1, 0], sizes = [2, 16, 16, 4], strides = [1, 1, 1, 1]} : vector<2x18x18x4xbf16> to vector<2x16x16x4xbf16>
    %44 = vector.shape_cast %43 : vector<2x16x16x4xbf16> to vector<512x4xbf16>
    %45 = vector.extract_strided_slice %1 {offsets = [7, 0, 0], sizes = [1, 4, 128], strides = [1, 1, 1]} : vector<9x4x128xbf16> to vector<1x4x128xbf16>
    %46 = vector.shape_cast %45 : vector<1x4x128xbf16> to vector<4x128xbf16>
    %cst_12 = arith.constant dense<0.000000e+00> : vector<512x128xf32>
    %47 = tpu.matmul %44, %46, %cst_12 {dimension_numbers = #tpu.dot_dimension_numbers<[1], [0], [0], [1], [0, 0, 1, 1], [], []>} : vector<512x4xbf16>, vector<4x128xbf16>, vector<512x128xf32> -> vector<512x128xf32>
    %48 = arith.addf %42, %47 : vector<512x128xf32>
    %49 = vector.extract_strided_slice %0 {offsets = [0, 2, 2, 0], sizes = [2, 16, 16, 4], strides = [1, 1, 1, 1]} : vector<2x18x18x4xbf16> to vector<2x16x16x4xbf16>
    %50 = vector.shape_cast %49 : vector<2x16x16x4xbf16> to vector<512x4xbf16>
    %51 = vector.extract_strided_slice %1 {offsets = [8, 0, 0], sizes = [1, 4, 128], strides = [1, 1, 1]} : vector<9x4x128xbf16> to vector<1x4x128xbf16>
    %52 = vector.shape_cast %51 : vector<1x4x128xbf16> to vector<4x128xbf16>
    %cst_13 = arith.constant dense<0.000000e+00> : vector<512x128xf32>
    %53 = tpu.matmul %50, %52, %cst_13 {dimension_numbers = #tpu.dot_dimension_numbers<[1], [0], [0], [1], [0, 0, 1, 1], [], []>} : vector<512x4xbf16>, vector<4x128xbf16>, vector<512x128xf32> -> vector<512x128xf32>
    %54 = arith.addf %48, %53 : vector<512x128xf32>
    %cst_14 = arith.constant dense<0.000000e+00> : vector<128xf32>
    %55 = vector.multi_reduction <add>, %54, %cst_14 [0] : vector<512x128xf32> to vector<128xf32>
    %56 = vector.shape_cast %55 : vector<128xf32> to vector<1x128xf32>
    %c0_15 = arith.constant 0 : index
    %c0_16 = arith.constant 0 : index
    %c0_17 = arith.constant 0 : index
    %57 = vector.load %arg3[%c0_15, %c0_16, %c0_17] : memref<1x1x128xf32, #tpu.memory_space<vmem>>, vector<1x1x128xf32>
    %58 = vector.shape_cast %57 : vector<1x1x128xf32> to vector<1x128xf32>
    %59 = vector.shape_cast %56 : vector<1x128xf32> to vector<1x1x128xf32>
    tpu.vector_store %arg3[%c0_15, %c0_16, %c0_17], %59 {strides = array<i32>} : memref<1x1x128xf32, #tpu.memory_space<vmem>>, vector<1x1x128xf32>,
    %60 = arith.mulf %54, %54 : vector<512x128xf32>
    %cst_18 = arith.constant dense<0.000000e+00> : vector<128xf32>
    %61 = vector.multi_reduction <add>, %60, %cst_18 [0] : vector<512x128xf32> to vector<128xf32>
    %62 = vector.shape_cast %61 : vector<128xf32> to vector<1x128xf32>
    %c0_19 = arith.constant 0 : index
    %c0_20 = arith.constant 0 : index
    %c0_21 = arith.constant 0 : index
    %63 = vector.load %arg4[%c0_19, %c0_20, %c0_21] : memref<1x1x128xf32, #tpu.memory_space<vmem>>, vector<1x1x128xf32>
    %64 = vector.shape_cast %63 : vector<1x1x128xf32> to vector<1x128xf32>
    %65 = vector.shape_cast %62 : vector<1x128xf32> to vector<1x1x128xf32>
    tpu.vector_store %arg4[%c0_19, %c0_20, %c0_21], %65 {strides = array<i32>} : memref<1x1x128xf32, #tpu.memory_space<vmem>>, vector<1x1x128xf32>,
    return
  }
  func.func @transform_0(%arg0: i32) -> (i32, i32, i32, i32) {
    %c0_i32 = arith.constant 0 : i32
    %c0_i32_0 = arith.constant 0 : i32
    %c0_i32_1 = arith.constant 0 : i32
    %c0_i32_2 = arith.constant 0 : i32
    return %arg0, %c0_i32, %c0_i32_0, %c0_i32_1 : i32, i32, i32, i32
  }
  func.func @transform_1(%arg0: i32) -> (i32, i32, i32) {
    %c0_i32 = arith.constant 0 : i32
    %c0_i32_0 = arith.constant 0 : i32
    %c0_i32_1 = arith.constant 0 : i32
    %c0_i32_2 = arith.constant 0 : i32
    return %c0_i32, %c0_i32_0, %c0_i32_1 : i32, i32, i32
  }
  func.func @transform_2(%arg0: i32) -> (i32, i32, i32) {
    %c0_i32 = arith.constant 0 : i32
    %c0_i32_0 = arith.constant 0 : i32
    %c0_i32_1 = arith.constant 0 : i32
    return %arg0, %c0_i32, %c0_i32_0 : i32, i32, i32
  }
  func.func @transform_3(%arg0: i32) -> (i32, i32, i32) {
    %c0_i32 = arith.constant 0 : i32
    %c0_i32_0 = arith.constant 0 : i32
    %c0_i32_1 = arith.constant 0 : i32
    return %arg0, %c0_i32, %c0_i32_0 : i32, i32, i32
  }
}

</mosaic_0001>

<bundles_post_ra>
// kernel: tpu_custom_call.1
= control target key start
LH: loop header
LB: loop body
LE: loop exit
PB: predicated region body
PF: predicated region fallthrough
CT: control target
= control target key end

     0   :  { %9 = vsyncpa [#allocation3], 0  ;;  %vm1097_vm0 = vcmask 1041408   ;;  %vm133_vm1 = vsmask.f32 3328  ;;  %vm1000_vm3 = vcmask 31744   ;;  %s7136_s0 = inlined_call_operand.vmem [shape: bf16[2,18,18,4], index: 0, kind: input, shape index: {}]   ;;  %s7137_s1 = inlined_call_operand.vmem [shape: bf16[9,4,128], index: 1, kind: input, shape index: {}]   ;;  %s7138_s2 = inlined_call_operand.hbm [shape: f32[1,1,128], index: 2, kind: output, shape index: {0}]   ;;  %s7139_s3 = inlined_call_operand.hbm [shape: f32[1,1,128], index: 3, kind: output, shape index: {1}]  }
   0x1   :  { %v125_v0 = vld [vmem:[%s7137_s1 + $0x2] sm:$0x3]  ;;  %v41_v3 = vld [vmem:[%s7136_s0 + $0x64] sm:$0xf]  ;;  %v42_v4 = vld [vmem:[%s7136_s0 + $0x68] sm:$0x1] }
   0x2   :  { %v40_v1 = vld [vmem:[%s7136_s0 + $0x60] sm:$0xf]  ;;  %v1099_v2 = vsel %vm1097_vm0, %v125_v0, 0  ;;  %vm134_vm2 = vsmask.f32 7440  ;;  %v338_v7 = vshll.u32 %v41_v3, 16 }
   0x3   :  { %v329_v5 = vshrl.u32 %v40_v1, 16  ;;  %4749 = vmatpush.bf16.msra.mxu1 %v1099_v2  ;;  %4750 = vmatpush.bf16.msra.mxu2 %v1099_v2  ;;  %v332_v6 = vshll.u32 %v40_v1, 16  ;;  %v342_v9 = vshrl.u32 %v41_v3, 16  ;;  %v348_v10 = vshll.u32 %v42_v4, 16  ;;  %v70_v11 = vld [vmem:[%s7136_s0 + $0xd8] sm:$0xf]  ;;  %vm4969_vm4 = vmor %vm133_vm1, %vm134_vm2 }
   0x4   :  { %4751 = vmatpush.bf16.msra.mxu3 %v1099_v2  ;;  %1108 = vmatpush.bf16.msra.mxu0 %v1099_v2  ;;  %v340_v13 = vrot.slane %v338_v7, 5  ;;  %v71_v14 = vld [vmem:[%s7136_s0 + $0xdc] sm:$0xf]  ;;  %v72_v15 = vld [vmem:[%s7136_s0 + $0xe0] sm:$0x1]  ;;  %v521_v17 = vshrl.u32 %v70_v11, 16 }
   0x5   :  { %v331_v8 = vrot.slane %v329_v5, 4  ;;  %v334_v12 = vrot.slane %v332_v6, 5  ;;  %v344_v16 = vrot.slane %v342_v9, 4  ;;  %v524_v18 = vshll.u32 %v70_v11, 16  ;;  %v94_v23 = vld [vmem:[%s7136_s0 + $0x138] sm:$0xf] }
   0x6   :  { %v530_v20 = vshll.u32 %v71_v14, 16  ;;  %v534_v21 = vshrl.u32 %v71_v14, 16  ;;  %v540_v22 = vshll.u32 %v72_v15, 16  ;;  %v350_v26 = vrot.slane %v348_v10, 5  ;;  %v95_v29 = vld [vmem:[%s7136_s0 + $0x13c] sm:$0xf] }
   0x7   :  { %v335_v19 = vor.u32 %v334_v12, %v331_v8  ;;  %v345_v25 = vor.u32 %v344_v16, %v340_v13  ;;  %v523_v27 = vrot.slane %v521_v17, 4  ;;  %v526_v28 = vrot.slane %v524_v18, 5  ;;  %v96_v40 = vld [vmem:[%s7136_s0 + $0x140] sm:$0x1]  ;;  %v126_v51 = vld [vmem:[%s7137_s1 + $0x4] sm:$0x3] }
   0x8   :  { %v532_v31 = vrot.slane %v530_v20, 5  ;;  %v536_v32 = vrot.slane %v534_v21, 4  ;;  %v542_v33 = vrot.slane %v540_v22, 5  ;;  %v713_v36 = vshrl.u32 %v94_v23, 16  ;;  %v16_v55 = vld [vmem:[%s7136_s0] sm:$0xf] }
   0x9   :  { %v336_v30 = vrot.slane %v335_v19, 4  ;;  %v346_v34 = vrot.slane %v345_v25, 4  ;;  %v527_v35 = vor.u32 %v526_v28, %v523_v27  ;;  %v716_v37 = vshll.u32 %v94_v23, 16  ;;  %v17_v56 = vld [vmem:[%s7136_s0 + $0x4] sm:$0xf] }
   0xa   :  { %v537_v39 = vor.u32 %v536_v32, %v532_v31  ;;  %v722_v41 = vshll.u32 %v95_v29, 16  ;;  %v726_v42 = vshrl.u32 %v95_v29, 16  ;;  %v715_v46 = vrot.slane %v713_v36, 4  ;;  %v18_v61 = vld [vmem:[%s7136_s0 + $0x8] sm:$0x1] }
   0xb   :  { %v341_v38 = vsel %vm4969_vm4, %v336_v30, %v340_v13  ;;  %v351_v43 = vsel %vm4969_vm4, %v346_v34, %v350_v26  ;;  %v528_v45 = vrot.slane %v527_v35, 4  ;;  %v718_v49 = vrot.slane %v716_v37, 5  ;;  %v127_v2 = vld [vmem:[%s7137_s1 + $0x6] sm:$0x3]  ;;  %v124_v7 = vld [vmem:[%s7137_s1] sm:$0x3] }
   0xc   :  { %v920_v44 = vunpack.c.l.b16 %v341_v38  ;;  %v921_v47 = vunpack.c.l.b16 %v351_v43  ;;  %v538_v48 = vrot.slane %v537_v39, 4  ;;  %v724_v50 = vrot.slane %v722_v41, 5  ;;  %v128_v12 = vld [vmem:[%s7137_s1 + $0x8] sm:$0x3]  ;;  %v43_v17 = vld [vmem:[%s7136_s0 + $0x6c] sm:$0xf] }
   0xd   :  { %v533_v52 = vsel %vm4969_vm4, %v528_v45, %v532_v31  ;;  %v728_v53 = vrot.slane %v726_v42, 4  ;;  %v732_v54 = vshll.u32 %v96_v40, 16  ;;  %v719_v60 = vor.u32 %v718_v49, %v715_v46  ;;  %v44_v21 = vld [vmem:[%s7136_s0 + $0x70] sm:$0xf]  ;;  %v45_v27 = vld [vmem:[%s7136_s0 + $0x74] sm:$0x1] }
   0xe   :  { %v4994_v57 = vpack.c.b16 %v921_v47, %v920_v44  ;;  %v543_v58 = vsel %vm4969_vm4, %v538_v48, %v542_v33  ;;  %v936_v59 = vunpack.c.l.b16 %v533_v52  ;;  %v2150_v1 = vsel %vm1097_vm0, %v126_v51, 0  ;;  %v73_v40 = vld [vmem:[%s7136_s0 + $0xe4] sm:$0xf]  ;;  %v74_v44 = vld [vmem:[%s7136_s0 + $0xe8] sm:$0xf] }
   0xf   :  { %v937_v62 = vunpack.c.l.b16 %v543_v58  ;;  %v729_v63 = vor.u32 %v728_v53, %v724_v50  ;;  %v734_v0 = vrot.slane %v732_v54, 5  ;;  %v720_v3 = vrot.slane %v719_v60, 4  ;;  %2159 = vmatpush.bf16.msrb.mxu2 %v2150_v1  ;;  %v75_v45 = vld [vmem:[%s7136_s0 + $0xec] sm:$0x1] }
  0x10   :  { %7220 = vst [vmem:[#allocation8_spill] sm:$0xff] %v4994_v57  ;;  %4253 = vmatmul.msk.bf16.vlgmr.msra.gmra.mxu1 %vm1000_vm3, %v4994_v57  ;;  %v137_v4 = vshrl.u32 %v16_v55, 16  ;;  %v140_v5 = vshll.u32 %v16_v55, 16  ;;  %v146_v6 = vshll.u32 %v17_v56, 16  ;;  %v150_v10 = vshrl.u32 %v17_v56, 16 }
  0x11   :  { %v984_v8 = vpack.c.b16 %v937_v62, %v936_v59  ;;  %v730_v9 = vrot.slane %v729_v63, 4  ;;  %v156_v11 = vshll.u32 %v18_v61, 16  ;;  %v725_v13 = vsel %vm4969_vm4, %v720_v3, %v724_v50  ;;  %v97_v59 = vld [vmem:[%s7136_s0 + $0x144] sm:$0xf]  ;;  %v98_v3 = vld [vmem:[%s7136_s0 + $0x148] sm:$0xf] }
  0x12   :  { %v139_v14 = vrot.slane %v137_v4, 4  ;;  %v142_v15 = vrot.slane %v140_v5, 5  ;;  %v148_v16 = vrot.slane %v146_v6, 5  ;;  %v952_v19 = vunpack.c.l.b16 %v725_v13 }
  0x13   :  { %4261 = vmatmul.msk.bf16.vlgmr.msra.gmra.mxu2 %vm1000_vm3, %v984_v8  ;;  %v735_v18 = vsel %vm4969_vm4, %v730_v9, %v734_v0  ;;  %v152_v20 = vrot.slane %v150_v10, 4  ;;  %v158_v25 = vrot.slane %v156_v11, 5  ;;  %v2402_v26 = vsel %vm1097_vm0, %v127_v2, 0 }
  0x14   :  { %v953_v22 = vunpack.c.l.b16 %v735_v18  ;;  %v143_v23 = vor.u32 %v142_v15, %v139_v14  ;;  %2411 = vmatpush.bf16.msrb.mxu3 %v2402_v26  ;;  %v1527_v29 = vsel %vm1097_vm0, %v124_v7, 0  ;;  %v2698_v30 = vsel %vm1097_vm0, %v128_v12, 0  ;;  %v99_v7 = vld [vmem:[%s7136_s0 + $0x14c] sm:$0x1] }
  0x15   :  { %v153_v28 = vor.u32 %v152_v20, %v148_v16  ;;  %v353_v31 = vshrl.u32 %v43_v17, 16  ;;  %1536 = vmatpush.bf16.msrb.mxu1 %v1527_v29  ;;  %2707 = vmatpush.bf16.msrb.mxu0 %v2698_v30  ;;  %v356_v34 = vshll.u32 %v43_v17, 16  ;;  %v362_v35 = vshll.u32 %v44_v21, 16 }
  0x16   :  { %v5030_v32 = vpack.c.b16 %v953_v22, %v952_v19  ;;  %v144_v33 = vrot.slane %v143_v23, 4  ;;  %v366_v38 = vshrl.u32 %v44_v21, 16  ;;  %v372_v39 = vshll.u32 %v45_v27, 16 }
  0x17   :  { %v154_v36 = vrot.slane %v153_v28, 4  ;;  %v355_v37 = vrot.slane %v353_v31, 4  ;;  %v358_v42 = vrot.slane %v356_v34, 5  ;;  %v364_v43 = vrot.slane %v362_v35, 5 }
  0x18   :  { %7221 = vst [vmem:[#allocation9_spill] sm:$0xff] %v5030_v32  ;;  %4269 = vmatmul.msk.bf16.vlgmr.msra.gmra.mxu3 %vm1000_vm3, %v5030_v32  ;;  %v149_v41 = vsel %vm4969_vm4, %v144_v33, %v148_v16  ;;  %v368_v48 = vrot.slane %v366_v38, 4  ;;  %v374_v49 = vrot.slane %v372_v39, 5  ;;  %v545_v52 = vshrl.u32 %v73_v40, 16 }
  0x19   :  { %v159_v46 = vsel %vm4969_vm4, %v154_v36, %v158_v25  ;;  %v904_v47 = vunpack.c.l.b16 %v149_v41  ;;  %v359_v51 = vor.u32 %v358_v42, %v355_v37  ;;  %v548_v53 = vshll.u32 %v73_v40, 16 }
  0x1a   :  { %v905_v50 = vunpack.c.l.b16 %v159_v46  ;;  %v369_v54 = vor.u32 %v368_v48, %v364_v43  ;;  %v554_v55 = vshll.u32 %v74_v44, 16  ;;  %v558_v56 = vshrl.u32 %v74_v44, 16 }
  0x1b   :  { %v564_v58 = vshll.u32 %v75_v45, 16  ;;  %v360_v61 = vrot.slane %v359_v51, 4  ;;  %v547_v62 = vrot.slane %v545_v52, 4  ;;  %v550_v63 = vrot.slane %v548_v53, 5 }
  0x1c   :  { %v968_v60 = vpack.c.b16 %v905_v50, %v904_v47  ;;  %v370_v0 = vrot.slane %v369_v54, 4  ;;  %v556_v1 = vrot.slane %v554_v55, 5  ;;  %v560_v2 = vrot.slane %v558_v56, 4 }
  0x1d   :  { %v365_v4 = vsel %vm4969_vm4, %v360_v61, %v364_v43  ;;  %v551_v5 = vor.u32 %v550_v63, %v547_v62  ;;  %v566_v6 = vrot.slane %v564_v58, 5  ;;  %v737_v8 = vshrl.u32 %v97_v59, 16 }
  0x1e   :  { %4245 = vmatmul.msk.bf16.vlgmr.msra.gmra.mxu0 %vm1000_vm3, %v968_v60 }
  0x1f   :  { %10 = vsyncpa [#allocation5], 0  ;;  %v375_v9 = vsel %vm4969_vm4, %v370_v0, %v374_v49  ;;  %v922_v10 = vunpack.c.l.b16 %v365_v4  ;;  %v561_v11 = vor.u32 %v560_v2, %v556_v1  ;;  %v740_v12 = vshll.u32 %v97_v59, 16  ;;  %v19_v21 = vld [vmem:[%s7136_s0 + $0xc] sm:$0xf]  ;;  %s4220_s24 = sshll.u32 %s7138_s2, 4  ;;  %s4221_s24 = int_to_ptr.hbm [resolvable:$true] %s4220_s24 }
  0x20   :  { %v923_v13 = vunpack.c.l.b16 %v375_v9  ;;  %v552_v14 = vrot.slane %v551_v5, 4  ;;  %v739_v15 = vrot.slane %v737_v8, 4  ;;  %v746_v16 = vshll.u32 %v98_v3, 16  ;;  %v20_v26 = vld [vmem:[%s7136_s0 + $0x10] sm:$0xf]  ;;  %s4921_s25 = smov [#allocation4]  }
  0x21   :  { %v562_v17 = vrot.slane %v561_v11, 4  ;;  %v742_v18 = vrot.slane %v740_v12, 5  ;;  %v750_v19 = vshrl.u32 %v98_v3, 16  ;;  %v756_v20 = vshll.u32 %v99_v7, 16  ;;  %v21_v31 = vld [vmem:[%s7136_s0 + $0x14] sm:$0x1] }
  0x22   :  { %v5064_v22 = vpack.c.b16 %v923_v13, %v922_v10  ;;  %v557_v23 = vsel %vm4969_vm4, %v552_v14, %v556_v1  ;;  %v748_v25 = vrot.slane %v746_v16, 5  ;;  %v161_v35 = vshrl.u32 %v19_v21, 16  ;;  %v46_v41 = vld [vmem:[%s7136_s0 + $0x78] sm:$0xf]  ;;  %v47_v46 = vld [vmem:[%s7136_s0 + $0x7c] sm:$0xf] }
  0x23   :  { %v567_v27 = vsel %vm4969_vm4, %v562_v17, %v566_v6  ;;  %v938_v28 = vunpack.c.l.b16 %v557_v23  ;;  %v743_v29 = vor.u32 %v742_v18, %v739_v15  ;;  %v752_v30 = vrot.slane %v750_v19, 4  ;;  %v48_v54 = vld [vmem:[%s7136_s0 + $0x80] sm:$0x1]  ;;  %v76_v5 = vld [vmem:[%s7136_s0 + $0xf0] sm:$0xf]  ;;  %s4229_s26 = sshll.u32 %s4921_s25, 4  ;;  %s4230_s26 = int_to_ptr.vmem [resolvable:$true] %s4229_s26 }
  0x24   :  { %4254 = vmatmul.msk.bf16.gmra.mxu1 %vm1000_vm3, %v5064_v22  ;;  %v939_v33 = vunpack.c.l.b16 %v567_v27  ;;  %v758_v34 = vrot.slane %v756_v20, 5  ;;  %v164_v36 = vshll.u32 %v19_v21, 16  ;;  %v170_v39 = vshll.u32 %v20_v26, 16  ;;  %v77_v9 = vld [vmem:[%s7136_s0 + $0xf4] sm:$0xf]  ;;  %s4231_s29 = sshll.u32 %s7139_s3, 4  ;;  %s4232_s29 = int_to_ptr.hbm [resolvable:$true] %s4231_s29 }
  0x25   :  { %v744_v37 = vrot.slane %v743_v29, 4  ;;  %v753_v38 = vor.u32 %v752_v30, %v748_v25  ;;  %v174_v40 = vshrl.u32 %v20_v26, 16  ;;  %v163_v43 = vrot.slane %v161_v35, 4  ;;  %v78_v10 = vld [vmem:[%s7136_s0 + $0xf8] sm:$0x1] }
  0x26   :  { %v5081_v42 = vpack.c.b16 %v939_v33, %v938_v28  ;;  %v166_v44 = vrot.slane %v164_v36, 5  ;;  %v180_v45 = vshll.u32 %v21_v31, 16  ;;  %v172_v49 = vrot.slane %v170_v39, 5  ;;  %v100_v29 = vld [vmem:[%s7136_s0 + $0x150] sm:$0xf] }
  0x27   :  { %v749_v47 = vsel %vm4969_vm4, %v744_v37, %v748_v25  ;;  %v754_v48 = vrot.slane %v753_v38, 4  ;;  %v176_v50 = vrot.slane %v174_v40, 4  ;;  %v377_v55 = vshrl.u32 %v46_v41, 16  ;;  %v102_v35 = vld [vmem:[%s7136_s0 + $0x158] sm:$0x1] }
  0x28   :  { %4262 = vmatmul.msk.bf16.gmra.mxu2 %vm1000_vm3, %v5081_v42  ;;  %v954_v51 = vunpack.c.l.b16 %v749_v47  ;;  %v167_v52 = vor.u32 %v166_v44, %v163_v43  ;;  %v182_v53 = vrot.slane %v180_v45, 5  ;;  %v380_v59 = vshll.u32 %v46_v41, 16 }
  0x29   :  { %v759_v56 = vsel %vm4969_vm4, %v754_v48, %v758_v34  ;;  %v177_v58 = vor.u32 %v176_v50, %v172_v49  ;;  %v386_v60 = vshll.u32 %v47_v46, 16  ;;  %v379_v63 = vrot.slane %v377_v55, 4  ;;  %v101_v34 = vld [vmem:[%s7136_s0 + $0x154] sm:$0xf] }
  0x2a   :  { %v955_v61 = vunpack.c.l.b16 %v759_v56  ;;  %v168_v62 = vrot.slane %v167_v52, 4  ;;  %v390_v0 = vshrl.u32 %v47_v46, 16  ;;  %v382_v2 = vrot.slane %v380_v59, 5  ;;  %v24_v59 = vld [vmem:[%s7136_s0 + $0x20] sm:$0x1] }
  0x2b   :  { %v178_v1 = vrot.slane %v177_v58, 4  ;;  %v388_v3 = vrot.slane %v386_v60, 5  ;;  %v396_v4 = vshll.u32 %v48_v54, 16  ;;  %v569_v17 = vshrl.u32 %v76_v5, 16  ;;  %v23_v58 = vld [vmem:[%s7136_s0 + $0x1c] sm:$0xf] }
  0x2c   :  { %v5098_v6 = vpack.c.b16 %v955_v61, %v954_v51  ;;  %v173_v7 = vsel %vm4969_vm4, %v168_v62, %v172_v49  ;;  %v392_v8 = vrot.slane %v390_v0, 4  ;;  %v383_v13 = vor.u32 %v382_v2, %v379_v63 }
  0x2d   :  { %v183_v11 = vsel %vm4969_vm4, %v178_v1, %v182_v53  ;;  %v906_v12 = vunpack.c.l.b16 %v173_v7  ;;  %v398_v14 = vrot.slane %v396_v4, 5  ;;  %v572_v18 = vshll.u32 %v76_v5, 16  ;;  %v22_v53 = vld [vmem:[%s7136_s0 + $0x18] sm:$0xf] }
  0x2e   :  { %7222 = vst [vmem:[#allocation10_spill] sm:$0xff] %v5098_v6  ;;  %4270 = vmatmul.msk.bf16.gmra.mxu3 %vm1000_vm3, %v5098_v6  ;;  %v907_v15 = vunpack.c.l.b16 %v183_v11  ;;  %v393_v16 = vor.u32 %v392_v8, %v388_v3  ;;  %v384_v19 = vrot.slane %v383_v13, 4  ;;  %v578_v20 = vshll.u32 %v77_v9, 16 }
  0x2f   :  { %v582_v21 = vshrl.u32 %v77_v9, 16  ;;  %v588_v23 = vshll.u32 %v78_v10, 16  ;;  %v571_v27 = vrot.slane %v569_v17, 4  ;;  %v574_v28 = vrot.slane %v572_v18, 5  ;;  %v49_v9 = vld [vmem:[%s7136_s0 + $0x84] sm:$0xf] }
  0x30   :  { %v5112_v25 = vpack.c.b16 %v907_v15, %v906_v12  ;;  %v394_v26 = vrot.slane %v393_v16, 4  ;;  %v389_v30 = vsel %vm4969_vm4, %v384_v19, %v388_v3  ;;  %v580_v31 = vrot.slane %v578_v20, 5  ;;  %v51_v19 = vld [vmem:[%s7136_s0 + $0x8c] sm:$0x1] }
  0x31   :  { %v584_v33 = vrot.slane %v582_v21, 4  ;;  %v924_v37 = vunpack.c.l.b16 %v389_v30  ;;  %v575_v38 = vor.u32 %v574_v28, %v571_v27  ;;  %v590_v39 = vrot.slane %v588_v23, 5 }
  0x32   :  { %4246 = vmatmul.msk.bf16.gmra.mxu0 %vm1000_vm3, %v5112_v25  ;;  %v399_v36 = vsel %vm4969_vm4, %v394_v26, %v398_v14  ;;  %v761_v43 = vshrl.u32 %v100_v29, 16  ;;  %v764_v44 = vshll.u32 %v100_v29, 16  ;;  %v770_v46 = vshll.u32 %v101_v34, 16  ;;  %v50_v14 = vld [vmem:[%s7136_s0 + $0x88] sm:$0xf] }
  0x33   :  { %v925_v40 = vunpack.c.l.b16 %v399_v36  ;;  %v585_v41 = vor.u32 %v584_v33, %v580_v31  ;;  %v576_v45 = vrot.slane %v575_v38, 4  ;;  %v774_v47 = vshrl.u32 %v101_v34, 16  ;;  %v79_v36 = vld [vmem:[%s7136_s0 + $0xfc] sm:$0xf] }
  0x34   :  { %v780_v48 = vshll.u32 %v102_v35, 16  ;;  %v763_v51 = vrot.slane %v761_v43, 4  ;;  %v766_v52 = vrot.slane %v764_v44, 5  ;;  %v772_v55 = vrot.slane %v770_v46, 5  ;;  %v81_v46 = vld [vmem:[%s7136_s0 + $0x104] sm:$0x1] }
  0x35   :  { %v5129_v49 = vpack.c.b16 %v925_v40, %v924_v37  ;;  %v586_v50 = vrot.slane %v585_v41, 4  ;;  %v581_v54 = vsel %vm4969_vm4, %v576_v45, %v580_v31  ;;  %v776_v56 = vrot.slane %v774_v47, 4  ;;  %v80_v41 = vld [vmem:[%s7136_s0 + $0x100] sm:$0xf] }
  0x36   :  { %v940_v61 = vunpack.c.l.b16 %v581_v54  ;;  %v767_v62 = vor.u32 %v766_v52, %v763_v51  ;;  %v782_v63 = vrot.slane %v780_v48, 5  ;;  %v185_v2 = vshrl.u32 %v22_v53, 16 }
  0x37   :  { %4255 = vmatmul.msk.bf16.gmra.mxu1 %vm1000_vm3, %v5129_v49  ;;  %v591_v60 = vsel %vm4969_vm4, %v586_v50, %v590_v39  ;;  %v777_v1 = vor.u32 %v776_v56, %v772_v55  ;;  %v188_v3 = vshll.u32 %v22_v53, 16  ;;  %v194_v5 = vshll.u32 %v23_v58, 16 }
  0x38   :  { %v941_v0 = vunpack.c.l.b16 %v591_v60  ;;  %v768_v4 = vrot.slane %v767_v62, 4  ;;  %v198_v7 = vshrl.u32 %v23_v58, 16  ;;  %v204_v8 = vshll.u32 %v24_v59, 16 }
  0x39   :  { %v778_v11 = vrot.slane %v777_v1, 4  ;;  %v187_v12 = vrot.slane %v185_v2, 4  ;;  %v190_v13 = vrot.slane %v188_v3, 5  ;;  %v196_v16 = vrot.slane %v194_v5, 5  ;;  %v104_v2 = vld [vmem:[%s7136_s0 + $0x160] sm:$0xf] }
  0x3a   :  { %v5149_v10 = vpack.c.b16 %v941_v0, %v940_v61  ;;  %v773_v15 = vsel %vm4969_vm4, %v768_v4, %v772_v55  ;;  %v200_v17 = vrot.slane %v198_v7, 4  ;;  %v206_v18 = vrot.slane %v204_v8, 5  ;;  %v103_v61 = vld [vmem:[%s7136_s0 + $0x15c] sm:$0xf]  ;;  %v105_v7 = vld [vmem:[%s7136_s0 + $0x164] sm:$0x1] }
  0x3b   :  { %v783_v20 = vsel %vm4969_vm4, %v778_v11, %v782_v63  ;;  %v956_v21 = vunpack.c.l.b16 %v773_v15  ;;  %v191_v23 = vor.u32 %v190_v13, %v187_v12  ;;  %v401_v26 = vshrl.u32 %v49_v9, 16 }
  0x3c   :  { %4263 = vmatmul.msk.bf16.gmra.mxu2 %vm1000_vm3, %v5149_v10  ;;  %v957_v27 = vunpack.c.l.b16 %v783_v20  ;;  %v201_v28 = vor.u32 %v200_v17, %v196_v16  ;;  %v404_v29 = vshll.u32 %v49_v9, 16  ;;  %v410_v30 = vshll.u32 %v50_v14, 16 }
  0x3d   :  { %v192_v31 = vrot.slane %v191_v23, 4  ;;  %v403_v33 = vrot.slane %v401_v26, 4  ;;  %v414_v34 = vshrl.u32 %v50_v14, 16  ;;  %v420_v35 = vshll.u32 %v51_v19, 16 }
  0x3e   :  { %v5166_v37 = vpack.c.b16 %v957_v27, %v956_v21  ;;  %v202_v38 = vrot.slane %v201_v28, 4  ;;  %v406_v39 = vrot.slane %v404_v29, 5  ;;  %v412_v40 = vrot.slane %v410_v30, 5  ;;  %v5200_v21 = vld [vmem:[%s7136_s0 + $0x24] sm:$0xf] }
  0x3f   :  { %v197_v43 = vsel %vm4969_vm4, %v192_v31, %v196_v16  ;;  %v416_v44 = vrot.slane %v414_v34, 4  ;;  %v422_v45 = vrot.slane %v420_v35, 5  ;;  %v593_v51 = vshrl.u32 %v79_v36, 16  ;;  %v5207_v29 = vld [vmem:[%s7136_s0 + $0x28] sm:$0xf] }
  0x40   :  { %7223 = vst [vmem:[#allocation11_spill] sm:$0xff] %v5166_v37  ;;  %4271 = vmatmul.msk.bf16.gmra.mxu3 %vm1000_vm3, %v5166_v37  ;;  %v207_v47 = vsel %vm4969_vm4, %v202_v38, %v206_v18  ;;  %v908_v48 = vunpack.c.l.b16 %v197_v43  ;;  %v407_v50 = vor.u32 %v406_v39, %v403_v33  ;;  %v596_v54 = vshll.u32 %v79_v36, 16  ;;  %v5214_v34 = vld [vmem:[%s7136_s0 + $0x2c] sm:$0x1] }
  0x41   :  { %v909_v52 = vunpack.c.l.b16 %v207_v47  ;;  %v417_v53 = vor.u32 %v416_v44, %v412_v40  ;;  %v602_v55 = vshll.u32 %v80_v41, 16  ;;  %v595_v58 = vrot.slane %v593_v51, 4 }
  0x42   :  { %v408_v56 = vrot.slane %v407_v50, 4  ;;  %v606_v59 = vshrl.u32 %v80_v41, 16  ;;  %v612_v60 = vshll.u32 %v81_v46, 16  ;;  %v598_v0 = vrot.slane %v596_v54, 5 }
  0x43   :  { %v5183_v62 = vpack.c.b16 %v909_v52, %v908_v48  ;;  %v418_v63 = vrot.slane %v417_v53, 4  ;;  %v604_v1 = vrot.slane %v602_v55, 5  ;;  %v785_v12 = vshrl.u32 %v103_v61, 16  ;;  %v53_v55 = vld [vmem:[%s7136_s0 + $0x94] sm:$0xf] }
  0x44   :  { %v413_v3 = vsel %vm4969_vm4, %v408_v56, %v412_v40  ;;  %v608_v4 = vrot.slane %v606_v59, 4  ;;  %v614_v5 = vrot.slane %v612_v60, 5  ;;  %v599_v11 = vor.u32 %v598_v0, %v595_v58  ;;  %v54_v60 = vld [vmem:[%s7136_s0 + $0x98] sm:$0x1] }
  0x45   :  { %7224 = vst [vmem:[#allocation12_spill] sm:$0xff] %v5183_v62  ;;  %4247 = vmatmul.msk.bf16.gmra.mxu0 %vm1000_vm3, %v5183_v62  ;;  %v423_v8 = vsel %vm4969_vm4, %v418_v63, %v422_v45  ;;  %v926_v9 = vunpack.c.l.b16 %v413_v3  ;;  %v788_v15 = vshll.u32 %v103_v61, 16  ;;  %v794_v16 = vshll.u32 %v104_v2, 16  ;;  %v52_v45 = vld [vmem:[%s7136_s0 + $0x90] sm:$0xf] }
  0x46   :  { %v927_v13 = vunpack.c.l.b16 %v423_v8  ;;  %v609_v14 = vor.u32 %v608_v4, %v604_v1  ;;  %v600_v17 = vrot.slane %v599_v11, 4  ;;  %v787_v18 = vrot.slane %v785_v12, 4 }
  0x47   :  { %v798_v19 = vshrl.u32 %v104_v2, 16  ;;  %v804_v20 = vshll.u32 %v105_v7, 16  ;;  %v790_v27 = vrot.slane %v788_v15, 5  ;;  %v796_v28 = vrot.slane %v794_v16, 5 }
  0x48   :  { %v5202_v23 = vpack.c.b16 %v927_v13, %v926_v9  ;;  %v610_v26 = vrot.slane %v609_v14, 4  ;;  %v605_v30 = vsel %vm4969_vm4, %v600_v17, %v604_v1  ;;  %v209_v39 = vshrl.u32 %v5200_v21, 16  ;;  %v82_v13 = vld [vmem:[%s7136_s0 + $0x108] sm:$0xf]  ;;  %v83_v17 = vld [vmem:[%s7136_s0 + $0x10c] sm:$0xf] }
  0x49   :  { %v800_v31 = vrot.slane %v798_v19, 4  ;;  %v806_v33 = vrot.slane %v804_v20, 5  ;;  %v942_v36 = vunpack.c.l.b16 %v605_v30  ;;  %v791_v38 = vor.u32 %v790_v27, %v787_v18  ;;  %v84_v27 = vld [vmem:[%s7136_s0 + $0x110] sm:$0x1] }
  0x4a   :  { %4256 = vmatmul.msk.bf16.gmra.mxu1 %vm1000_vm3, %v5202_v23  ;;  %v615_v35 = vsel %vm4969_vm4, %v610_v26, %v614_v5  ;;  %v212_v43 = vshll.u32 %v5200_v21, 16  ;;  %v218_v44 = vshll.u32 %v5207_v29, 16  ;;  %v211_v47 = vrot.slane %v209_v39, 4 }
  0x4b   :  { %v943_v40 = vunpack.c.l.b16 %v615_v35  ;;  %v801_v41 = vor.u32 %v800_v31, %v796_v28  ;;  %v792_v46 = vrot.slane %v791_v38, 4  ;;  %v222_v48 = vshrl.u32 %v5207_v29, 16 }
  0x4c   :  { %v228_v50 = vshll.u32 %v5214_v34, 16  ;;  %v214_v53 = vrot.slane %v212_v43, 5  ;;  %v220_v54 = vrot.slane %v218_v44, 5  ;;  %v425_v61 = vshrl.u32 %v52_v45, 16 }
  0x4d   :  { %v5228_v51 = vpack.c.b16 %v943_v40, %v942_v36  ;;  %v802_v52 = vrot.slane %v801_v41, 4  ;;  %v797_v56 = vsel %vm4969_vm4, %v792_v46, %v796_v28  ;;  %v224_v58 = vrot.slane %v222_v48, 4 }
  0x4e   :  { %v230_v59 = vrot.slane %v228_v50, 5  ;;  %v958_v0 = vunpack.c.l.b16 %v797_v56  ;;  %v215_v1 = vor.u32 %v214_v53, %v211_v47  ;;  %v428_v2 = vshll.u32 %v52_v45, 16  ;;  %v106_v45 = vld [vmem:[%s7136_s0 + $0x168] sm:$0xf]  ;;  %v108_v56 = vld [vmem:[%s7136_s0 + $0x170] sm:$0x1] }
  0x4f   :  { %4264 = vmatmul.msk.bf16.gmra.mxu2 %vm1000_vm3, %v5228_v51  ;;  %v807_v63 = vsel %vm4969_vm4, %v802_v52, %v806_v33  ;;  %v225_v4 = vor.u32 %v224_v58, %v220_v54  ;;  %v427_v5 = vrot.slane %v425_v61, 4  ;;  %v434_v7 = vshll.u32 %v53_v55, 16  ;;  %v107_v52 = vld [vmem:[%s7136_s0 + $0x16c] sm:$0xf] }
  0x50   :  { %v959_v3 = vunpack.c.l.b16 %v807_v63  ;;  %v216_v8 = vrot.slane %v215_v1, 4  ;;  %v430_v9 = vrot.slane %v428_v2, 5  ;;  %v438_v11 = vshrl.u32 %v53_v55, 16 }
  0x51   :  { %v444_v12 = vshll.u32 %v54_v60, 16  ;;  %v226_v15 = vrot.slane %v225_v4, 4  ;;  %v436_v16 = vrot.slane %v434_v7, 5  ;;  %v617_v31 = vshrl.u32 %v82_v13, 16 }
  0x52   :  { %v5245_v14 = vpack.c.b16 %v959_v3, %v958_v0  ;;  %v221_v18 = vsel %vm4969_vm4, %v216_v8, %v220_v54  ;;  %v431_v19 = vor.u32 %v430_v9, %v427_v5  ;;  %v440_v20 = vrot.slane %v438_v11, 4  ;;  %v5279_v8 = vld [vmem:[%s7136_s0 + $0x30] sm:$0xf] }
  0x53   :  { %v446_v26 = vrot.slane %v444_v12, 5  ;;  %v231_v28 = vsel %vm4969_vm4, %v226_v15, %v230_v59  ;;  %v910_v30 = vunpack.c.l.b16 %v221_v18  ;;  %v620_v33 = vshll.u32 %v82_v13, 16  ;;  %v5288_v15 = vld [vmem:[%s7136_s0 + $0x34] sm:$0xf] }
  0x54   :  { %7225 = vst [vmem:[#allocation13_spill] sm:$0xff] %v5245_v14  ;;  %4272 = vmatmul.msk.bf16.gmra.mxu3 %vm1000_vm3, %v5245_v14  ;;  %v911_v35 = vunpack.c.l.b16 %v231_v28  ;;  %v432_v36 = vrot.slane %v431_v19, 4  ;;  %v441_v38 = vor.u32 %v440_v20, %v436_v16  ;;  %v626_v39 = vshll.u32 %v83_v17, 16  ;;  %v5293_v19 = vld [vmem:[%s7136_s0 + $0x38] sm:$0x1] }
  0x55   :  { %v619_v40 = vrot.slane %v617_v31, 4  ;;  %v622_v41 = vrot.slane %v620_v33, 5  ;;  %v630_v43 = vshrl.u32 %v83_v17, 16  ;;  %v636_v44 = vshll.u32 %v84_v27, 16 }
  0x56   :  { %v5262_v46 = vpack.c.b16 %v911_v35, %v910_v30  ;;  %v437_v47 = vsel %vm4969_vm4, %v432_v36, %v436_v16  ;;  %v442_v48 = vrot.slane %v441_v38, 4  ;;  %v628_v50 = vrot.slane %v626_v39, 5 }
  0x57   :  { %v928_v53 = vunpack.c.l.b16 %v437_v47  ;;  %v623_v54 = vor.u32 %v622_v41, %v619_v40  ;;  %v632_v55 = vrot.slane %v630_v43, 4  ;;  %v638_v59 = vrot.slane %v636_v44, 5  ;;  %v55_v41 = vld [vmem:[%s7136_s0 + $0x9c] sm:$0xf] }
  0x58   :  { %7226 = vst [vmem:[#allocation14_spill] sm:$0xff] %v5262_v46  ;;  %4248 = vmatmul.msk.bf16.gmra.mxu0 %vm1000_vm3, %v5262_v46  ;;  %v447_v58 = vsel %vm4969_vm4, %v442_v48, %v446_v26  ;;  %v809_v60 = vshrl.u32 %v106_v45, 16  ;;  %v812_v61 = vshll.u32 %v106_v45, 16  ;;  %v818_v2 = vshll.u32 %v107_v52, 16  ;;  %v56_v48 = vld [vmem:[%s7136_s0 + $0xa0] sm:$0xf] }
  0x59   :  { %v929_v63 = vunpack.c.l.b16 %v447_v58  ;;  %v624_v0 = vrot.slane %v623_v54, 4  ;;  %v633_v1 = vor.u32 %v632_v55, %v628_v50  ;;  %v822_v5 = vshrl.u32 %v107_v52, 16  ;;  %v57_v54 = vld [vmem:[%s7136_s0 + $0xa4] sm:$0x1] }
  0x5a   :  { %v811_v3 = vrot.slane %v809_v60, 4  ;;  %v814_v4 = vrot.slane %v812_v61, 5  ;;  %v828_v7 = vshll.u32 %v108_v56, 16  ;;  %v820_v13 = vrot.slane %v818_v2, 5 }
  0x5b   :  { %v5281_v9 = vpack.c.b16 %v929_v63, %v928_v53  ;;  %v629_v11 = vsel %vm4969_vm4, %v624_v0, %v628_v50  ;;  %v634_v12 = vrot.slane %v633_v1, 4  ;;  %v824_v18 = vrot.slane %v822_v5, 4  ;;  %v85_v5 = vld [vmem:[%s7136_s0 + $0x114] sm:$0xf] }
  0x5c   :  { %v944_v16 = vunpack.c.l.b16 %v629_v11  ;;  %v815_v17 = vor.u32 %v814_v4, %v811_v3  ;;  %v830_v26 = vrot.slane %v828_v7, 5  ;;  %v233_v27 = vshrl.u32 %v5279_v8, 16 }
  0x5d   :  { %4257 = vmatmul.msk.bf16.gmra.mxu1 %vm1000_vm3, %v5281_v9  ;;  %v639_v20 = vsel %vm4969_vm4, %v634_v12, %v638_v59  ;;  %v236_v28 = vshll.u32 %v5279_v8, 16  ;;  %v825_v33 = vor.u32 %v824_v18, %v820_v13  ;;  %v242_v35 = vshll.u32 %v5288_v15, 16 }
  0x5e   :  { %v945_v30 = vunpack.c.l.b16 %v639_v20  ;;  %v816_v31 = vrot.slane %v815_v17, 4  ;;  %v235_v36 = vrot.slane %v233_v27, 4  ;;  %v246_v39 = vshrl.u32 %v5288_v15, 16 }
  0x5f   :  { %v238_v38 = vrot.slane %v236_v28, 5  ;;  %v252_v40 = vshll.u32 %v5293_v19, 16  ;;  %v826_v45 = vrot.slane %v825_v33, 4  ;;  %v244_v47 = vrot.slane %v242_v35, 5 }
  0x60   :  { %v5307_v43 = vpack.c.b16 %v945_v30, %v944_v16  ;;  %v821_v44 = vsel %vm4969_vm4, %v816_v31, %v820_v13  ;;  %v248_v53 = vrot.slane %v246_v39, 4  ;;  %v449_v58 = vshrl.u32 %v55_v41, 16  ;;  %v86_v16 = vld [vmem:[%s7136_s0 + $0x118] sm:$0xf] }
  0x61   :  { %v960_v50 = vunpack.c.l.b16 %v821_v44  ;;  %v239_v52 = vor.u32 %v238_v38, %v235_v36  ;;  %v831_v55 = vsel %vm4969_vm4, %v826_v45, %v830_v26  ;;  %v254_v56 = vrot.slane %v252_v40, 5  ;;  %v87_v26 = vld [vmem:[%s7136_s0 + $0x11c] sm:$0x1]  ;;  %v109_v45 = vld [vmem:[%s7136_s0 + $0x174] sm:$0xf] }
  0x62   :  { %4265 = vmatmul.msk.bf16.gmra.mxu2 %vm1000_vm3, %v5307_v43  ;;  %v452_v59 = vshll.u32 %v55_v41, 16  ;;  %v961_v60 = vunpack.c.l.b16 %v831_v55  ;;  %v249_v63 = vor.u32 %v248_v53, %v244_v47  ;;  %v458_v0 = vshll.u32 %v56_v48, 16  ;;  %v110_v53 = vld [vmem:[%s7136_s0 + $0x178] sm:$0xf] }
  0x63   :  { %v240_v61 = vrot.slane %v239_v52, 4  ;;  %v451_v1 = vrot.slane %v449_v58, 4  ;;  %v462_v3 = vshrl.u32 %v56_v48, 16  ;;  %v468_v4 = vshll.u32 %v57_v54, 16  ;;  %v111_v58 = vld [vmem:[%s7136_s0 + $0x17c] sm:$0x1] }
  0x64   :  { %v454_v2 = vrot.slane %v452_v59, 5  ;;  %v5324_v7 = vpack.c.b16 %v961_v60, %v960_v50  ;;  %v250_v12 = vrot.slane %v249_v63, 4  ;;  %v460_v13 = vrot.slane %v458_v0, 5 }
  0x65   :  { %v245_v11 = vsel %vm4969_vm4, %v240_v61, %v244_v47  ;;  %v464_v20 = vrot.slane %v462_v3, 4  ;;  %v470_v28 = vrot.slane %v468_v4, 5  ;;  %v641_v30 = vshrl.u32 %v85_v5, 16 }
  0x66   :  { %7227 = vst [vmem:[#allocation15_spill] sm:$0xff] %v5324_v7  ;;  %v912_v17 = vunpack.c.l.b16 %v245_v11  ;;  %v455_v18 = vor.u32 %v454_v2, %v451_v1  ;;  %4273 = vmatmul.msk.bf16.gmra.mxu3 %vm1000_vm3, %v5324_v7  ;;  %v255_v27 = vsel %vm4969_vm4, %v250_v12, %v254_v56  ;;  %v644_v31 = vshll.u32 %v85_v5, 16 }
  0x67   :  { %v913_v33 = vunpack.c.l.b16 %v255_v27  ;;  %v465_v36 = vor.u32 %v464_v20, %v460_v13  ;;  %v650_v38 = vshll.u32 %v86_v16, 16  ;;  %v643_v39 = vrot.slane %v641_v30, 4 }
  0x68   :  { %v456_v35 = vrot.slane %v455_v18, 4  ;;  %v646_v40 = vrot.slane %v644_v31, 5  ;;  %v654_v41 = vshrl.u32 %v86_v16, 16  ;;  %v660_v44 = vshll.u32 %v87_v26, 16  ;;  %v5367_v26 = vld [vmem:[%s7136_s0 + $0x40] sm:$0xf] }
  0x69   :  { %v5341_v47 = vpack.c.b16 %v913_v33, %v912_v17  ;;  %v466_v50 = vrot.slane %v465_v36, 4  ;;  %v652_v52 = vrot.slane %v650_v38, 5  ;;  %v833_v61 = vshrl.u32 %v109_v45, 16  ;;  %v5372_v31 = vld [vmem:[%s7136_s0 + $0x44] sm:$0x1] }
  0x6a   :  { %v461_v48 = vsel %vm4969_vm4, %v456_v35, %v460_v13  ;;  %v647_v55 = vor.u32 %v646_v40, %v643_v39  ;;  %v656_v56 = vrot.slane %v654_v41, 4  ;;  %v662_v60 = vrot.slane %v660_v44, 5  ;;  %v5358_v13 = vld [vmem:[%s7136_s0 + $0x3c] sm:$0xf] }
  0x6b   :  { %7228 = vst [vmem:[#allocation16_spill] sm:$0xff] %v5341_v47  ;;  %v930_v54 = vunpack.c.l.b16 %v461_v48  ;;  %4249 = vmatmul.msk.bf16.gmra.mxu0 %vm1000_vm3, %v5341_v47  ;;  %v471_v59 = vsel %vm4969_vm4, %v466_v50, %v470_v28  ;;  %v836_v63 = vshll.u32 %v109_v45, 16  ;;  %v842_v3 = vshll.u32 %v110_v53, 16 }
  0x6c   :  { %v931_v0 = vunpack.c.l.b16 %v471_v59  ;;  %v648_v1 = vrot.slane %v647_v55, 4  ;;  %v657_v2 = vor.u32 %v656_v56, %v652_v52  ;;  %v835_v4 = vrot.slane %v833_v61, 4  ;;  %v59_v59 = vld [vmem:[%s7136_s0 + $0xac] sm:$0xf] }
  0x6d   :  { %v838_v5 = vrot.slane %v836_v63, 5  ;;  %v846_v11 = vshrl.u32 %v110_v53, 16  ;;  %v852_v12 = vshll.u32 %v111_v58, 16  ;;  %v844_v20 = vrot.slane %v842_v3, 5  ;;  %v58_v53 = vld [vmem:[%s7136_s0 + $0xa8] sm:$0xf] }
  0x6e   :  { %v5360_v16 = vpack.c.b16 %v931_v0, %v930_v54  ;;  %v653_v17 = vsel %vm4969_vm4, %v648_v1, %v652_v52  ;;  %v658_v18 = vrot.slane %v657_v2, 4  ;;  %v257_v36 = vshrl.u32 %v5358_v13, 16  ;;  %v60_v0 = vld [vmem:[%s7136_s0 + $0xb0] sm:$0x1] }
  0x6f   :  { %v946_v27 = vunpack.c.l.b16 %v653_v17  ;;  %v839_v28 = vor.u32 %v838_v5, %v835_v4  ;;  %v848_v30 = vrot.slane %v846_v11, 4  ;;  %v854_v35 = vrot.slane %v852_v12, 5 }
  0x70   :  { %4258 = vmatmul.msk.bf16.gmra.mxu1 %vm1000_vm3, %v5360_v16  ;;  %v663_v33 = vsel %vm4969_vm4, %v658_v18, %v662_v60  ;;  %v260_v38 = vshll.u32 %v5358_v13, 16  ;;  %v266_v44 = vshll.u32 %v5367_v26, 16  ;;  %v259_v45 = vrot.slane %v257_v36, 4 }
  0x71   :  { %v947_v39 = vunpack.c.l.b16 %v663_v33  ;;  %v840_v40 = vrot.slane %v839_v28, 4  ;;  %v849_v41 = vor.u32 %v848_v30, %v844_v20  ;;  %v270_v50 = vshrl.u32 %v5367_v26, 16  ;;  %v88_v30 = vld [vmem:[%s7136_s0 + $0x120] sm:$0xf] }
  0x72   :  { %v262_v48 = vrot.slane %v260_v38, 5  ;;  %v276_v52 = vshll.u32 %v5372_v31, 16  ;;  %v268_v58 = vrot.slane %v266_v44, 5  ;;  %v473_v3 = vshrl.u32 %v58_v53, 16 }
  0x73   :  { %v5386_v54 = vpack.c.b16 %v947_v39, %v946_v27  ;;  %v845_v55 = vsel %vm4969_vm4, %v840_v40, %v844_v20  ;;  %v850_v56 = vrot.slane %v849_v41, 4  ;;  %v272_v63 = vrot.slane %v270_v50, 4  ;;  %v89_v39 = vld [vmem:[%s7136_s0 + $0x124] sm:$0xf] }
  0x74   :  { %v962_v60 = vunpack.c.l.b16 %v845_v55  ;;  %v263_v61 = vor.u32 %v262_v48, %v259_v45  ;;  %v278_v2 = vrot.slane %v276_v52, 5  ;;  %v476_v4 = vshll.u32 %v58_v53, 16  ;;  %v90_v45 = vld [vmem:[%s7136_s0 + $0x128] sm:$0x1] }
  0x75   :  { %7229 = vst [vmem:[#allocation17_spill] sm:$0xff] %v5386_v54  ;;  %4266 = vmatmul.msk.bf16.gmra.mxu2 %vm1000_vm3, %v5386_v54  ;;  %v855_v1 = vsel %vm4969_vm4, %v850_v56, %v854_v35  ;;  %v273_v12 = vor.u32 %v272_v63, %v268_v58  ;;  %v482_v17 = vshll.u32 %v59_v59, 16  ;;  %v475_v18 = vrot.slane %v473_v3, 4 }
  0x76   :  { %v963_v5 = vunpack.c.l.b16 %v855_v1  ;;  %v264_v11 = vrot.slane %v263_v61, 4  ;;  %v478_v20 = vrot.slane %v476_v4, 5  ;;  %v486_v27 = vshrl.u32 %v59_v59, 16  ;;  %v112_v1 = vld [vmem:[%s7136_s0 + $0x180] sm:$0xf] }
  0x77   :  { %v492_v28 = vshll.u32 %v60_v0, 16  ;;  %v274_v36 = vrot.slane %v273_v12, 4  ;;  %v484_v38 = vrot.slane %v482_v17, 5  ;;  %v665_v52 = vshrl.u32 %v88_v30, 16 }
  0x78   :  { %v5403_v33 = vpack.c.b16 %v963_v5, %v962_v60  ;;  %v269_v35 = vsel %vm4969_vm4, %v264_v11, %v268_v58  ;;  %v479_v41 = vor.u32 %v478_v20, %v475_v18  ;;  %v488_v44 = vrot.slane %v486_v27, 4  ;;  %v113_v11 = vld [vmem:[%s7136_s0 + $0x184] sm:$0xf]  ;;  %v114_v20 = vld [vmem:[%s7136_s0 + $0x188] sm:$0x1] }
  0x79   :  { %v914_v40 = vunpack.c.l.b16 %v269_v35  ;;  %v279_v48 = vsel %vm4969_vm4, %v274_v36, %v278_v2  ;;  %v494_v50 = vrot.slane %v492_v28, 5  ;;  %v668_v53 = vshll.u32 %v88_v30, 16 }
  0x7a   :  { %7230 = vst [vmem:[#allocation18_spill] sm:$0xff] %v5403_v33  ;;  %4274 = vmatmul.msk.bf16.gmra.mxu3 %vm1000_vm3, %v5403_v33  ;;  %v915_v55 = vunpack.c.l.b16 %v279_v48  ;;  %v480_v56 = vrot.slane %v479_v41, 4  ;;  %v489_v58 = vor.u32 %v488_v44, %v484_v38  ;;  %v674_v59 = vshll.u32 %v89_v39, 16  ;;  %v115_v33 = vld [vmem:[%s7136_s0 + $0x18c] sm:$0xf] }
  0x7b   :  { %v667_v60 = vrot.slane %v665_v52, 4  ;;  %v670_v61 = vrot.slane %v668_v53, 5  ;;  %v678_v63 = vshrl.u32 %v89_v39, 16  ;;  %v684_v0 = vshll.u32 %v90_v45, 16  ;;  %v5437_v52 = vld [vmem:[%s7136_s0 + $0x48] sm:$0xf] }
  0x7c   :  { %v5420_v3 = vpack.c.b16 %v915_v55, %v914_v40  ;;  %v485_v2 = vsel %vm4969_vm4, %v480_v56, %v484_v38  ;;  %v490_v4 = vrot.slane %v489_v58, 4  ;;  %v676_v5 = vrot.slane %v674_v59, 5  ;;  %v5446_v58 = vld [vmem:[%s7136_s0 + $0x4c] sm:$0xf] }
  0x7d   :  { %v932_v12 = vunpack.c.l.b16 %v485_v2  ;;  %v671_v17 = vor.u32 %v670_v61, %v667_v60  ;;  %v680_v18 = vrot.slane %v678_v63, 4  ;;  %v686_v28 = vrot.slane %v684_v0, 5  ;;  %v5451_v63 = vld [vmem:[%s7136_s0 + $0x50] sm:$0x1] }
  0x7e   :  { %7231 = vst [vmem:[#allocation19_spill] sm:$0xff] %v5420_v3  ;;  %4250 = vmatmul.msk.bf16.gmra.mxu0 %vm1000_vm3, %v5420_v3  ;;  %v495_v27 = vsel %vm4969_vm4, %v490_v4, %v494_v50  ;;  %v857_v30 = vshrl.u32 %v112_v1, 16  ;;  %v860_v35 = vshll.u32 %v112_v1, 16  ;;  %v866_v40 = vshll.u32 %v113_v11, 16 }
  0x7f   :  { %v933_v36 = vunpack.c.l.b16 %v495_v27  ;;  %v672_v38 = vrot.slane %v671_v17, 4  ;;  %v681_v39 = vor.u32 %v680_v18, %v676_v5  ;;  %v870_v45 = vshrl.u32 %v113_v11, 16 }
  0x80   :  { %v859_v41 = vrot.slane %v857_v30, 4  ;;  %v862_v44 = vrot.slane %v860_v35, 5  ;;  %v876_v48 = vshll.u32 %v114_v20, 16  ;;  %v868_v56 = vrot.slane %v866_v40, 5  ;;  %v5474_v40 = vld [vmem:[%s7136_s0 + $0xb8] sm:$0xf] }
  0x81   :  { %v5439_v53 = vpack.c.b16 %v933_v36, %v932_v12  ;;  %v677_v50 = vsel %vm4969_vm4, %v672_v38, %v676_v5  ;;  %v682_v55 = vrot.slane %v681_v39, 4  ;;  %v872_v61 = vrot.slane %v870_v45, 4 }
  0x82   :  { %v948_v59 = vunpack.c.l.b16 %v677_v50  ;;  %v863_v60 = vor.u32 %v862_v44, %v859_v41  ;;  %v878_v1 = vrot.slane %v876_v48, 5  ;;  %v281_v2 = vshrl.u32 %v5437_v52, 16  ;;  %v5479_v48 = vld [vmem:[%s7136_s0 + $0xbc] sm:$0x1] }
  0x83   :  { %4259 = vmatmul.msk.bf16.gmra.mxu1 %vm1000_vm3, %v5439_v53  ;;  %v687_v0 = vsel %vm4969_vm4, %v682_v55, %v686_v28  ;;  %v284_v4 = vshll.u32 %v5437_v52, 16  ;;  %v873_v12 = vor.u32 %v872_v61, %v868_v56  ;;  %v290_v17 = vshll.u32 %v5446_v58, 16  ;;  %v5465_v28 = vld [vmem:[%s7136_s0 + $0xb4] sm:$0xf] }
  0x84   :  { %v949_v5 = vunpack.c.l.b16 %v687_v0  ;;  %v864_v11 = vrot.slane %v863_v60, 4  ;;  %v283_v18 = vrot.slane %v281_v2, 4  ;;  %v294_v27 = vshrl.u32 %v5446_v58, 16 }
  0x85   :  { %v286_v20 = vrot.slane %v284_v4, 5  ;;  %v300_v30 = vshll.u32 %v5451_v63, 16  ;;  %v874_v38 = vrot.slane %v873_v12, 4  ;;  %v292_v39 = vrot.slane %v290_v17, 5 }
  0x86   :  { %v5467_v35 = vpack.c.b16 %v949_v5, %v948_v59  ;;  %v869_v36 = vsel %vm4969_vm4, %v864_v11, %v868_v56  ;;  %v296_v45 = vrot.slane %v294_v27, 4  ;;  %v497_v56 = vshrl.u32 %v5465_v28, 16 }
  0x87   :  { %v964_v41 = vunpack.c.l.b16 %v869_v36  ;;  %v287_v44 = vor.u32 %v286_v20, %v283_v18  ;;  %v879_v50 = vsel %vm4969_vm4, %v874_v38, %v878_v1  ;;  %v302_v55 = vrot.slane %v300_v30, 5  ;;  %v91_v1 = vld [vmem:[%s7136_s0 + $0x12c] sm:$0xf]  ;;  %v92_v30 = vld [vmem:[%s7136_s0 + $0x130] sm:$0xf] }
  0x88   :  { %7232 = vst [vmem:[#allocation20_spill] sm:$0xff] %v5467_v35  ;;  %4267 = vmatmul.msk.bf16.gmra.mxu2 %vm1000_vm3, %v5467_v35  ;;  %v500_v59 = vshll.u32 %v5465_v28, 16  ;;  %v965_v60 = vunpack.c.l.b16 %v879_v50  ;;  %v297_v0 = vor.u32 %v296_v45, %v292_v39  ;;  %v506_v2 = vshll.u32 %v5474_v40, 16  ;;  %v93_v45 = vld [vmem:[%s7136_s0 + $0x134] sm:$0x1] }
  0x89   :  { %v288_v61 = vrot.slane %v287_v44, 4  ;;  %v499_v4 = vrot.slane %v497_v56, 4  ;;  %v510_v11 = vshrl.u32 %v5474_v40, 16  ;;  %v516_v12 = vshll.u32 %v5479_v48, 16 }
  0x8a   :  { %v502_v5 = vrot.slane %v500_v59, 5  ;;  %v5493_v17 = vpack.c.b16 %v965_v60, %v964_v41  ;;  %v298_v20 = vrot.slane %v297_v0, 4  ;;  %v508_v27 = vrot.slane %v506_v2, 5 }
  0x8b   :  { %v293_v18 = vsel %vm4969_vm4, %v288_v61, %v292_v39  ;;  %v512_v44 = vrot.slane %v510_v11, 4  ;;  %v518_v41 = vrot.slane %v516_v12, 5  ;;  %v689_v56 = vshrl.u32 %v91_v1, 16 }
  0x8c   :  { %7233 = vst [vmem:[#allocation21_spill] sm:$0xff] %v5493_v17  ;;  %v916_v36 = vunpack.c.l.b16 %v293_v18  ;;  %v503_v38 = vor.u32 %v502_v5, %v499_v4  ;;  %4275 = vmatmul.msk.bf16.gmra.mxu3 %vm1000_vm3, %v5493_v17  ;;  %v303_v39 = vsel %vm4969_vm4, %v298_v20, %v302_v55  ;;  %v692_v59 = vshll.u32 %v91_v1, 16  ;;  %v116_v1 = vld [vmem:[%s7136_s0 + $0x190] sm:$0xf] }
  0x8d   :  { %v5503_v50 = vpop.f32.mrf.mxu1  ;;  %v917_v60 = vunpack.c.l.b16 %v303_v39  ;;  %v513_v0 = vor.u32 %v512_v44, %v508_v27  ;;  %v698_v2 = vshll.u32 %v92_v30, 16  ;;  %v691_v4 = vrot.slane %v689_v56, 4 }
  0x8e   :  { %v504_v61 = vrot.slane %v503_v38, 4  ;;  %v694_v5 = vrot.slane %v692_v59, 5  ;;  %v702_v11 = vshrl.u32 %v92_v30, 16  ;;  %v708_v18 = vshll.u32 %v93_v45, 16  ;;  %v117_v30 = vld [vmem:[%s7136_s0 + $0x194] sm:$0x1] }
  0x8f   :  { %v5512_v7 = vpack.c.b16 %v917_v60, %v916_v36  ;;  %v514_v12 = vrot.slane %v513_v0, 4  ;;  %v700_v20 = vrot.slane %v698_v2, 5  ;;  %v881_v45 = vshrl.u32 %v115_v33, 16 }
  0x90   :  { %v509_v55 = vsel %vm4969_vm4, %v504_v61, %v508_v27  ;;  %v695_v44 = vor.u32 %v694_v5, %v691_v4  ;;  %v704_v39 = vrot.slane %v702_v11, 4  ;;  %v710_v27 = vrot.slane %v708_v18, 5 }
  0x91   :  { %7234 = vst [vmem:[#allocation22_spill] sm:$0xff] %v5512_v7  ;;  %v934_v38 = vunpack.c.l.b16 %v509_v55  ;;  %4251 = vmatmul.msk.bf16.gmra.mxu0 %vm1000_vm3, %v5512_v7  ;;  %v519_v36 = vsel %vm4969_vm4, %v514_v12, %v518_v41  ;;  %v884_v56 = vshll.u32 %v115_v33, 16  ;;  %v890_v0 = vshll.u32 %v116_v1, 16  ;;  %v5529_v55 = vld [vmem:[%s7136_s0 + $0x54] sm:$0xf] }
  0x92   :  { %v935_v59 = vunpack.c.l.b16 %v519_v36  ;;  %v696_v60 = vrot.slane %v695_v44, 4  ;;  %v705_v61 = vor.u32 %v704_v39, %v700_v20  ;;  %v883_v2 = vrot.slane %v881_v45, 4  ;;  %v5538_v12 = vld [vmem:[%s7136_s0 + $0x58] sm:$0xf] }
  0x93   :  { %v886_v4 = vrot.slane %v884_v56, 5  ;;  %v894_v5 = vshrl.u32 %v116_v1, 16  ;;  %v900_v11 = vshll.u32 %v117_v30, 16  ;;  %v892_v33 = vrot.slane %v890_v0, 5  ;;  %v5543_v30 = vld [vmem:[%s7136_s0 + $0x5c] sm:$0x1] }
  0x94   :  { %v5531_v17 = vpack.c.b16 %v935_v59, %v934_v38  ;;  %v701_v41 = vsel %vm4969_vm4, %v696_v60, %v700_v20  ;;  %v706_v18 = vrot.slane %v705_v61, 4  ;;  %v305_v56 = vshrl.u32 %v5529_v55, 16 }
  0x95   :  { %v950_v44 = vunpack.c.l.b16 %v701_v41  ;;  %v887_v1 = vor.u32 %v886_v4, %v883_v2  ;;  %v896_v39 = vrot.slane %v894_v5, 4  ;;  %v5547_v36 = vpop.f32.mrf.mxu1  ;;  %v902_v45 = vrot.slane %v900_v11, 5 }
  0x96   :  { %v5545_v38 = vpop.f32.mrf.mxu2  ;;  %4260 = vmatmul.msk.bf16.gmra.mxu1 %vm1000_vm3, %v5531_v17  ;;  %v711_v20 = vsel %vm4969_vm4, %v706_v18, %v710_v27  ;;  %v308_v59 = vshll.u32 %v5529_v55, 16  ;;  %v314_v4 = vshll.u32 %v5538_v12, 16  ;;  %v307_v5 = vrot.slane %v305_v56, 4 }
  0x97   :  { %7235 = vst [vmem:[#allocation23_spill] sm:$0xff] %v5545_v38  ;;  %v951_v61 = vunpack.c.l.b16 %v711_v20  ;;  %v888_v0 = vrot.slane %v887_v1, 4  ;;  %v897_v2 = vor.u32 %v896_v39, %v892_v33  ;;  %v318_v14 = vshrl.u32 %v5538_v12, 16  ;;  %v130_v1 = vld [vmem:[%s7137_s1 + $0xc] sm:$0x3] }
  0x98   :  { %v310_v41 = vrot.slane %v308_v59, 5  ;;  %v324_v37 = vshll.u32 %v5543_v30, 16  ;;  %v316_v38 = vrot.slane %v314_v4, 5  ;;  %v4754_v39 = vld [vmem:[%s7136_s0 + $0x8] sm:$0x1]  ;;  %vm1730_vm5 = vcmask 1042432  }
  0x99   :  { %v5562_v27 = vpack.c.b16 %v951_v61, %v950_v44  ;;  %v893_v11 = vsel %vm4969_vm4, %v888_v0, %v892_v33  ;;  %v898_v18 = vrot.slane %v897_v2, 4  ;;  %v1738_v20 = vrot.slane %v4754_v39, 5  ;;  %v131_v44 = vld [vmem:[%s7137_s1 + $0xe] sm:$0x3]  ;;  %v129_v33 = vld [vmem:[%s7137_s1 + $0xa] sm:$0x3] }
  0x9a   :  { %v966_v56 = vunpack.c.l.b16 %v893_v11  ;;  %v311_v59 = vor.u32 %v310_v41, %v307_v5  ;;  %v320_v32 = vrot.slane %v318_v14, 4  ;;  %v326_v0 = vrot.slane %v324_v37, 5  ;;  %v132_v14 = vld [vmem:[%s7137_s1 + $0x10] sm:$0x3]  ;;  %v4755_v41 = vld [vmem:[%s7136_s0] sm:$0xf] }
  0x9b   :  { %v5555_v60 = vpop.f32.mrf.mxu0  ;;  %v5560_v6 = vpop.f32.mrf.mxu3  ;;  %7237 = vst [vmem:[#allocation25_spill] sm:$0xff] %v5562_v27  ;;  %4268 = vmatmul.msk.bf16.gmra.mxu2 %vm1000_vm3, %v5562_v27  ;;  %v903_v61 = vsel %vm4969_vm4, %v898_v18, %v902_v45  ;;  %vm1731_vm6 = vcmask 1046532   ;;  %v4437_v11 = vrot.slane %v4755_v41, 9  ;;  %v4756_v37 = vld [vmem:[%s7136_s0 + $0x4] sm:$0xf]  ;;  %v3214_v18 = vsel %vm1097_vm0, %v130_v1, 0 }
  0x9c   :  { %7236 = vst [vmem:[#allocation24_spill] sm:$0xff] %v5560_v6  ;;  %v967_v2 = vunpack.c.l.b16 %v903_v61  ;;  %v312_v4 = vrot.slane %v311_v59, 4  ;;  %v321_v5 = vor.u32 %v320_v32, %v316_v38  ;;  %vm5588_vm7 = vmor %vm1730_vm5, %vm1731_vm6  ;;  %v1735_v45 = vrot.slane %v4756_v37, 5  ;;  %3223 = vmatpush.bf16.msra.mxu2 %v3214_v18 }
  0x9d   :  { %v3510_v61 = vsel %vm1097_vm0, %v131_v44, 0  ;;  %v2962_v32 = vsel %vm1097_vm0, %v129_v33, 0  ;;  %v3774_v37 = vsel %vm1097_vm0, %v132_v14, 0 }
  0x9e   :  { %v5598_v59 = vpop.f32.mrf.mxu2  ;;  %v5602_v41 = vpack.c.b16 %v967_v2, %v966_v56  ;;  %v317_v27 = vsel %vm4969_vm4, %v312_v4, %v316_v38  ;;  %v322_v35 = vrot.slane %v321_v5, 4  ;;  %3519 = vmatpush.bf16.msra.mxu3 %v3510_v61  ;;  %v1737_v1 = vrot.slane %v1735_v45, 4  ;;  %2971 = vmatpush.bf16.msra.mxu1 %v2962_v32  ;;  %v4758_v32 = vld [vmem:[%s7136_s0 + $0xc] sm:$0xf] }
  0x9f   :  { %7240 = vst [vmem:[#allocation26_spill] sm:$0xff] %v5598_v59  ;;  %v918_v54 = vunpack.c.l.b16 %v317_v27  ;;  %3783 = vmatpush.bf16.msra.mxu0 %v3774_v37  ;;  %v1736_v56 = vsel %vm5588_vm7, %v4437_v11, %v1735_v45  ;;  %v4713_v27 = vld [vmem:[%s7136_s0] sm:$0xff]  ;;  %v4757_v11 = vld [vmem:[%s7136_s0 + $0x10] sm:$0xf]  ;;  %v4438_v37 = vrot.slane %v4758_v32, 9 }
  0xa0   :  { %7241 = vst [vmem:[#allocation27_spill] sm:$0xff] %v5602_v41  ;;  %4276 = vmatmul.msk.bf16.gmra.mxu3 %vm1000_vm3, %v5602_v41  ;;  %v327_v44 = vsel %vm4969_vm4, %v322_v35, %v326_v0  ;;  %v1739_v2 = vsel %vm5588_vm7, %v1737_v1, %v1738_v20  ;;  %v1957_v5 = vunpack.c.l.b16 %v1736_v56  ;;  %v1742_v45 = vrot.slane %v4757_v11, 5 }
  0xa1   :  { %v5600_v6 = vpop.f32.mrf.mxu1  ;;  %v919_v38 = vunpack.c.l.b16 %v327_v44  ;;  %v1958_v18 = vunpack.c.l.b16 %v1739_v2  ;;  %v4759_v44 = vld [vmem:[%s7136_s0 + $0x14] sm:$0x1] }
  0xa2   :  { %v1744_v1 = vrot.slane %v1742_v45, 4  ;;  %v1745_v56 = vrot.slane %v4759_v44, 5 }
  0xa3   :  { %v5613_v33 = vpop.f32.mrf.mxu0  ;;  %v5620_v14 = vpop.f32.mrf.mxu3  ;;  %v5622_v4 = vpack.c.b16 %v919_v38, %v918_v54  ;;  %v2021_v20 = vpack.c.b16 %v1958_v18, %v1957_v5  ;;  %v4714_v54 = vld [vmem:[%s7136_s0 + $0xc] sm:$0xff] }
  0xa4   :  { %7242 = vst [vmem:[#allocation28_spill] sm:$0xff] %v5620_v14  ;;  %v1746_v5 = vsel %vm5588_vm7, %v1744_v1, %v1745_v56 }
  0xa5   :  { %7243 = vst [vmem:[#allocation29_spill] sm:$0xff] %v5622_v4  ;;  %4252 = vmatmul.msk.bf16.gmra.mxu0 %vm1000_vm3, %v5622_v4  ;;  %v1960_v11 = vunpack.c.l.b16 %v1746_v5 }
  0xa6   :  { %4405 = vmatmul.msk.bf16.vlgmr.msrb.gmra.mxu1 %vm1000_vm3, %v4713_v27  ;;  %v1743_v27 = vsel %vm5588_vm7, %v4438_v37, %v1742_v45  ;;  %v4760_v45 = vld [vmem:[%s7136_s0 + $0x1c] sm:$0xf] }
  0xa7   :  { %v1749_v37 = vrot.slane %v4760_v45, 5 }
  0xa9   :  { %v5626_v35 = vpop.f32.mrf.mxu1  ;;  %v1751_v5 = vrot.slane %v1749_v37, 4 }
  0xab   :  { %v5629_v0 = vpop.f32.mrf.mxu2  ;;  %4469 = vmatmul.msk.bf16.vlgmr.msrb.gmra.mxu2 %vm1000_vm3, %v2021_v20  ;;  %v1959_v20 = vunpack.c.l.b16 %v1743_v27 }
  0xac   :  { %7244 = vst [vmem:[#allocation30_spill] sm:$0xff] %v5629_v0 }
  0xaf   :  { %v5634_v61 = vpop.f32.mrf.mxu0 }
  0xb0   :  { %4509 = vmatmul.msk.bf16.vlgmr.msrb.gmra.mxu3 %vm1000_vm3, %v4714_v54 }
  0xb1   :  { %v5646_v38 = vpop.f32.mrf.mxu3 }
  0xb2   :  { %7245 = vst [vmem:[#allocation31_spill] sm:$0xff] %v5646_v38  ;;  %v5664_v38 = vpack.c.b16 %v1960_v11, %v1959_v20  ;;  %v4762_v20 = vld [vmem:[%s7136_s0 + $0x20] sm:$0x1] }
  0xb3   :  { %v5655_v18 = vpop.f32.mrf.mxu2  ;;  %v1752_v11 = vrot.slane %v4762_v20, 5 }
  0xb4   :  { %v5648_v2 = vpop.f32.mrf.mxu1  ;;  %7246 = vst [vmem:[#allocation32_spill] sm:$0xff] %v5655_v18 }
  0xb5   :  { %4541 = vmatmul.msk.bf16.vlgmr.msrb.gmra.mxu0 %vm1000_vm3, %v5112_v25  ;;  %7248 = vst [vmem:[#allocation34_spill] sm:$0xff] %v5664_v38  ;;  %v4715_v25 = vld [vmem:[%s7136_s0 + $0x18] sm:$0xff] }
  0xb6   :  { %4406 = vmatmul.msk.bf16.gmra.mxu1 %vm1000_vm3, %v4714_v54  ;;  %v4761_v54 = vld [vmem:[%s7136_s0 + $0x18] sm:$0xf] }
  0xb7   :  { %v5657_v32 = vpop.f32.mrf.mxu0  ;;  %v4439_v27 = vrot.slane %v4761_v54, 9 }
  0xb9   :  { %v5661_v44 = vpop.f32.mrf.mxu3  ;;  %v1750_v14 = vsel %vm5588_vm7, %v4439_v27, %v1749_v37  ;;  %v1756_v37 = vrot.slane %v5207_v29, 5 }
  0xba   :  { %7247 = vst [vmem:[#allocation33_spill] sm:$0xff] %v5661_v44  ;;  %v1961_v41 = vunpack.c.l.b16 %v1750_v14  ;;  %v4716_v14 = vld [vmem:[%s7136_s0 + $0x24] sm:$0xff] }
  0xbb   :  { %4470 = vmatmul.msk.bf16.gmra.mxu2 %vm1000_vm3, %v5664_v38  ;;  %v1753_v38 = vsel %vm5588_vm7, %v1751_v5, %v1752_v11  ;;  %v1758_v5 = vrot.slane %v1756_v37, 4 }
  0xbc   :  { %v5669_v1 = vpop.f32.mrf.mxu1  ;;  %v1962_v54 = vunpack.c.l.b16 %v1753_v38  ;;  %v4440_v38 = vrot.slane %v5200_v21, 9 }
  0xbe   :  { %v5700_v20 = vpack.c.b16 %v1962_v54, %v1961_v41  ;;  %v1757_v29 = vsel %vm5588_vm7, %v4440_v38, %v1756_v37  ;;  %v1763_v37 = vrot.slane %v5288_v15, 5  ;;  %v1766_v38 = vrot.slane %v5293_v19, 5 }
  0xbf   :  { %v5671_v56 = vpop.f32.mrf.mxu2 }
  0xc0   :  { %7249 = vst [vmem:[#allocation35_spill] sm:$0xff] %v5671_v56  ;;  %4510 = vmatmul.msk.bf16.gmra.mxu3 %vm1000_vm3, %v4715_v25 }
  0xc1   :  { %7252 = vst [vmem:[#allocation38_spill] sm:$0xff] %v5700_v20 }
  0xc2   :  { %v5684_v45 = vpop.f32.mrf.mxu0 }
  0xc3   :  { %v5686_v44 = vpop.f32.mrf.mxu3 }
  0xc4   :  { %7250 = vst [vmem:[#allocation36_spill] sm:$0xff] %v5686_v44 }
  0xc5   :  { %4542 = vmatmul.msk.bf16.gmra.mxu0 %vm1000_vm3, %v5183_v62 }
  0xc6   :  { %4407 = vmatmul.msk.bf16.gmra.mxu1 %vm1000_vm3, %v4715_v25  ;;  %v1759_v25 = vrot.slane %v5214_v34, 5 }
  0xc7   :  { %v5693_v56 = vpop.f32.mrf.mxu1  ;;  %v5695_v18 = vpop.f32.mrf.mxu2 }
  0xc8   :  { %7251 = vst [vmem:[#allocation37_spill] sm:$0xff] %v5695_v18  ;;  %v1760_v54 = vsel %vm5588_vm7, %v1758_v5, %v1759_v25  ;;  %v4717_v5 = vld [vmem:[%s7136_s0 + $0x30] sm:$0xff] }
  0xc9   :  { %v1964_v62 = vunpack.c.l.b16 %v1760_v54 }
  0xca   :  { %v5702_v44 = vpop.f32.mrf.mxu0 }
  0xcb   :  { %v5705_v27 = vpop.f32.mrf.mxu3  ;;  %4471 = vmatmul.msk.bf16.gmra.mxu2 %vm1000_vm3, %v5700_v20  ;;  %v1963_v20 = vunpack.c.l.b16 %v1757_v29 }
  0xcc   :  { %7253 = vst [vmem:[#allocation39_spill] sm:$0xff] %v5705_v27 }
  0xcd   :  { %v5730_v34 = vpack.c.b16 %v1964_v62, %v1963_v20  ;;  %v4441_v62 = vrot.slane %v5279_v8, 9  ;;  %v1765_v20 = vrot.slane %v1763_v37, 4 }
  0xcf   :  { %v5714_v41 = vpop.f32.mrf.mxu1  ;;  %7256 = vst [vmem:[#allocation42_spill] sm:$0xff] %v5730_v34  ;;  %v1764_v15 = vsel %vm5588_vm7, %v4441_v62, %v1763_v37  ;;  %v1767_v29 = vsel %vm5588_vm7, %v1765_v20, %v1766_v38  ;;  %v1770_v37 = vrot.slane %v5367_v26, 5  ;;  %v1773_v62 = vrot.slane %v5372_v31, 5  ;;  %v4718_v20 = vld [vmem:[%s7136_s0 + $0x3c] sm:$0xff] }
  0xd0   :  { %4511 = vmatmul.msk.bf16.gmra.mxu3 %vm1000_vm3, %v4716_v14 }
  0xd2   :  { %v5716_v11 = vpop.f32.mrf.mxu2 }
  0xd3   :  { %7254 = vst [vmem:[#allocation40_spill] sm:$0xff] %v5716_v11 }
  0xd5   :  { %v5723_v27 = vpop.f32.mrf.mxu0  ;;  %4543 = vmatmul.msk.bf16.gmra.mxu0 %vm1000_vm3, %v5262_v46 }
  0xd6   :  { %4408 = vmatmul.msk.bf16.gmra.mxu1 %vm1000_vm3, %v4716_v14 }
  0xd7   :  { %v5725_v21 = vpop.f32.mrf.mxu3 }
  0xd8   :  { %7255 = vst [vmem:[#allocation41_spill] sm:$0xff] %v5725_v21  ;;  %v1965_v21 = vunpack.c.l.b16 %v1764_v15 }
  0xda   :  { %v5732_v11 = vpop.f32.mrf.mxu1  ;;  %v5734_v18 = vpop.f32.mrf.mxu2 }
  0xdb   :  { %7257 = vst [vmem:[#allocation43_spill] sm:$0xff] %v5734_v18  ;;  %4472 = vmatmul.msk.bf16.gmra.mxu2 %vm1000_vm3, %v5730_v34  ;;  %v1966_v34 = vunpack.c.l.b16 %v1767_v29 }
  0xdd   :  { %v5743_v25 = vpop.f32.mrf.mxu0 }
  0xdf   :  { %v5746_v14 = vpop.f32.mrf.mxu3 }
  0xe0   :  { %7258 = vst [vmem:[#allocation44_spill] sm:$0xff] %v5746_v14  ;;  %4512 = vmatmul.msk.bf16.gmra.mxu3 %vm1000_vm3, %v4717_v5  ;;  %v5762_v14 = vpack.c.b16 %v1966_v34, %v1965_v21  ;;  %v4442_v21 = vrot.slane %v5358_v13, 9  ;;  %v1772_v34 = vrot.slane %v1770_v37, 4 }
  0xe2   :  { %v5753_v19 = vpop.f32.mrf.mxu1  ;;  %7260 = vst [vmem:[#allocation46_spill] sm:$0xff] %v5762_v14  ;;  %v1771_v26 = vsel %vm5588_vm7, %v4442_v21, %v1770_v37  ;;  %v1774_v29 = vsel %vm5588_vm7, %v1772_v34, %v1773_v62  ;;  %v1777_v37 = vrot.slane %v5446_v58, 5  ;;  %v1780_v34 = vrot.slane %v5451_v63, 5 }
  0xe5   :  { %v5755_v54 = vpop.f32.mrf.mxu2  ;;  %4544 = vmatmul.msk.bf16.gmra.mxu0 %vm1000_vm3, %v5341_v47 }
  0xe6   :  { %7259 = vst [vmem:[#allocation45_spill] sm:$0xff] %v5755_v54  ;;  %4409 = vmatmul.msk.bf16.gmra.mxu1 %vm1000_vm3, %v4717_v5 }
  0xe8   :  { %v5759_v8 = vpop.f32.mrf.mxu0 }
  0xe9   :  { %v5764_v46 = vpop.f32.mrf.mxu3 }
  0xea   :  { %7261 = vst [vmem:[#allocation47_spill] sm:$0xff] %v5764_v46  ;;  %v1967_v46 = vunpack.c.l.b16 %v1771_v26  ;;  %v4719_v26 = vld [vmem:[%s7136_s0 + $0x48] sm:$0xff] }
  0xeb   :  { %4473 = vmatmul.msk.bf16.gmra.mxu2 %vm1000_vm3, %v5762_v14  ;;  %v1968_v14 = vunpack.c.l.b16 %v1774_v29  ;;  %v1779_v29 = vrot.slane %v1777_v37, 4 }
  0xed   :  { %v5769_v38 = vpop.f32.mrf.mxu1  ;;  %v5775_v15 = vpop.f32.mrf.mxu2 }
  0xee   :  { %7262 = vst [vmem:[#allocation48_spill] sm:$0xff] %v5775_v15  ;;  %v5794_v15 = vpack.c.b16 %v1968_v14, %v1967_v46 }
  0xf0   :  { %4513 = vmatmul.msk.bf16.gmra.mxu3 %vm1000_vm3, %v4718_v20  ;;  %v5779_v5 = vpop.f32.mrf.mxu0  ;;  %7265 = vst [vmem:[#allocation51_spill] sm:$0xff] %v5794_v15 }
  0xf1   :  { %v5785_v31 = vpop.f32.mrf.mxu3 }
  0xf2   :  { %7263 = vst [vmem:[#allocation49_spill] sm:$0xff] %v5785_v31 }
  0xf5   :  { %4545 = vmatmul.msk.bf16.gmra.mxu0 %vm1000_vm3, %v5420_v3  ;;  %v5789_v47 = vpop.f32.mrf.mxu1 }
  0xf6   :  { %4410 = vmatmul.msk.bf16.gmra.mxu1 %vm1000_vm3, %v4718_v20  ;;  %v4443_v20 = vrot.slane %v5437_v52, 9 }
  0xf8   :  { %v5792_v13 = vpop.f32.mrf.mxu2  ;;  %v1778_v14 = vsel %vm5588_vm7, %v4443_v20, %v1777_v37  ;;  %v4444_v20 = vrot.slane %v5529_v55, 9 }
  0xf9   :  { %7264 = vst [vmem:[#allocation50_spill] sm:$0xff] %v5792_v13  ;;  %v1969_v63 = vunpack.c.l.b16 %v1778_v14 }
  0xfb   :  { %v5797_v21 = vpop.f32.mrf.mxu0  ;;  %4474 = vmatmul.msk.bf16.gmra.mxu2 %vm1000_vm3, %v5794_v15 }
  0xfd   :  { %v5801_v62 = vpop.f32.mrf.mxu3 }
  0xfe   :  { %7266 = vst [vmem:[#allocation52_spill] sm:$0xff] %v5801_v62  ;;  %v1781_v62 = vsel %vm5588_vm7, %v1779_v29, %v1780_v34  ;;  %v4720_v34 = vld [vmem:[%s7136_s0 + $0x54] sm:$0xff] }
  0xff   :  { %v1970_v31 = vunpack.c.l.b16 %v1781_v62  ;;  %v1787_v62 = vrot.slane %v5543_v30, 5 }
 0x100   :  { %v5808_v46 = vpop.f32.mrf.mxu1  ;;  %4514 = vmatmul.msk.bf16.gmra.mxu3 %vm1000_vm3, %v4719_v26  ;;  %v5811_v58 = vpop.f32.mrf.mxu2 }
 0x101   :  { %7267 = vst [vmem:[#allocation53_spill] sm:$0xff] %v5811_v58  ;;  %v5824_v3 = vpack.c.b16 %v1970_v31, %v1969_v63  ;;  %v1784_v58 = vrot.slane %v5538_v12, 5 }
 0x103   :  { %v5817_v15 = vpop.f32.mrf.mxu0  ;;  %7269 = vst [vmem:[#allocation55_spill] sm:$0xff] %v5824_v3  ;;  %v1785_v12 = vsel %vm5588_vm7, %v4444_v20, %v1784_v58 }
 0x104   :  { %v1971_v63 = vunpack.c.l.b16 %v1785_v12  ;;  %v4721_v12 = vld [vmem:[%s7136_s0 + $0x60] sm:$0xff] }
 0x105   :  { %4546 = vmatmul.msk.bf16.gmra.mxu0 %vm1000_vm3, %v5512_v7  ;;  %v5821_v52 = vpop.f32.mrf.mxu3 }
 0x106   :  { %7268 = vst [vmem:[#allocation54_spill] sm:$0xff] %v5821_v52  ;;  %4411 = vmatmul.msk.bf16.gmra.mxu1 %vm1000_vm3, %v4719_v26  ;;  %v1786_v26 = vrot.slane %v1784_v58, 4  ;;  %v4763_v58 = vld [vmem:[%s7136_s0 + $0x64] sm:$0xf] }
 0x108   :  { %v5827_v13 = vpop.f32.mrf.mxu1  ;;  %v1788_v14 = vsel %vm5588_vm7, %v1786_v26, %v1787_v62  ;;  %v1791_v62 = vrot.slane %v4763_v58, 5 }
 0x109   :  { %7270 = vst [vmem:[#allocation56_spill] sm:$0xff] %v5827_v13  ;;  %v1972_v52 = vunpack.c.l.b16 %v1788_v14  ;;  %v4765_v14 = vld [vmem:[%s7136_s0 + $0x60] sm:$0xf] }
 0x10a   :  { %v1793_v58 = vrot.slane %v1791_v62, 4 }
 0x10b   :  { %v5829_v37 = vpop.f32.mrf.mxu2  ;;  %4475 = vmatmul.msk.bf16.gmra.mxu2 %vm1000_vm3, %v5824_v3  ;;  %v5854_v55 = vpack.c.b16 %v1972_v52, %v1971_v63  ;;  %v4445_v63 = vrot.slane %v4765_v14, 9 }
 0x10c   :  { %7271 = vst [vmem:[#allocation57_spill] sm:$0xff] %v5829_v37 }
 0x10d   :  { %7275 = vst [vmem:[#allocation61_spill] sm:$0xff] %v5854_v55 }
 0x10e   :  { %v5838_v31 = vpop.f32.mrf.mxu0 }
 0x10f   :  { %v5840_v29 = vpop.f32.mrf.mxu3 }
 0x110   :  { %7272 = vst [vmem:[#allocation58_spill] sm:$0xff] %v5840_v29  ;;  %4515 = vmatmul.msk.bf16.gmra.mxu3 %vm1000_vm3, %v4720_v34 }
 0x113   :  { %v5847_v30 = vpop.f32.mrf.mxu1  ;;  %v5849_v3 = vpop.f32.mrf.mxu2 }
 0x114   :  { %7273 = vst [vmem:[#allocation59_spill] sm:$0xff] %v5847_v30 }
 0x115   :  { %7274 = vst [vmem:[#allocation60_spill] sm:$0xff] %v5849_v3  ;;  %4547 = vmatmul.msk.bf16.gmra.mxu0 %vm1000_vm3, %v5622_v4 }
 0x116   :  { %4412 = vmatmul.msk.bf16.gmra.mxu1 %vm1000_vm3, %v4720_v34  ;;  %v5856_v29 = vpop.f32.mrf.mxu0  ;;  %v4764_v34 = vld [vmem:[%s7136_s0 + $0x68] sm:$0x1] }
 0x117   :  { %v5861_v20 = vpop.f32.mrf.mxu3  ;;  %v1794_v52 = vrot.slane %v4764_v34, 5 }
 0x118   :  { %7276 = vst [vmem:[#allocation62_spill] sm:$0xff] %v5861_v20 }
 0x119   :  { %v1795_v34 = vsel %vm5588_vm7, %v1793_v58, %v1794_v52 }
 0x11a   :  { %v1974_v54 = vunpack.c.l.b16 %v1795_v34  ;;  %v4767_v34 = vld [vmem:[%s7136_s0 + $0x74] sm:$0x1] }
 0x11b   :  { %4476 = vmatmul.msk.bf16.gmra.mxu2 %vm1000_vm3, %v5854_v55  ;;  %v5865_v26 = vpop.f32.mrf.mxu1  ;;  %v1792_v55 = vsel %vm5588_vm7, %v4445_v63, %v1791_v62  ;;  %v4766_v62 = vld [vmem:[%s7136_s0 + $0x70] sm:$0xf] }
 0x11c   :  { %7277 = vst [vmem:[#allocation63_spill] sm:$0xff] %v5865_v26  ;;  %v1973_v37 = vunpack.c.l.b16 %v1792_v55  ;;  %v1798_v52 = vrot.slane %v4766_v62, 5 }
 0x11e   :  { %v5876_v20 = vpop.f32.mrf.mxu2 }
 0x11f   :  { %7278 = vst [vmem:[#allocation64_spill] sm:$0xff] %v5876_v20  ;;  %v5892_v20 = vpack.c.b16 %v1974_v54, %v1973_v37  ;;  %v4722_v54 = vld [vmem:[%s7136_s0 + $0x6c] sm:$0xff] }
 0x120   :  { %4516 = vmatmul.msk.bf16.gmra.mxu3 %vm1000_vm3, %v4721_v12  ;;  %v4768_v37 = vld [vmem:[%s7136_s0 + $0x6c] sm:$0xf] }
 0x121   :  { %7281 = vst [vmem:[#allocation67_spill] sm:$0xff] %v5892_v20  ;;  %v4446_v62 = vrot.slane %v4768_v37, 9 }
 0x122   :  { %v5883_v4 = vpop.f32.mrf.mxu0 }
 0x123   :  { %v5885_v7 = vpop.f32.mrf.mxu3  ;;  %v1538_v3 = vpop.f32.mrf.mxu1 }
 0x124   :  { %7279 = vst [vmem:[#allocation65_spill] sm:$0xff] %v5885_v7  ;;  %v1800_v7 = vrot.slane %v1798_v52, 4 }
 0x125   :  { %4548 = vmatmul.msk.bf16.gmra.mxu0 %vm1000_vm3, %v4994_v57 }
 0x126   :  { %v5889_v14 = vpop.f32.mrf.mxu2  ;;  %4413 = vmatmul.msk.bf16.gmra.mxu1 %vm1000_vm3, %v4721_v12  ;;  %v1801_v12 = vrot.slane %v4767_v34, 5 }
 0x127   :  { %7280 = vst [vmem:[#allocation66_spill] sm:$0xff] %v5889_v14  ;;  %v1799_v14 = vsel %vm5588_vm7, %v4446_v62, %v1798_v52 }
 0x128   :  { %v1802_v34 = vsel %vm5588_vm7, %v1800_v7, %v1801_v12  ;;  %v1975_v26 = vunpack.c.l.b16 %v1799_v14  ;;  %v4769_v7 = vld [vmem:[%s7136_s0 + $0x7c] sm:$0xf] }
 0x129   :  { %v1976_v30 = vunpack.c.l.b16 %v1802_v34  ;;  %v1805_v14 = vrot.slane %v4769_v7, 5 }
 0x12a   :  { %v5897_v63 = vpop.f32.mrf.mxu0 }
 0x12b   :  { %v5899_v58 = vpop.f32.mrf.mxu3  ;;  %4477 = vmatmul.msk.bf16.gmra.mxu2 %vm1000_vm3, %v5892_v20  ;;  %v1540_v55 = vpop.f32.mrf.mxu1 }
 0x12c   :  { %7282 = vst [vmem:[#allocation68_spill] sm:$0xff] %v5899_v58  ;;  %v1539_v58 = vadd.f32 %v1538_v3, %v5555_v60  ;;  %v1541_v3 = vadd.f32 %v1540_v55, %v5613_v33  ;;  %v4770_v33 = vld [vmem:[%s7136_s0 + $0x80] sm:$0x1] }
 0x12e   :  { %v2161_v57 = vpop.f32.mrf.mxu2 }
 0x12f   :  { %v2321_v20 = vadd.f32 %v2161_v57, %v1539_v58  ;;  %v5924_v58 = vpack.c.b16 %v1976_v30, %v1975_v26  ;;  %v4723_v30 = vld [vmem:[%s7136_s0 + $0x78] sm:$0xff] }
 0x130   :  { %4517 = vmatmul.msk.bf16.gmra.mxu3 %vm1000_vm3, %v4722_v54  ;;  %v4771_v26 = vld [vmem:[%s7136_s0 + $0x78] sm:$0xf] }
 0x131   :  { %7284 = vst [vmem:[#allocation70_spill] sm:$0xff] %v5924_v58  ;;  %v4447_v55 = vrot.slane %v4771_v26, 9 }
 0x132   :  { %v2709_v18 = vpop.f32.mrf.mxu0 }
 0x133   :  { %v2413_v0 = vpop.f32.mrf.mxu3  ;;  %v1543_v59 = vpop.f32.mrf.mxu1 }
 0x134   :  { %v2573_v13 = vadd.f32 %v2413_v0, %v2321_v20  ;;  %v1544_v37 = vadd.f32 %v1543_v59, %v5634_v61 }
 0x135   :  { %4549 = vmatmul.msk.bf16.gmra.mxu0 %vm1000_vm3, %v5064_v22 }
 0x136   :  { %v2163_v57 = vpop.f32.mrf.mxu2  ;;  %4414 = vmatmul.msk.bf16.gmra.mxu1 %vm1000_vm3, %v4722_v54  ;;  %v5922_v60 = vadd.f32 %v2709_v18, %v2573_v13  ;;  %v1808_v18 = vrot.slane %v4770_v33, 5  ;;  %v1807_v54 = vrot.slane %v1805_v14, 4 }
 0x137   :  { %v2322_v52 = vadd.f32 %v2163_v57, %v1541_v3  ;;  %v1806_v57 = vsel %vm5588_vm7, %v4447_v55, %v1805_v14 }
 0x138   :  { %7283 = vst [vmem:[#allocation69_spill] sm:$0xff] %v5922_v60 }
 0x13a   :  { %v2711_v12 = vpop.f32.mrf.mxu0 }
 0x13b   :  { %v2415_v0 = vpop.f32.mrf.mxu3  ;;  %4478 = vmatmul.msk.bf16.gmra.mxu2 %vm1000_vm3, %v5924_v58  ;;  %v1545_v20 = vpop.f32.mrf.mxu1  ;;  %v1977_v58 = vunpack.c.l.b16 %v1806_v57 }
 0x13c   :  { %v2574_v13 = vadd.f32 %v2415_v0, %v2322_v52  ;;  %v1809_v52 = vsel %vm5588_vm7, %v1807_v54, %v1808_v18  ;;  %v1546_v59 = vadd.f32 %v1545_v20, %v5657_v32  ;;  %v4772_v18 = vld [vmem:[%s7136_s0 + $0x88] sm:$0xf]  ;;  %v4773_v32 = vld [vmem:[%s7136_s0 + $0x8c] sm:$0x1] }
 0x13d   :  { %v1978_v26 = vunpack.c.l.b16 %v1809_v52  ;;  %v1812_v55 = vrot.slane %v4772_v18, 5 }
 0x13e   :  { %v2166_v62 = vpop.f32.mrf.mxu2  ;;  %v5941_v34 = vadd.f32 %v2711_v12, %v2574_v13 }
 0x13f   :  { %v2323_v3 = vadd.f32 %v2166_v62, %v1544_v37  ;;  %v5954_v13 = vpack.c.b16 %v1978_v26, %v1977_v58  ;;  %v4724_v58 = vld [vmem:[%s7136_s0 + $0x84] sm:$0xff]  ;;  %v1814_v57 = vrot.slane %v1812_v55, 4 }
 0x140   :  { %4518 = vmatmul.msk.bf16.gmra.mxu3 %vm1000_vm3, %v4723_v30 }
 0x141   :  { %7285 = vst [vmem:[#allocation71_spill] sm:$0xff] %v5954_v13 }
 0x142   :  { %v2714_v7 = vpop.f32.mrf.mxu0 }
 0x143   :  { %v2418_v0 = vpop.f32.mrf.mxu3  ;;  %v1548_v33 = vpop.f32.mrf.mxu1 }
 0x144   :  { %v2575_v60 = vadd.f32 %v2418_v0, %v2323_v3  ;;  %v1549_v52 = vadd.f32 %v1548_v33, %v5684_v45 }
 0x145   :  { %4550 = vmatmul.msk.bf16.gmra.mxu0 %vm1000_vm3, %v5129_v49 }
 0x146   :  { %v2168_v61 = vpop.f32.mrf.mxu2  ;;  %4415 = vmatmul.msk.bf16.gmra.mxu1 %vm1000_vm3, %v4723_v30  ;;  %v5952_v12 = vadd.f32 %v2714_v7, %v2575_v60  ;;  %v1815_v60 = vrot.slane %v4773_v32, 5  ;;  %v4774_v30 = vld [vmem:[%s7136_s0 + $0x84] sm:$0xf] }
 0x147   :  { %v2324_v14 = vadd.f32 %v2168_v61, %v1546_v59  ;;  %v4448_v3 = vrot.slane %v4774_v30, 9 }
 0x148   :  { %v1816_v61 = vsel %vm5588_vm7, %v1814_v57, %v1815_v60  ;;  %v4775_v60 = vld [vmem:[%s7136_s0 + $0x94] sm:$0xf] }
 0x149   :  { %v1813_v59 = vsel %vm5588_vm7, %v4448_v3, %v1812_v55  ;;  %v1980_v30 = vunpack.c.l.b16 %v1816_v61  ;;  %v1819_v3 = vrot.slane %v4775_v60, 5 }
 0x14a   :  { %v2716_v54 = vpop.f32.mrf.mxu0  ;;  %v1979_v32 = vunpack.c.l.b16 %v1813_v59 }
 0x14b   :  { %v2420_v37 = vpop.f32.mrf.mxu3  ;;  %4479 = vmatmul.msk.bf16.gmra.mxu2 %vm1000_vm3, %v5954_v13  ;;  %v1550_v62 = vpop.f32.mrf.mxu1  ;;  %v1821_v61 = vrot.slane %v1819_v3, 4 }
 0x14c   :  { %v2576_v20 = vadd.f32 %v2420_v37, %v2324_v14  ;;  %v1551_v45 = vadd.f32 %v1550_v62, %v5702_v44  ;;  %v4776_v44 = vld [vmem:[%s7136_s0 + $0x98] sm:$0x1] }
 0x14e   :  { %v2171_v7 = vpop.f32.mrf.mxu2  ;;  %v5971_v0 = vadd.f32 %v2716_v54, %v2576_v20  ;;  %v5984_v20 = vpack.c.b16 %v1980_v30, %v1979_v32 }
 0x14f   :  { %v2325_v26 = vadd.f32 %v2171_v7, %v1549_v52 }
 0x150   :  { %4519 = vmatmul.msk.bf16.gmra.mxu3 %vm1000_vm3, %v4724_v58  ;;  %7286 = vst [vmem:[#allocation72_spill] sm:$0xff] %v5984_v20 }
 0x152   :  { %v2719_v14 = vpop.f32.mrf.mxu0 }
 0x153   :  { %v2423_v18 = vpop.f32.mrf.mxu3  ;;  %v1553_v37 = vpop.f32.mrf.mxu1 }
 0x154   :  { %v2577_v13 = vadd.f32 %v2423_v18, %v2325_v26  ;;  %v4777_v26 = vld [vmem:[%s7136_s0 + $0x90] sm:$0xf] }
 0x155   :  { %4551 = vmatmul.msk.bf16.gmra.mxu0 %vm1000_vm3, %v5202_v23  ;;  %v4449_v59 = vrot.slane %v4777_v26, 9 }
 0x156   :  { %v2173_v33 = vpop.f32.mrf.mxu2  ;;  %4416 = vmatmul.msk.bf16.gmra.mxu1 %vm1000_vm3, %v4724_v58  ;;  %v5982_v54 = vadd.f32 %v2719_v14, %v2577_v13  ;;  %v1822_v13 = vrot.slane %v4776_v44, 5  ;;  %v4725_v58 = vld [vmem:[%s7136_s0 + $0x90] sm:$0xff]  ;;  %v1554_v14 = vadd.f32 %v1553_v37, %v5723_v27 }
 0x157   :  { %v2326_v55 = vadd.f32 %v2173_v33, %v1551_v45  ;;  %v1820_v45 = vsel %vm5588_vm7, %v4449_v59, %v1819_v3 }
 0x158   :  { %v1823_v33 = vsel %vm5588_vm7, %v1821_v61, %v1822_v13  ;;  %v1981_v44 = vunpack.c.l.b16 %v1820_v45  ;;  %v4778_v13 = vld [vmem:[%s7136_s0 + $0xa0] sm:$0xf] }
 0x159   :  { %v1982_v26 = vunpack.c.l.b16 %v1823_v33  ;;  %v1826_v59 = vrot.slane %v4778_v13, 5 }
 0x15a   :  { %v2721_v57 = vpop.f32.mrf.mxu0 }
 0x15b   :  { %v2425_v52 = vpop.f32.mrf.mxu3  ;;  %4480 = vmatmul.msk.bf16.gmra.mxu2 %vm1000_vm3, %v5984_v20  ;;  %v1555_v7 = vpop.f32.mrf.mxu1  ;;  %v1828_v33 = vrot.slane %v1826_v59, 4 }
 0x15c   :  { %v2578_v62 = vadd.f32 %v2425_v52, %v2326_v55  ;;  %v1556_v27 = vadd.f32 %v1555_v7, %v5743_v25  ;;  %v4779_v25 = vld [vmem:[%s7136_s0 + $0xa4] sm:$0x1] }
 0x15e   :  { %v2176_v18 = vpop.f32.mrf.mxu2  ;;  %v6001_v32 = vadd.f32 %v2721_v57, %v2578_v62  ;;  %v6014_v62 = vpack.c.b16 %v1982_v26, %v1981_v44 }
 0x15f   :  { %v2327_v30 = vadd.f32 %v2176_v18, %v1554_v14 }
 0x160   :  { %4520 = vmatmul.msk.bf16.gmra.mxu3 %vm1000_vm3, %v4725_v58  ;;  %7287 = vst [vmem:[#allocation73_spill] sm:$0xff] %v6014_v62 }
 0x162   :  { %v2724_v55 = vpop.f32.mrf.mxu0 }
 0x163   :  { %v2428_v60 = vpop.f32.mrf.mxu3  ;;  %v1558_v52 = vpop.f32.mrf.mxu1 }
 0x164   :  { %v2579_v20 = vadd.f32 %v2428_v60, %v2327_v30  ;;  %v4780_v30 = vld [vmem:[%s7136_s0 + $0x9c] sm:$0xf] }
 0x165   :  { %4552 = vmatmul.msk.bf16.gmra.mxu0 %vm1000_vm3, %v5281_v9  ;;  %v4450_v45 = vrot.slane %v4780_v30, 9 }
 0x166   :  { %v2178_v37 = vpop.f32.mrf.mxu2  ;;  %4417 = vmatmul.msk.bf16.gmra.mxu1 %vm1000_vm3, %v4725_v58  ;;  %v6012_v57 = vadd.f32 %v2724_v55, %v2579_v20  ;;  %v1829_v20 = vrot.slane %v4779_v25, 5  ;;  %v4726_v58 = vld [vmem:[%s7136_s0 + $0x9c] sm:$0xff]  ;;  %v1559_v55 = vadd.f32 %v1558_v52, %v5759_v8 }
 0x167   :  { %v2328_v3 = vadd.f32 %v2178_v37, %v1556_v27  ;;  %v1827_v27 = vsel %vm5588_vm7, %v4450_v45, %v1826_v59 }
 0x168   :  { %v1830_v37 = vsel %vm5588_vm7, %v1828_v33, %v1829_v20  ;;  %v1983_v25 = vunpack.c.l.b16 %v1827_v27  ;;  %v4781_v20 = vld [vmem:[%s7136_s0 + $0xac] sm:$0xf] }
 0x169   :  { %v1984_v30 = vunpack.c.l.b16 %v1830_v37  ;;  %v1833_v45 = vrot.slane %v4781_v20, 5 }
 0x16a   :  { %v2726_v61 = vpop.f32.mrf.mxu0 }
 0x16b   :  { %v2430_v14 = vpop.f32.mrf.mxu3  ;;  %4481 = vmatmul.msk.bf16.gmra.mxu2 %vm1000_vm3, %v6014_v62  ;;  %v1560_v18 = vpop.f32.mrf.mxu1  ;;  %v1835_v37 = vrot.slane %v1833_v45, 4 }
 0x16c   :  { %v2580_v7 = vadd.f32 %v2430_v14, %v2328_v3  ;;  %v1561_v8 = vadd.f32 %v1560_v18, %v5779_v5  ;;  %v4782_v5 = vld [vmem:[%s7136_s0 + $0xb0] sm:$0x1] }
 0x16e   :  { %v2181_v60 = vpop.f32.mrf.mxu2  ;;  %v6031_v44 = vadd.f32 %v2726_v61, %v2580_v7  ;;  %v6044_v7 = vpack.c.b16 %v1984_v30, %v1983_v25 }
 0x16f   :  { %v2329_v26 = vadd.f32 %v2181_v60, %v1559_v55 }
 0x170   :  { %4521 = vmatmul.msk.bf16.gmra.mxu3 %vm1000_vm3, %v4726_v58  ;;  %7288 = vst [vmem:[#allocation74_spill] sm:$0xff] %v6044_v7 }
 0x172   :  { %v2729_v3 = vpop.f32.mrf.mxu0 }
 0x173   :  { %v2433_v13 = vpop.f32.mrf.mxu3  ;;  %v1563_v14 = vpop.f32.mrf.mxu1 }
 0x174   :  { %v2581_v62 = vadd.f32 %v2433_v13, %v2329_v26  ;;  %v4783_v26 = vld [vmem:[%s7136_s0 + $0xa8] sm:$0xf] }
 0x175   :  { %4553 = vmatmul.msk.bf16.gmra.mxu0 %vm1000_vm3, %v5360_v16  ;;  %v4451_v27 = vrot.slane %v4783_v26, 9 }
 0x176   :  { %v2183_v52 = vpop.f32.mrf.mxu2  ;;  %4418 = vmatmul.msk.bf16.gmra.mxu1 %vm1000_vm3, %v4726_v58  ;;  %v6042_v61 = vadd.f32 %v2729_v3, %v2581_v62  ;;  %v1836_v62 = vrot.slane %v4782_v5, 5  ;;  %v4727_v58 = vld [vmem:[%s7136_s0 + $0xa8] sm:$0xff]  ;;  %v1564_v3 = vadd.f32 %v1563_v14, %v5797_v21 }
 0x177   :  { %v2330_v59 = vadd.f32 %v2183_v52, %v1561_v8  ;;  %v1834_v8 = vsel %vm5588_vm7, %v4451_v27, %v1833_v45  ;;  %v64_v45 = vld [vmem:[%s7136_s0 + $0xc0] sm:$0xf]  ;;  %v65_v27 = vld [vmem:[%s7136_s0 + $0xc4] sm:$0xf] }
 0x178   :  { %v1837_v52 = vsel %vm5588_vm7, %v1835_v37, %v1836_v62  ;;  %v1985_v5 = vunpack.c.l.b16 %v1834_v8  ;;  %v1840_v37 = vrot.slane %v5474_v40, 5  ;;  %v1843_v8 = vrot.slane %v5479_v48, 5  ;;  %v66_v48 = vld [vmem:[%s7136_s0 + $0xc8] sm:$0x1] }
 0x179   :  { %v1986_v26 = vunpack.c.l.b16 %v1837_v52 }
 0x17a   :  { %v2731_v33 = vpop.f32.mrf.mxu0  ;;  %v1842_v40 = vrot.slane %v1840_v37, 4 }
 0x17b   :  { %v2435_v55 = vpop.f32.mrf.mxu3  ;;  %4482 = vmatmul.msk.bf16.gmra.mxu2 %vm1000_vm3, %v6044_v7  ;;  %v1565_v60 = vpop.f32.mrf.mxu1 }
 0x17c   :  { %v2582_v18 = vadd.f32 %v2435_v55, %v2330_v59  ;;  %v1566_v21 = vadd.f32 %v1565_v60, %v5817_v15  ;;  %v2641_v60 = vshll.u32 %v64_v45, 16 }
 0x17e   :  { %v2186_v13 = vpop.f32.mrf.mxu2  ;;  %v6061_v25 = vadd.f32 %v2731_v33, %v2582_v18  ;;  %v6077_v18 = vpack.c.b16 %v1986_v26, %v1985_v5 }
 0x17f   :  { %v2331_v30 = vadd.f32 %v2186_v13, %v1564_v3  ;;  %v2638_v3 = vshrl.u32 %v64_v45, 16  ;;  %v2647_v13 = vshll.u32 %v65_v27, 16 }
 0x180   :  { %4522 = vmatmul.msk.bf16.gmra.mxu3 %vm1000_vm3, %v4727_v58  ;;  %7290 = vst [vmem:[#allocation76_spill] sm:$0xff] %v6077_v18 }
 0x181   :  { %v2640_v26 = vrot.slane %v2638_v3, 4  ;;  %v2649_v45 = vrot.slane %v2647_v13, 5 }
 0x182   :  { %v2734_v59 = vpop.f32.mrf.mxu0 }
 0x183   :  { %v2438_v20 = vpop.f32.mrf.mxu3  ;;  %v1568_v55 = vpop.f32.mrf.mxu1 }
 0x184   :  { %v2583_v7 = vadd.f32 %v2438_v20, %v2331_v30  ;;  %v4452_v20 = vrot.slane %v5465_v28, 9  ;;  %v1569_v5 = vadd.f32 %v1568_v55, %v5838_v31  ;;  %v1844_v31 = vsel %vm5588_vm7, %v1842_v40, %v1843_v8 }
 0x185   :  { %4554 = vmatmul.msk.bf16.gmra.mxu0 %vm1000_vm3, %v5439_v53 }
 0x186   :  { %v2188_v14 = vpop.f32.mrf.mxu2  ;;  %4419 = vmatmul.msk.bf16.gmra.mxu1 %vm1000_vm3, %v4727_v58  ;;  %v6075_v33 = vadd.f32 %v2734_v59, %v2583_v7  ;;  %v2651_v58 = vshrl.u32 %v65_v27, 16  ;;  %v4728_v59 = vld [vmem:[%s7136_s0 + $0xb4] sm:$0xff]  ;;  %v1841_v28 = vsel %vm5588_vm7, %v4452_v20, %v1840_v37 }
 0x187   :  { %v2332_v62 = vadd.f32 %v2188_v14, %v1566_v21  ;;  %v2643_v14 = vrot.slane %v2641_v60, 5  ;;  %v2657_v60 = vshll.u32 %v66_v48, 16 }
 0x188   :  { %7289 = vst [vmem:[#allocation75_spill] sm:$0xff] %v6075_v33  ;;  %v2653_v27 = vrot.slane %v2651_v58, 4  ;;  %v1987_v58 = vunpack.c.l.b16 %v1841_v28 }
 0x189   :  { %v2659_v8 = vrot.slane %v2657_v60, 5 }
 0x18a   :  { %v2736_v15 = vpop.f32.mrf.mxu0  ;;  %v2654_v3 = vor.u32 %v2653_v27, %v2649_v45 }
 0x18b   :  { %v2440_v30 = vpop.f32.mrf.mxu3  ;;  %4483 = vmatmul.msk.bf16.gmra.mxu2 %vm1000_vm3, %v6077_v18  ;;  %v1570_v7 = vpop.f32.mrf.mxu1 }
 0x18c   :  { %v2584_v52 = vadd.f32 %v2440_v30, %v2332_v62  ;;  %v2644_v62 = vor.u32 %v2643_v14, %v2640_v26  ;;  %v1988_v30 = vunpack.c.l.b16 %v1844_v31  ;;  %v2655_v20 = vrot.slane %v2654_v3, 4  ;;  %v4785_v31 = vld [vmem:[%s7136_s0 + $0xe0] sm:$0x1] }
 0x18d   :  { %v4729_v3 = vld [vmem:[%s7136_s0 + $0xc0] sm:$0xff] }
 0x18e   :  { %v2191_v21 = vpop.f32.mrf.mxu2  ;;  %v6091_v33 = vadd.f32 %v2736_v15, %v2584_v52  ;;  %v2645_v37 = vrot.slane %v2644_v62, 4  ;;  %v6107_v14 = vpack.c.b16 %v1988_v30, %v1987_v58 }
 0x18f   :  { %v2333_v18 = vadd.f32 %v2191_v21, %v1569_v5  ;;  %v1571_v5 = vadd.f32 %v1570_v7, %v5856_v29  ;;  %v2660_v7 = vsel %vm4969_vm4, %v2655_v20, %v2659_v8 }
 0x190   :  { %4523 = vmatmul.msk.bf16.gmra.mxu3 %vm1000_vm3, %v4728_v59  ;;  %v2650_v29 = vsel %vm4969_vm4, %v2645_v37, %v2649_v45  ;;  %v4786_v45 = vld [vmem:[%s7136_s0 + $0xd8] sm:$0xf] }
 0x191   :  { %v4453_v60 = vrot.slane %v4786_v45, 9  ;;  %v2685_v30 = vunpack.c.l.b16 %v2650_v29  ;;  %v4787_v45 = vld [vmem:[%s7136_s0 + $0xe8] sm:$0xf] }
 0x192   :  { %v2739_v55 = vpop.f32.mrf.mxu0 }
 0x193   :  { %v2443_v13 = vpop.f32.mrf.mxu3  ;;  %v1573_v15 = vpop.f32.mrf.mxu1 }
 0x194   :  { %v2585_v52 = vadd.f32 %v2443_v13, %v2333_v18  ;;  %v4784_v18 = vld [vmem:[%s7136_s0 + $0xdc] sm:$0xf]  ;;  %v1574_v58 = vadd.f32 %v1573_v15, %v5883_v4 }
 0x195   :  { %4555 = vmatmul.msk.bf16.gmra.mxu0 %vm1000_vm3, %v5531_v17  ;;  %v1847_v27 = vrot.slane %v4784_v18, 5  ;;  %v4731_v4 = vld [vmem:[%s7136_s0 + $0xd8] sm:$0xff] }
 0x196   :  { %v2193_v21 = vpop.f32.mrf.mxu2  ;;  %4420 = vmatmul.msk.bf16.gmra.mxu1 %vm1000_vm3, %v4728_v59  ;;  %v6105_v40 = vadd.f32 %v2739_v55, %v2585_v52  ;;  %v1850_v55 = vrot.slane %v4785_v31, 5  ;;  %v2686_v52 = vunpack.c.l.b16 %v2660_v7 }
 0x197   :  { %v2334_v26 = vadd.f32 %v2193_v21, %v1571_v5  ;;  %v1849_v13 = vrot.slane %v1847_v27, 4  ;;  %v1848_v20 = vsel %vm5588_vm7, %v4453_v60, %v1847_v27  ;;  %v1854_v60 = vrot.slane %v4787_v45, 5 }
 0x199   :  { %v1851_v8 = vsel %vm5588_vm7, %v1849_v13, %v1850_v55 }
 0x19a   :  { %v2741_v48 = vpop.f32.mrf.mxu0  ;;  %v1990_v7 = vunpack.c.l.b16 %v1851_v8  ;;  %v1856_v8 = vrot.slane %v1854_v60, 4 }
 0x19b   :  { %v2445_v59 = vpop.f32.mrf.mxu3  ;;  %4484 = vmatmul.msk.bf16.gmra.mxu2 %vm1000_vm3, %v6107_v14  ;;  %v1575_v28 = vpop.f32.mrf.mxu1 }
 0x19c   :  { %v2586_v62 = vadd.f32 %v2445_v59, %v2334_v26  ;;  %v6135_v26 = vpack.c.b16 %v2686_v52, %v2685_v30  ;;  %v1576_v27 = vadd.f32 %v1575_v28, %v5897_v63  ;;  %v4788_v63 = vld [vmem:[%s7136_s0 + $0xec] sm:$0x1] }
 0x19d   :  { %v1857_v28 = vrot.slane %v4788_v63, 5 }
 0x19e   :  { %v2196_v5 = vpop.f32.mrf.mxu2  ;;  %v6128_v21 = vadd.f32 %v2741_v48, %v2586_v62  ;;  %v1989_v48 = vunpack.c.l.b16 %v1848_v20 }
 0x19f   :  { %v2335_v37 = vadd.f32 %v2196_v5, %v1574_v58  ;;  %v4732_v5 = vld [vmem:[%s7136_s0 + $0xe4] sm:$0xff] }
 0x1a0   :  { %4524 = vmatmul.msk.bf16.gmra.mxu3 %vm1000_vm3, %v4729_v3  ;;  %v2037_v3 = vpack.c.b16 %v1990_v7, %v1989_v48 }
 0x1a2   :  { %v2744_v18 = vpop.f32.mrf.mxu0 }
 0x1a3   :  { %v2448_v15 = vpop.f32.mrf.mxu3  ;;  %v1578_v29 = vpop.f32.mrf.mxu1 }
 0x1a4   :  { %v2587_v59 = vadd.f32 %v2448_v15, %v2335_v37  ;;  %v4789_v37 = vld [vmem:[%s7136_s0 + $0xe4] sm:$0xf] }
 0x1a5   :  { %4556 = vmatmul.msk.bf16.gmra.mxu0 %vm1000_vm3, %v6135_v26  ;;  %v4454_v20 = vrot.slane %v4789_v37, 9 }
 0x1a6   :  { %v2198_v31 = vpop.f32.mrf.mxu2  ;;  %4421 = vmatmul.msk.bf16.gmra.mxu1 %vm1000_vm3, %v4731_v4  ;;  %v6144_v55 = vadd.f32 %v2744_v18, %v2587_v59  ;;  %v1579_v18 = vadd.f32 %v1578_v29, %v5503_v50  ;;  %v1858_v59 = vsel %vm5588_vm7, %v1856_v8, %v1857_v28  ;;  %v4790_v28 = vld [vmem:[%s7136_s0 + $0xf4] sm:$0xf] }
 0x1a7   :  { %v2336_v62 = vadd.f32 %v2198_v31, %v1576_v27  ;;  %v1855_v7 = vsel %vm5588_vm7, %v4454_v20, %v1854_v60  ;;  %v1992_v45 = vunpack.c.l.b16 %v1858_v59  ;;  %v4733_v8 = vld [vmem:[%s7136_s0 + $0xf0] sm:$0xff] }
 0x1aa   :  { %v2746_v13 = vpop.f32.mrf.mxu0 }
 0x1ab   :  { %v2450_v58 = vpop.f32.mrf.mxu3  ;;  %4485 = vmatmul.msk.bf16.gmra.mxu2 %vm1000_vm3, %v2037_v3  ;;  %v1580_v30 = vpop.f32.mrf.mxu1  ;;  %v1991_v3 = vunpack.c.l.b16 %v1855_v7 }
 0x1ac   :  { %v2588_v52 = vadd.f32 %v2450_v58, %v2336_v62  ;;  %v1581_v50 = vadd.f32 %v1580_v30, %v5547_v36  ;;  %v4791_v36 = vld [vmem:[%s7136_s0 + $0xf8] sm:$0x1] }
 0x1ad   :  { %v6173_v63 = vpack.c.b16 %v1992_v45, %v1991_v3  ;;  %v1864_v30 = vrot.slane %v4791_v36, 5 }
 0x1ae   :  { %v2201_v4 = vpop.f32.mrf.mxu2  ;;  %v6160_v15 = vadd.f32 %v2746_v13, %v2588_v52  ;;  %v1861_v52 = vrot.slane %v4790_v28, 5 }
 0x1af   :  { %v2337_v48 = vadd.f32 %v2201_v4, %v1579_v18  ;;  %v4792_v18 = vld [vmem:[%s7136_s0 + $0xf0] sm:$0xf] }
 0x1b0   :  { %4525 = vmatmul.msk.bf16.gmra.mxu3 %vm1000_vm3, %v4732_v5  ;;  %v4455_v4 = vrot.slane %v4792_v18, 9 }
 0x1b2   :  { %v2749_v27 = vpop.f32.mrf.mxu0  ;;  %v1862_v3 = vsel %vm5588_vm7, %v4455_v4, %v1861_v52 }
 0x1b3   :  { %v2453_v31 = vpop.f32.mrf.mxu3  ;;  %v1583_v62 = vpop.f32.mrf.mxu1 }
 0x1b4   :  { %v2589_v58 = vadd.f32 %v2453_v31, %v2337_v48  ;;  %v1863_v48 = vrot.slane %v1861_v52, 4  ;;  %v1584_v7 = vadd.f32 %v1583_v62, %v5600_v6 }
 0x1b5   :  { %4557 = vmatmul.msk.bf16.gmra.mxu0 %vm1000_vm3, %v5081_v42 }
 0x1b6   :  { %v2203_v29 = vpop.f32.mrf.mxu2  ;;  %4422 = vmatmul.msk.bf16.gmra.mxu1 %vm1000_vm3, %v4732_v5  ;;  %v6171_v13 = vadd.f32 %v2749_v27, %v2589_v58  ;;  %v1865_v45 = vsel %vm5588_vm7, %v1863_v48, %v1864_v30  ;;  %v4793_v30 = vld [vmem:[%s7136_s0 + $0x100] sm:$0xf] }
 0x1b7   :  { %v2338_v60 = vadd.f32 %v2203_v29, %v1581_v50  ;;  %v1994_v28 = vunpack.c.l.b16 %v1865_v45 }
 0x1ba   :  { %v2751_v37 = vpop.f32.mrf.mxu0 }
 0x1bb   :  { %v2455_v20 = vpop.f32.mrf.mxu3  ;;  %4486 = vmatmul.msk.bf16.gmra.mxu2 %vm1000_vm3, %v6173_v63  ;;  %v1585_v42 = vpop.f32.mrf.mxu1 }
 0x1bc   :  { %v2590_v5 = vadd.f32 %v2455_v20, %v2338_v60  ;;  %v1993_v60 = vunpack.c.l.b16 %v1862_v3  ;;  %v1586_v6 = vadd.f32 %v1585_v42, %v5626_v35  ;;  %v4794_v35 = vld [vmem:[%s7136_s0 + $0x104] sm:$0x1] }
 0x1bd   :  { %v1871_v42 = vrot.slane %v4794_v35, 5 }
 0x1be   :  { %v2206_v59 = vpop.f32.mrf.mxu2  ;;  %v6190_v27 = vadd.f32 %v2751_v37, %v2590_v5  ;;  %v6203_v36 = vpack.c.b16 %v1994_v28, %v1993_v60  ;;  %v1868_v5 = vrot.slane %v4793_v30, 5 }
 0x1bf   :  { %v2339_v31 = vadd.f32 %v2206_v59, %v1584_v7  ;;  %v4734_v7 = vld [vmem:[%s7136_s0 + $0xfc] sm:$0xff] }
 0x1c0   :  { %4526 = vmatmul.msk.bf16.gmra.mxu3 %vm1000_vm3, %v4733_v8  ;;  %v4795_v59 = vld [vmem:[%s7136_s0 + $0xfc] sm:$0xf]  ;;  %v1870_v3 = vrot.slane %v1868_v5, 4 }
 0x1c2   :  { %v2754_v58 = vpop.f32.mrf.mxu0 }
 0x1c3   :  { %v2458_v50 = vpop.f32.mrf.mxu3  ;;  %v1588_v29 = vpop.f32.mrf.mxu1 }
 0x1c4   :  { %v2591_v20 = vadd.f32 %v2458_v50, %v2339_v31  ;;  %v4456_v31 = vrot.slane %v4795_v59, 9  ;;  %v1589_v45 = vadd.f32 %v1588_v29, %v5648_v2 }
 0x1c5   :  { %4558 = vmatmul.msk.bf16.gmra.mxu0 %vm1000_vm3, %v5149_v10 }
 0x1c6   :  { %v2208_v62 = vpop.f32.mrf.mxu2  ;;  %4423 = vmatmul.msk.bf16.gmra.mxu1 %vm1000_vm3, %v4733_v8  ;;  %v6201_v37 = vadd.f32 %v2754_v58, %v2591_v20  ;;  %v1869_v28 = vsel %vm5588_vm7, %v4456_v31, %v1868_v5  ;;  %v1872_v20 = vsel %vm5588_vm7, %v1870_v3, %v1871_v42  ;;  %v4796_v42 = vld [vmem:[%s7136_s0 + $0x10c] sm:$0xf] }
 0x1c7   :  { %v2340_v52 = vadd.f32 %v2208_v62, %v1586_v6  ;;  %v1995_v30 = vunpack.c.l.b16 %v1869_v28  ;;  %v1875_v59 = vrot.slane %v4796_v42, 5 }
 0x1ca   :  { %v2756_v18 = vpop.f32.mrf.mxu0 }
 0x1cb   :  { %v2460_v4 = vpop.f32.mrf.mxu3  ;;  %4487 = vmatmul.msk.bf16.gmra.mxu2 %vm1000_vm3, %v6203_v36  ;;  %v1590_v48 = vpop.f32.mrf.mxu1 }
 0x1cc   :  { %v2592_v8 = vadd.f32 %v2460_v4, %v2340_v52  ;;  %v1996_v4 = vunpack.c.l.b16 %v1872_v20  ;;  %v1591_v2 = vadd.f32 %v1590_v48, %v5669_v1  ;;  %v4797_v1 = vld [vmem:[%s7136_s0 + $0x110] sm:$0x1]  ;;  %v1877_v20 = vrot.slane %v1875_v59, 4 }
 0x1cd   :  { %v1878_v48 = vrot.slane %v4797_v1, 5 }
 0x1ce   :  { %v2211_v58 = vpop.f32.mrf.mxu2  ;;  %v6220_v50 = vadd.f32 %v2756_v18, %v2592_v8  ;;  %v6233_v8 = vpack.c.b16 %v1996_v4, %v1995_v30 }
 0x1cf   :  { %v2341_v60 = vadd.f32 %v2211_v58, %v1589_v45  ;;  %v4735_v58 = vld [vmem:[%s7136_s0 + $0x108] sm:$0xff] }
 0x1d0   :  { %4527 = vmatmul.msk.bf16.gmra.mxu3 %vm1000_vm3, %v4734_v7 }
 0x1d2   :  { %v2759_v6 = vpop.f32.mrf.mxu0 }
 0x1d3   :  { %v2463_v62 = vpop.f32.mrf.mxu3  ;;  %v1593_v52 = vpop.f32.mrf.mxu1 }
 0x1d4   :  { %v2593_v35 = vadd.f32 %v2463_v62, %v2341_v60  ;;  %v4798_v60 = vld [vmem:[%s7136_s0 + $0x108] sm:$0xf] }
 0x1d5   :  { %4559 = vmatmul.msk.bf16.gmra.mxu0 %vm1000_vm3, %v5228_v51  ;;  %v4457_v28 = vrot.slane %v4798_v60, 9 }
 0x1d6   :  { %v2213_v29 = vpop.f32.mrf.mxu2  ;;  %4424 = vmatmul.msk.bf16.gmra.mxu1 %vm1000_vm3, %v4734_v7  ;;  %v6231_v18 = vadd.f32 %v2759_v6, %v2593_v35  ;;  %v1594_v6 = vadd.f32 %v1593_v52, %v5693_v56 }
 0x1d7   :  { %v2342_v5 = vadd.f32 %v2213_v29, %v1591_v2  ;;  %v1876_v35 = vsel %vm5588_vm7, %v4457_v28, %v1875_v59  ;;  %v1879_v2 = vsel %vm5588_vm7, %v1877_v20, %v1878_v48  ;;  %v4799_v48 = vld [vmem:[%s7136_s0 + $0x118] sm:$0xf] }
 0x1d8   :  { %v1998_v1 = vunpack.c.l.b16 %v1879_v2  ;;  %v1882_v28 = vrot.slane %v4799_v48, 5 }
 0x1da   :  { %v2761_v31 = vpop.f32.mrf.mxu0 }
 0x1db   :  { %v2465_v3 = vpop.f32.mrf.mxu3  ;;  %4488 = vmatmul.msk.bf16.gmra.mxu2 %vm1000_vm3, %v6233_v8  ;;  %v1595_v45 = vpop.f32.mrf.mxu1 }
 0x1dc   :  { %v2594_v7 = vadd.f32 %v2465_v3, %v2342_v5  ;;  %v1997_v3 = vunpack.c.l.b16 %v1876_v35  ;;  %v1596_v56 = vadd.f32 %v1595_v45, %v5714_v41  ;;  %v4800_v41 = vld [vmem:[%s7136_s0 + $0x11c] sm:$0x1]  ;;  %v4801_v35 = vld [vmem:[%s7136_s0 + $0x114] sm:$0xf] }
 0x1dd   :  { %v1885_v45 = vrot.slane %v4800_v41, 5  ;;  %v4458_v2 = vrot.slane %v4801_v35, 9 }
 0x1de   :  { %v2216_v62 = vpop.f32.mrf.mxu2  ;;  %v6250_v30 = vadd.f32 %v2761_v31, %v2594_v7  ;;  %v6263_v7 = vpack.c.b16 %v1998_v1, %v1997_v3 }
 0x1df   :  { %v2343_v4 = vadd.f32 %v2216_v62, %v1594_v6 }
 0x1e0   :  { %4528 = vmatmul.msk.bf16.gmra.mxu3 %vm1000_vm3, %v4735_v58  ;;  %7292 = vst [vmem:[#allocation78_spill] sm:$0xff] %v6263_v7 }
 0x1e2   :  { %v2764_v29 = vpop.f32.mrf.mxu0 }
 0x1e3   :  { %v2468_v5 = vpop.f32.mrf.mxu3  ;;  %v1598_v42 = vpop.f32.mrf.mxu1 }
 0x1e4   :  { %v2595_v60 = vadd.f32 %v2468_v5, %v2343_v4  ;;  %v4736_v4 = vld [vmem:[%s7136_s0 + $0x114] sm:$0xff]  ;;  %v1599_v5 = vadd.f32 %v1598_v42, %v5732_v11 }
 0x1e5   :  { %4560 = vmatmul.msk.bf16.gmra.mxu0 %vm1000_vm3, %v5307_v43 }
 0x1e6   :  { %v2218_v52 = vpop.f32.mrf.mxu2  ;;  %4425 = vmatmul.msk.bf16.gmra.mxu1 %vm1000_vm3, %v4735_v58  ;;  %v6261_v31 = vadd.f32 %v2764_v29, %v2595_v60  ;;  %v1884_v29 = vrot.slane %v1882_v28, 4 }
 0x1e7   :  { %v2344_v59 = vadd.f32 %v2218_v52, %v1596_v56  ;;  %v1883_v56 = vsel %vm5588_vm7, %v4458_v2, %v1882_v28 }
 0x1e8   :  { %7291 = vst [vmem:[#allocation77_spill] sm:$0xff] %v6261_v31  ;;  %v1886_v52 = vsel %vm5588_vm7, %v1884_v29, %v1885_v45  ;;  %v1999_v41 = vunpack.c.l.b16 %v1883_v56  ;;  %v7294_v31 = vld [vmem:[#allocation17_spill] sm:$0xff]  ;;  %v4802_v45 = vld [vmem:[%s7136_s0 + $0x124] sm:$0xf] }
 0x1e9   :  { %v2000_v35 = vunpack.c.l.b16 %v1886_v52  ;;  %v1889_v2 = vrot.slane %v4802_v45, 5 }
 0x1ea   :  { %v2766_v20 = vpop.f32.mrf.mxu0 }
 0x1eb   :  { %v2470_v6 = vpop.f32.mrf.mxu3  ;;  %4489 = vmatmul.msk.bf16.gmra.mxu2 %vm1000_vm3, %v6263_v7  ;;  %v1600_v62 = vpop.f32.mrf.mxu1  ;;  %v1891_v52 = vrot.slane %v1889_v2, 4 }
 0x1ec   :  { %v2596_v58 = vadd.f32 %v2470_v6, %v2344_v59  ;;  %v1601_v11 = vadd.f32 %v1600_v62, %v5753_v19  ;;  %v4803_v19 = vld [vmem:[%s7136_s0 + $0x128] sm:$0x1] }
 0x1ee   :  { %v2221_v3 = vpop.f32.mrf.mxu2  ;;  %v6280_v1 = vadd.f32 %v2766_v20, %v2596_v58  ;;  %v6293_v58 = vpack.c.b16 %v2000_v35, %v1999_v41 }
 0x1ef   :  { %v2345_v60 = vadd.f32 %v2221_v3, %v1599_v5 }
 0x1f0   :  { %7293 = vst [vmem:[#allocation79_spill] sm:$0xff] %v6280_v1  ;;  %4529 = vmatmul.msk.bf16.gmra.mxu3 %vm1000_vm3, %v4736_v4 }
 0x1f1   :  { %7296 = vst [vmem:[#allocation81_spill] sm:$0xff] %v6293_v58 }
 0x1f2   :  { %v2769_v59 = vpop.f32.mrf.mxu0 }
 0x1f3   :  { %v2473_v48 = vpop.f32.mrf.mxu3  ;;  %v1603_v6 = vpop.f32.mrf.mxu1 }
 0x1f4   :  { %v2597_v7 = vadd.f32 %v2473_v48, %v2345_v60  ;;  %v4804_v60 = vld [vmem:[%s7136_s0 + $0x120] sm:$0xf] }
 0x1f5   :  { %4561 = vmatmul.msk.bf16.gmra.mxu0 %vm1000_vm3, %v7294_v31  ;;  %v4459_v56 = vrot.slane %v4804_v60, 9 }
 0x1f6   :  { %v2223_v42 = vpop.f32.mrf.mxu2  ;;  %4426 = vmatmul.msk.bf16.gmra.mxu1 %vm1000_vm3, %v4736_v4  ;;  %v6291_v20 = vadd.f32 %v2769_v59, %v2597_v7  ;;  %v1892_v7 = vrot.slane %v4803_v19, 5  ;;  %v4737_v4 = vld [vmem:[%s7136_s0 + $0x120] sm:$0xff]  ;;  %v1604_v59 = vadd.f32 %v1603_v6, %v5769_v38 }
 0x1f7   :  { %v2346_v28 = vadd.f32 %v2223_v42, %v1601_v11  ;;  %v1890_v11 = vsel %vm5588_vm7, %v4459_v56, %v1889_v2 }
 0x1f8   :  { %7295 = vst [vmem:[#allocation80_spill] sm:$0xff] %v6291_v20  ;;  %v1893_v42 = vsel %vm5588_vm7, %v1891_v52, %v1892_v7  ;;  %v2001_v19 = vunpack.c.l.b16 %v1890_v11  ;;  %v7298_v20 = vld [vmem:[#allocation20_spill] sm:$0xff]  ;;  %v4805_v7 = vld [vmem:[%s7136_s0 + $0x130] sm:$0xf] }
 0x1f9   :  { %v2002_v60 = vunpack.c.l.b16 %v1893_v42  ;;  %v1896_v56 = vrot.slane %v4805_v7, 5 }
 0x1fa   :  { %v2771_v29 = vpop.f32.mrf.mxu0 }
 0x1fb   :  { %v2475_v5 = vpop.f32.mrf.mxu3  ;;  %4490 = vmatmul.msk.bf16.gmra.mxu2 %vm1000_vm3, %v6293_v58  ;;  %v1605_v3 = vpop.f32.mrf.mxu1  ;;  %v1898_v42 = vrot.slane %v1896_v56, 4 }
 0x1fc   :  { %v2598_v62 = vadd.f32 %v2475_v5, %v2346_v28  ;;  %v1606_v38 = vadd.f32 %v1605_v3, %v5789_v47  ;;  %v4806_v47 = vld [vmem:[%s7136_s0 + $0x134] sm:$0x1] }
 0x1fe   :  { %v2226_v48 = vpop.f32.mrf.mxu2  ;;  %v6310_v41 = vadd.f32 %v2771_v29, %v2598_v62  ;;  %v6323_v62 = vpack.c.b16 %v2002_v60, %v2001_v19 }
 0x1ff   :  { %v2347_v35 = vadd.f32 %v2226_v48, %v1604_v59 }
 0x200   :  { %7297 = vst [vmem:[#allocation82_spill] sm:$0xff] %v6310_v41  ;;  %4530 = vmatmul.msk.bf16.gmra.mxu3 %vm1000_vm3, %v4737_v4 }
 0x201   :  { %7300 = vst [vmem:[#allocation84_spill] sm:$0xff] %v6323_v62 }
 0x202   :  { %v2774_v28 = vpop.f32.mrf.mxu0 }
 0x203   :  { %v2478_v45 = vpop.f32.mrf.mxu3  ;;  %v1608_v5 = vpop.f32.mrf.mxu1 }
 0x204   :  { %v2599_v58 = vadd.f32 %v2478_v45, %v2347_v35  ;;  %v4807_v35 = vld [vmem:[%s7136_s0 + $0x12c] sm:$0xf] }
 0x205   :  { %4562 = vmatmul.msk.bf16.gmra.mxu0 %vm1000_vm3, %v7298_v20  ;;  %v4460_v11 = vrot.slane %v4807_v35, 9 }
 0x206   :  { %v2228_v6 = vpop.f32.mrf.mxu2  ;;  %4427 = vmatmul.msk.bf16.gmra.mxu1 %vm1000_vm3, %v4737_v4  ;;  %v6321_v29 = vadd.f32 %v2774_v28, %v2599_v58  ;;  %v1899_v58 = vrot.slane %v4806_v47, 5  ;;  %v4738_v4 = vld [vmem:[%s7136_s0 + $0x12c] sm:$0xff]  ;;  %v1609_v28 = vadd.f32 %v1608_v5, %v5808_v46  ;;  %v7303_v46 = vld [vmem:[#allocation56_spill] sm:$0xff] }
 0x207   :  { %v2348_v2 = vadd.f32 %v2228_v6, %v1606_v38  ;;  %v1897_v38 = vsel %vm5588_vm7, %v4460_v11, %v1896_v56 }
 0x208   :  { %7299 = vst [vmem:[#allocation83_spill] sm:$0xff] %v6321_v29  ;;  %v1900_v6 = vsel %vm5588_vm7, %v1898_v42, %v1899_v58  ;;  %v2003_v47 = vunpack.c.l.b16 %v1897_v38  ;;  %v7302_v29 = vld [vmem:[#allocation25_spill] sm:$0xff]  ;;  %v4808_v58 = vld [vmem:[%s7136_s0 + $0x13c] sm:$0xf] }
 0x209   :  { %v2004_v35 = vunpack.c.l.b16 %v1900_v6  ;;  %v1903_v42 = vrot.slane %v4808_v58, 5  ;;  %v4739_v38 = vld [vmem:[%s7136_s0 + $0x138] sm:$0xff] }
 0x20a   :  { %v2776_v52 = vpop.f32.mrf.mxu0  ;;  %v4810_v6 = vld [vmem:[%s7136_s0 + $0x138] sm:$0xf] }
 0x20b   :  { %v2480_v59 = vpop.f32.mrf.mxu3  ;;  %4491 = vmatmul.msk.bf16.gmra.mxu2 %vm1000_vm3, %v6323_v62  ;;  %v1610_v48 = vpop.f32.mrf.mxu1  ;;  %v6353_v11 = vpack.c.b16 %v2004_v35, %v2003_v47  ;;  %v7306_v47 = vld [vmem:[#allocation59_spill] sm:$0xff] }
 0x20c   :  { %v2600_v3 = vadd.f32 %v2480_v59, %v2348_v2  ;;  %v1611_v5 = vadd.f32 %v1610_v48, %v7303_v46  ;;  %v4809_v48 = vld [vmem:[%s7136_s0 + $0x140] sm:$0x1] }
 0x20d   :  { %7305 = vst [vmem:[#allocation86_spill] sm:$0xff] %v6353_v11 }
 0x20e   :  { %v2231_v45 = vpop.f32.mrf.mxu2  ;;  %v6340_v19 = vadd.f32 %v2776_v52, %v2600_v3 }
 0x20f   :  { %v2349_v60 = vadd.f32 %v2231_v45, %v1609_v28 }
 0x210   :  { %7301 = vst [vmem:[#allocation85_spill] sm:$0xff] %v6340_v19  ;;  %4531 = vmatmul.msk.bf16.gmra.mxu3 %vm1000_vm3, %v4738_v4  ;;  %v7308_v19 = vld [vmem:[#allocation9_spill] sm:$0xff] }
 0x212   :  { %v2779_v2 = vpop.f32.mrf.mxu0 }
 0x213   :  { %v2483_v7 = vpop.f32.mrf.mxu3  ;;  %v1613_v59 = vpop.f32.mrf.mxu1 }
 0x214   :  { %v2601_v62 = vadd.f32 %v2483_v7, %v2349_v60  ;;  %v1905_v7 = vrot.slane %v1903_v42, 4  ;;  %v1614_v35 = vadd.f32 %v1613_v59, %v7306_v47  ;;  %v7309_v59 = vld [vmem:[#allocation63_spill] sm:$0xff] }
 0x215   :  { %4563 = vmatmul.msk.bf16.gmra.mxu0 %vm1000_vm3, %v7302_v29 }
 0x216   :  { %v2233_v52 = vpop.f32.mrf.mxu2  ;;  %4428 = vmatmul.msk.bf16.gmra.mxu1 %vm1000_vm3, %v4738_v4  ;;  %v6351_v3 = vadd.f32 %v2779_v2, %v2601_v62  ;;  %v1906_v62 = vrot.slane %v4809_v48, 5  ;;  %v4461_v2 = vrot.slane %v4810_v6, 9 }
 0x217   :  { %v2350_v56 = vadd.f32 %v2233_v52, %v1611_v5 }
 0x218   :  { %7304 = vst [vmem:[#allocation56_spill] sm:$0xff] %v6351_v3  ;;  %v1907_v58 = vsel %vm5588_vm7, %v1905_v7, %v1906_v62  ;;  %v4811_v62 = vld [vmem:[%s7136_s0 + $0x148] sm:$0xf] }
 0x219   :  { %v2006_v6 = vunpack.c.l.b16 %v1907_v58  ;;  %v1910_v7 = vrot.slane %v4811_v62, 5 }
 0x21a   :  { %v2781_v28 = vpop.f32.mrf.mxu0 }
 0x21b   :  { %v2485_v45 = vpop.f32.mrf.mxu3  ;;  %4492 = vmatmul.msk.bf16.gmra.mxu2 %vm1000_vm3, %v6353_v11  ;;  %v1615_v60 = vpop.f32.mrf.mxu1 }
 0x21c   :  { %v2602_v4 = vadd.f32 %v2485_v45, %v2350_v56  ;;  %v1904_v56 = vsel %vm5588_vm7, %v4461_v2, %v1903_v42 }
 0x21d   :  { %v2005_v3 = vunpack.c.l.b16 %v1904_v56  ;;  %v4813_v56 = vld [vmem:[%s7136_s0 + $0x144] sm:$0xf] }
 0x21e   :  { %v2236_v46 = vpop.f32.mrf.mxu2  ;;  %v6370_v5 = vadd.f32 %v2781_v28, %v2602_v4  ;;  %v1616_v28 = vadd.f32 %v1615_v60, %v7309_v59  ;;  %v4812_v60 = vld [vmem:[%s7136_s0 + $0x14c] sm:$0x1]  ;;  %v4462_v58 = vrot.slane %v4813_v56, 9 }
 0x21f   :  { %v2351_v52 = vadd.f32 %v2236_v46, %v1614_v35  ;;  %v6383_v2 = vpack.c.b16 %v2006_v6, %v2005_v3  ;;  %v4740_v3 = vld [vmem:[%s7136_s0 + $0x144] sm:$0xff] }
 0x220   :  { %7307 = vst [vmem:[#allocation59_spill] sm:$0xff] %v6370_v5  ;;  %4532 = vmatmul.msk.bf16.gmra.mxu3 %vm1000_vm3, %v4739_v38  ;;  %v7314_v5 = vld [vmem:[#allocation10_spill] sm:$0xff] }
 0x221   :  { %7311 = vst [vmem:[#allocation87_spill] sm:$0xff] %v6383_v2 }
 0x222   :  { %v2784_v45 = vpop.f32.mrf.mxu0 }
 0x223   :  { %v2488_v48 = vpop.f32.mrf.mxu3  ;;  %v1618_v11 = vpop.f32.mrf.mxu1 }
 0x224   :  { %v2603_v29 = vadd.f32 %v2488_v48, %v2351_v52  ;;  %v7312_v48 = vld [vmem:[#allocation23_spill] sm:$0xff] }
 0x225   :  { %4564 = vmatmul.msk.bf16.gmra.mxu0 %vm1000_vm3, %v7308_v19  ;;  %v1619_v6 = vadd.f32 %v1618_v11, %v7312_v48  ;;  %v7315_v11 = vld [vmem:[#allocation26_spill] sm:$0xff] }
 0x226   :  { %v2238_v4 = vpop.f32.mrf.mxu2  ;;  %4429 = vmatmul.msk.bf16.gmra.mxu1 %vm1000_vm3, %v4739_v38  ;;  %v6381_v47 = vadd.f32 %v2784_v45, %v2603_v29  ;;  %v1913_v29 = vrot.slane %v4812_v60, 5  ;;  %v1912_v45 = vrot.slane %v1910_v7, 4 }
 0x227   :  { %v2352_v42 = vadd.f32 %v2238_v4, %v1616_v28 }
 0x228   :  { %7310 = vst [vmem:[#allocation63_spill] sm:$0xff] %v6381_v47  ;;  %v1914_v62 = vsel %vm5588_vm7, %v1912_v45, %v1913_v29  ;;  %v4814_v29 = vld [vmem:[%s7136_s0 + $0x154] sm:$0xf] }
 0x229   :  { %v2008_v56 = vunpack.c.l.b16 %v1914_v62  ;;  %v1917_v45 = vrot.slane %v4814_v29, 5 }
 0x22a   :  { %v2786_v35 = vpop.f32.mrf.mxu0 }
 0x22b   :  { %v2490_v46 = vpop.f32.mrf.mxu3  ;;  %4493 = vmatmul.msk.bf16.gmra.mxu2 %vm1000_vm3, %v6383_v2  ;;  %v1620_v52 = vpop.f32.mrf.mxu1 }
 0x22c   :  { %v2604_v38 = vadd.f32 %v2490_v46, %v2352_v42  ;;  %v1911_v42 = vsel %vm5588_vm7, %v4462_v58, %v1910_v7 }
 0x22d   :  { %v2007_v47 = vunpack.c.l.b16 %v1911_v42  ;;  %v4816_v42 = vld [vmem:[%s7136_s0 + $0x150] sm:$0xf] }
 0x22e   :  { %v2241_v59 = vpop.f32.mrf.mxu2  ;;  %v6400_v28 = vadd.f32 %v2786_v35, %v2604_v38  ;;  %v1621_v35 = vadd.f32 %v1620_v52, %v7315_v11  ;;  %v4815_v52 = vld [vmem:[%s7136_s0 + $0x158] sm:$0x1]  ;;  %v4463_v62 = vrot.slane %v4816_v42, 9 }
 0x22f   :  { %v2353_v4 = vadd.f32 %v2241_v59, %v1619_v6  ;;  %v6413_v58 = vpack.c.b16 %v2008_v56, %v2007_v47  ;;  %v4741_v47 = vld [vmem:[%s7136_s0 + $0x150] sm:$0xff] }
 0x230   :  { %7313 = vst [vmem:[#allocation23_spill] sm:$0xff] %v6400_v28  ;;  %4533 = vmatmul.msk.bf16.gmra.mxu3 %vm1000_vm3, %v4740_v3  ;;  %v7320_v28 = vld [vmem:[#allocation11_spill] sm:$0xff] }
 0x231   :  { %7317 = vst [vmem:[#allocation88_spill] sm:$0xff] %v6413_v58 }
 0x232   :  { %v2789_v46 = vpop.f32.mrf.mxu0 }
 0x233   :  { %v2493_v60 = vpop.f32.mrf.mxu3  ;;  %v1623_v2 = vpop.f32.mrf.mxu1 }
 0x234   :  { %v2605_v19 = vadd.f32 %v2493_v60, %v2353_v4  ;;  %v7318_v60 = vld [vmem:[#allocation30_spill] sm:$0xff] }
 0x235   :  { %4565 = vmatmul.msk.bf16.gmra.mxu0 %vm1000_vm3, %v7314_v5  ;;  %v1624_v56 = vadd.f32 %v1623_v2, %v7318_v60  ;;  %v7321_v2 = vld [vmem:[#allocation32_spill] sm:$0xff] }
 0x236   :  { %v2243_v38 = vpop.f32.mrf.mxu2  ;;  %4430 = vmatmul.msk.bf16.gmra.mxu1 %vm1000_vm3, %v4740_v3  ;;  %v6411_v48 = vadd.f32 %v2789_v46, %v2605_v19  ;;  %v1920_v19 = vrot.slane %v4815_v52, 5  ;;  %v1919_v46 = vrot.slane %v1917_v45, 4 }
 0x237   :  { %v2354_v7 = vadd.f32 %v2243_v38, %v1621_v35 }
 0x238   :  { %7316 = vst [vmem:[#allocation26_spill] sm:$0xff] %v6411_v48  ;;  %v1921_v29 = vsel %vm5588_vm7, %v1919_v46, %v1920_v19  ;;  %v4817_v19 = vld [vmem:[%s7136_s0 + $0x160] sm:$0xf] }
 0x239   :  { %v2010_v42 = vunpack.c.l.b16 %v1921_v29  ;;  %v1924_v46 = vrot.slane %v4817_v19, 5 }
 0x23a   :  { %v2791_v6 = vpop.f32.mrf.mxu0 }
 0x23b   :  { %v2495_v59 = vpop.f32.mrf.mxu3  ;;  %4494 = vmatmul.msk.bf16.gmra.mxu2 %vm1000_vm3, %v6413_v58  ;;  %v1625_v4 = vpop.f32.mrf.mxu1 }
 0x23c   :  { %v2606_v3 = vadd.f32 %v2495_v59, %v2354_v7  ;;  %v1918_v7 = vsel %vm5588_vm7, %v4463_v62, %v1917_v45 }
 0x23d   :  { %v2009_v48 = vunpack.c.l.b16 %v1918_v7  ;;  %v4819_v7 = vld [vmem:[%s7136_s0 + $0x15c] sm:$0xf] }
 0x23e   :  { %v2246_v11 = vpop.f32.mrf.mxu2  ;;  %v6430_v35 = vadd.f32 %v2791_v6, %v2606_v3  ;;  %v1626_v6 = vadd.f32 %v1625_v4, %v7321_v2  ;;  %v4818_v4 = vld [vmem:[%s7136_s0 + $0x164] sm:$0x1]  ;;  %v4464_v29 = vrot.slane %v4819_v7, 9 }
 0x23f   :  { %v2355_v38 = vadd.f32 %v2246_v11, %v1624_v56  ;;  %v6443_v62 = vpack.c.b16 %v2010_v42, %v2009_v48  ;;  %v4742_v48 = vld [vmem:[%s7136_s0 + $0x15c] sm:$0xff] }
 0x240   :  { %7319 = vst [vmem:[#allocation30_spill] sm:$0xff] %v6430_v35  ;;  %4534 = vmatmul.msk.bf16.gmra.mxu3 %vm1000_vm3, %v4741_v47  ;;  %v7326_v35 = vld [vmem:[#allocation13_spill] sm:$0xff] }
 0x241   :  { %7323 = vst [vmem:[#allocation89_spill] sm:$0xff] %v6443_v62 }
 0x242   :  { %v2794_v59 = vpop.f32.mrf.mxu0 }
 0x243   :  { %v2498_v52 = vpop.f32.mrf.mxu3  ;;  %v1628_v58 = vpop.f32.mrf.mxu1 }
 0x244   :  { %v2607_v5 = vadd.f32 %v2498_v52, %v2355_v38  ;;  %v7324_v52 = vld [vmem:[#allocation35_spill] sm:$0xff] }
 0x245   :  { %4566 = vmatmul.msk.bf16.gmra.mxu0 %vm1000_vm3, %v7320_v28  ;;  %v1629_v42 = vadd.f32 %v1628_v58, %v7324_v52  ;;  %v7327_v58 = vld [vmem:[#allocation37_spill] sm:$0xff] }
 0x246   :  { %v2248_v3 = vpop.f32.mrf.mxu2  ;;  %4431 = vmatmul.msk.bf16.gmra.mxu1 %vm1000_vm3, %v4741_v47  ;;  %v6441_v60 = vadd.f32 %v2794_v59, %v2607_v5  ;;  %v1927_v5 = vrot.slane %v4818_v4, 5  ;;  %v1926_v59 = vrot.slane %v1924_v46, 4 }
 0x247   :  { %v2356_v45 = vadd.f32 %v2248_v3, %v1626_v6 }
 0x248   :  { %7322 = vst [vmem:[#allocation32_spill] sm:$0xff] %v6441_v60  ;;  %v1928_v19 = vsel %vm5588_vm7, %v1926_v59, %v1927_v5  ;;  %v4820_v5 = vld [vmem:[%s7136_s0 + $0x16c] sm:$0xf] }
 0x249   :  { %v2012_v7 = vunpack.c.l.b16 %v1928_v19  ;;  %v1931_v59 = vrot.slane %v4820_v5, 5 }
 0x24a   :  { %v2796_v56 = vpop.f32.mrf.mxu0 }
 0x24b   :  { %v2500_v11 = vpop.f32.mrf.mxu3  ;;  %4495 = vmatmul.msk.bf16.gmra.mxu2 %vm1000_vm3, %v6443_v62  ;;  %v1630_v38 = vpop.f32.mrf.mxu1 }
 0x24c   :  { %v2608_v47 = vadd.f32 %v2500_v11, %v2356_v45  ;;  %v1925_v45 = vsel %vm5588_vm7, %v4464_v29, %v1924_v46 }
 0x24d   :  { %v2011_v60 = vunpack.c.l.b16 %v1925_v45  ;;  %v4822_v45 = vld [vmem:[%s7136_s0 + $0x168] sm:$0xf] }
 0x24e   :  { %v2251_v2 = vpop.f32.mrf.mxu2  ;;  %v6460_v6 = vadd.f32 %v2796_v56, %v2608_v47  ;;  %v1631_v56 = vadd.f32 %v1630_v38, %v7327_v58  ;;  %v4821_v38 = vld [vmem:[%s7136_s0 + $0x170] sm:$0x1]  ;;  %v4465_v19 = vrot.slane %v4822_v45, 9 }
 0x24f   :  { %v2357_v3 = vadd.f32 %v2251_v2, %v1629_v42  ;;  %v6473_v29 = vpack.c.b16 %v2012_v7, %v2011_v60  ;;  %v4743_v60 = vld [vmem:[%s7136_s0 + $0x168] sm:$0xff] }
 0x250   :  { %7325 = vst [vmem:[#allocation35_spill] sm:$0xff] %v6460_v6  ;;  %4535 = vmatmul.msk.bf16.gmra.mxu3 %vm1000_vm3, %v4742_v48  ;;  %v7332_v6 = vld [vmem:[#allocation15_spill] sm:$0xff] }
 0x251   :  { %7329 = vst [vmem:[#allocation90_spill] sm:$0xff] %v6473_v29 }
 0x252   :  { %v2799_v11 = vpop.f32.mrf.mxu0 }
 0x253   :  { %v2503_v4 = vpop.f32.mrf.mxu3  ;;  %v1633_v62 = vpop.f32.mrf.mxu1 }
 0x254   :  { %v2609_v28 = vadd.f32 %v2503_v4, %v2357_v3  ;;  %v7330_v4 = vld [vmem:[#allocation40_spill] sm:$0xff] }
 0x255   :  { %4567 = vmatmul.msk.bf16.gmra.mxu0 %vm1000_vm3, %v7326_v35  ;;  %v1634_v7 = vadd.f32 %v1633_v62, %v7330_v4  ;;  %v7333_v62 = vld [vmem:[#allocation43_spill] sm:$0xff] }
 0x256   :  { %v2253_v47 = vpop.f32.mrf.mxu2  ;;  %4432 = vmatmul.msk.bf16.gmra.mxu1 %vm1000_vm3, %v4742_v48  ;;  %v6471_v52 = vadd.f32 %v2799_v11, %v2609_v28  ;;  %v1934_v28 = vrot.slane %v4821_v38, 5  ;;  %v1933_v11 = vrot.slane %v1931_v59, 4 }
 0x257   :  { %v2358_v46 = vadd.f32 %v2253_v47, %v1631_v56 }
 0x258   :  { %7328 = vst [vmem:[#allocation37_spill] sm:$0xff] %v6471_v52  ;;  %v1935_v5 = vsel %vm5588_vm7, %v1933_v11, %v1934_v28  ;;  %v4823_v28 = vld [vmem:[%s7136_s0 + $0x178] sm:$0xf] }
 0x259   :  { %v2014_v45 = vunpack.c.l.b16 %v1935_v5  ;;  %v1938_v11 = vrot.slane %v4823_v28, 5 }
 0x25a   :  { %v2801_v42 = vpop.f32.mrf.mxu0 }
 0x25b   :  { %v2505_v2 = vpop.f32.mrf.mxu3  ;;  %4496 = vmatmul.msk.bf16.gmra.mxu2 %vm1000_vm3, %v6473_v29  ;;  %v1635_v3 = vpop.f32.mrf.mxu1 }
 0x25c   :  { %v2610_v48 = vadd.f32 %v2505_v2, %v2358_v46  ;;  %v1932_v46 = vsel %vm5588_vm7, %v4465_v19, %v1931_v59 }
 0x25d   :  { %v2013_v52 = vunpack.c.l.b16 %v1932_v46  ;;  %v4825_v46 = vld [vmem:[%s7136_s0 + $0x174] sm:$0xf] }
 0x25e   :  { %v2256_v58 = vpop.f32.mrf.mxu2  ;;  %v6490_v56 = vadd.f32 %v2801_v42, %v2610_v48  ;;  %v1636_v42 = vadd.f32 %v1635_v3, %v7333_v62  ;;  %v4824_v3 = vld [vmem:[%s7136_s0 + $0x17c] sm:$0x1]  ;;  %v4466_v5 = vrot.slane %v4825_v46, 9 }
 0x25f   :  { %v2359_v47 = vadd.f32 %v2256_v58, %v1634_v7  ;;  %v6503_v19 = vpack.c.b16 %v2014_v45, %v2013_v52  ;;  %v4744_v52 = vld [vmem:[%s7136_s0 + $0x174] sm:$0xff] }
 0x260   :  { %7331 = vst [vmem:[#allocation40_spill] sm:$0xff] %v6490_v56  ;;  %4536 = vmatmul.msk.bf16.gmra.mxu3 %vm1000_vm3, %v4743_v60  ;;  %v7338_v56 = vld [vmem:[#allocation18_spill] sm:$0xff] }
 0x261   :  { %7335 = vst [vmem:[#allocation91_spill] sm:$0xff] %v6503_v19 }
 0x262   :  { %v2804_v2 = vpop.f32.mrf.mxu0 }
 0x263   :  { %v2508_v38 = vpop.f32.mrf.mxu3  ;;  %v1638_v29 = vpop.f32.mrf.mxu1 }
 0x264   :  { %v2611_v35 = vadd.f32 %v2508_v38, %v2359_v47  ;;  %v7336_v38 = vld [vmem:[#allocation45_spill] sm:$0xff] }
 0x265   :  { %4568 = vmatmul.msk.bf16.gmra.mxu0 %vm1000_vm3, %v7332_v6  ;;  %v1639_v45 = vadd.f32 %v1638_v29, %v7336_v38  ;;  %v7339_v29 = vld [vmem:[#allocation48_spill] sm:$0xff] }
 0x266   :  { %v2258_v48 = vpop.f32.mrf.mxu2  ;;  %4433 = vmatmul.msk.bf16.gmra.mxu1 %vm1000_vm3, %v4743_v60  ;;  %v6501_v4 = vadd.f32 %v2804_v2, %v2611_v35  ;;  %v1941_v35 = vrot.slane %v4824_v3, 5  ;;  %v1940_v2 = vrot.slane %v1938_v11, 4 }
 0x267   :  { %v2360_v59 = vadd.f32 %v2258_v48, %v1636_v42 }
 0x268   :  { %7334 = vst [vmem:[#allocation43_spill] sm:$0xff] %v6501_v4  ;;  %v1942_v28 = vsel %vm5588_vm7, %v1940_v2, %v1941_v35  ;;  %v4826_v35 = vld [vmem:[%s7136_s0 + $0x184] sm:$0xf] }
 0x269   :  { %v2016_v46 = vunpack.c.l.b16 %v1942_v28  ;;  %v1945_v2 = vrot.slane %v4826_v35, 5 }
 0x26a   :  { %v2806_v7 = vpop.f32.mrf.mxu0 }
 0x26b   :  { %v2510_v58 = vpop.f32.mrf.mxu3  ;;  %4497 = vmatmul.msk.bf16.gmra.mxu2 %vm1000_vm3, %v6503_v19  ;;  %v1640_v47 = vpop.f32.mrf.mxu1 }
 0x26c   :  { %v2612_v60 = vadd.f32 %v2510_v58, %v2360_v59  ;;  %v1939_v59 = vsel %vm5588_vm7, %v4466_v5, %v1938_v11 }
 0x26d   :  { %v2015_v4 = vunpack.c.l.b16 %v1939_v59  ;;  %v4828_v59 = vld [vmem:[%s7136_s0 + $0x180] sm:$0xf] }
 0x26e   :  { %v2261_v62 = vpop.f32.mrf.mxu2  ;;  %v6520_v42 = vadd.f32 %v2806_v7, %v2612_v60  ;;  %v1641_v7 = vadd.f32 %v1640_v47, %v7339_v29  ;;  %v4827_v47 = vld [vmem:[%s7136_s0 + $0x188] sm:$0x1]  ;;  %v4467_v28 = vrot.slane %v4828_v59, 9 }
 0x26f   :  { %v2361_v48 = vadd.f32 %v2261_v62, %v1639_v45  ;;  %v6533_v5 = vpack.c.b16 %v2016_v46, %v2015_v4  ;;  %v4745_v4 = vld [vmem:[%s7136_s0 + $0x180] sm:$0xff] }
 0x270   :  { %7337 = vst [vmem:[#allocation45_spill] sm:$0xff] %v6520_v42  ;;  %4537 = vmatmul.msk.bf16.gmra.mxu3 %vm1000_vm3, %v4744_v52  ;;  %v7344_v42 = vld [vmem:[#allocation21_spill] sm:$0xff] }
 0x271   :  { %7341 = vst [vmem:[#allocation92_spill] sm:$0xff] %v6533_v5 }
 0x272   :  { %v2809_v58 = vpop.f32.mrf.mxu0 }
 0x273   :  { %v2513_v3 = vpop.f32.mrf.mxu3  ;;  %v1643_v19 = vpop.f32.mrf.mxu1 }
 0x274   :  { %v2613_v6 = vadd.f32 %v2513_v3, %v2361_v48  ;;  %v7342_v3 = vld [vmem:[#allocation50_spill] sm:$0xff] }
 0x275   :  { %4569 = vmatmul.msk.bf16.gmra.mxu0 %vm1000_vm3, %v7338_v56  ;;  %v1644_v46 = vadd.f32 %v1643_v19, %v7342_v3  ;;  %v7345_v19 = vld [vmem:[#allocation53_spill] sm:$0xff]  ;;  %v119_v3 = vld [vmem:[%s7136_s0 + $0x19c] sm:$0xf] }
 0x276   :  { %v2263_v60 = vpop.f32.mrf.mxu2  ;;  %4434 = vmatmul.msk.bf16.gmra.mxu1 %vm1000_vm3, %v4744_v52  ;;  %v6531_v38 = vadd.f32 %v2809_v58, %v2613_v6  ;;  %v1948_v6 = vrot.slane %v4827_v47, 5  ;;  %v1947_v58 = vrot.slane %v1945_v2, 4 }
 0x277   :  { %v2362_v11 = vadd.f32 %v2263_v60, %v1641_v7 }
 0x278   :  { %7340 = vst [vmem:[#allocation48_spill] sm:$0xff] %v6531_v38  ;;  %v1949_v35 = vsel %vm5588_vm7, %v1947_v58, %v1948_v6 }
 0x279   :  { %v2018_v59 = vunpack.c.l.b16 %v1949_v35  ;;  %v2675_v35 = vshrl.u32 %v119_v3, 16 }
 0x27a   :  { %v2811_v45 = vpop.f32.mrf.mxu0 }
 0x27b   :  { %v2515_v62 = vpop.f32.mrf.mxu3  ;;  %4498 = vmatmul.msk.bf16.gmra.mxu2 %vm1000_vm3, %v6533_v5  ;;  %v1645_v48 = vpop.f32.mrf.mxu1  ;;  %v2677_v20 = vrot.slane %v2675_v35, 4 }
 0x27c   :  { %v2614_v52 = vadd.f32 %v2515_v62, %v2362_v11  ;;  %v1946_v11 = vsel %vm5588_vm7, %v4467_v28, %v1945_v2  ;;  %v118_v2 = vld [vmem:[%s7136_s0 + $0x198] sm:$0xf] }
 0x27d   :  { %v2017_v38 = vunpack.c.l.b16 %v1946_v11  ;;  %v2671_v11 = vshll.u32 %v119_v3, 16  ;;  %v7348_v3 = vld [vmem:[#allocation57_spill] sm:$0xff] }
 0x27e   :  { %v2266_v29 = vpop.f32.mrf.mxu2  ;;  %v6550_v7 = vadd.f32 %v2811_v45, %v2614_v52  ;;  %v1646_v45 = vadd.f32 %v1645_v48, %v7345_v19  ;;  %v4829_v48 = vld [vmem:[%s7136_s0 + $0x190] sm:$0xf] }
 0x27f   :  { %v2363_v60 = vadd.f32 %v2266_v29, %v1644_v46  ;;  %v6566_v58 = vpack.c.b16 %v2018_v59, %v2017_v38  ;;  %v1952_v46 = vrot.slane %v4829_v48, 5  ;;  %v2662_v29 = vshrl.u32 %v118_v2, 16  ;;  %v4830_v38 = vld [vmem:[%s7136_s0 + $0x194] sm:$0x1]  ;;  %v4746_v19 = vld [vmem:[%s7136_s0 + $0x18c] sm:$0xff] }
 0x280   :  { %7343 = vst [vmem:[#allocation50_spill] sm:$0xff] %v6550_v7  ;;  %4538 = vmatmul.msk.bf16.gmra.mxu3 %vm1000_vm3, %v4745_v4  ;;  %v2673_v7 = vrot.slane %v2671_v11, 5 }
 0x281   :  { %7347 = vst [vmem:[#allocation93_spill] sm:$0xff] %v6566_v58 }
 0x282   :  { %v2814_v62 = vpop.f32.mrf.mxu0 }
 0x283   :  { %v2518_v47 = vpop.f32.mrf.mxu3  ;;  %v1648_v5 = vpop.f32.mrf.mxu1 }
 0x284   :  { %v2615_v56 = vadd.f32 %v2518_v47, %v2363_v60  ;;  %v2665_v60 = vshll.u32 %v118_v2, 16  ;;  %v1954_v2 = vrot.slane %v1952_v46, 4  ;;  %v1649_v48 = vadd.f32 %v1648_v5, %v7348_v3 }
 0x285   :  { %4570 = vmatmul.msk.bf16.gmra.mxu0 %vm1000_vm3, %v7344_v42 }
 0x286   :  { %v2268_v52 = vpop.f32.mrf.mxu2  ;;  %4435 = vmatmul.msk.bf16.gmra.mxu1 %vm1000_vm3, %v4745_v4  ;;  %v6564_v28 = vadd.f32 %v2814_v62, %v2615_v56  ;;  %v1955_v62 = vrot.slane %v4830_v38, 5  ;;  %v2667_v42 = vrot.slane %v2665_v60, 5  ;;  %v2678_v60 = vor.u32 %v2677_v20, %v2673_v7 }
 0x287   :  { %v2364_v6 = vadd.f32 %v2268_v52, %v1646_v45  ;;  %v4831_v45 = vld [vmem:[%s7136_s0 + $0x18c] sm:$0xf] }
 0x288   :  { %7346 = vst [vmem:[#allocation53_spill] sm:$0xff] %v6564_v28  ;;  %v4468_v52 = vrot.slane %v4831_v45, 9  ;;  %v1956_v5 = vsel %vm5588_vm7, %v1954_v2, %v1955_v62 }
 0x28a   :  { %v2816_v4 = vpop.f32.mrf.mxu0  ;;  %v1953_v38 = vsel %vm5588_vm7, %v4468_v52, %v1952_v46  ;;  %v2679_v52 = vrot.slane %v2678_v60, 4 }
 0x28b   :  { %v2520_v47 = vpop.f32.mrf.mxu3  ;;  %4499 = vmatmul.msk.bf16.gmra.mxu2 %vm1000_vm3, %v6566_v58  ;;  %v1650_v56 = vpop.f32.mrf.mxu1  ;;  %v2664_v58 = vrot.slane %v2662_v29, 4 }
 0x28c   :  { %v2616_v59 = vadd.f32 %v2520_v47, %v2364_v6  ;;  %v120_v47 = vld [vmem:[%s7136_s0 + $0x1a0] sm:$0x1] }
 0x28d   :  { %v2668_v45 = vor.u32 %v2667_v42, %v2664_v58  ;;  %v2681_v11 = vshll.u32 %v120_v47, 16 }
 0x28e   :  { %v2271_v28 = vpop.f32.mrf.mxu2  ;;  %v6586_v41 = vadd.f32 %v2816_v4, %v2616_v59  ;;  %v2019_v59 = vunpack.c.l.b16 %v1953_v38 }
 0x28f   :  { %v2365_v6 = vadd.f32 %v2271_v28, %v1649_v48  ;;  %v2020_v28 = vunpack.c.l.b16 %v1956_v5  ;;  %v7350_v48 = vld [vmem:[#allocation27_spill] sm:$0xff]  ;;  %v2669_v46 = vrot.slane %v2668_v45, 4  ;;  %v2683_v62 = vrot.slane %v2681_v11, 5 }
 0x290   :  { %7349 = vst [vmem:[#allocation57_spill] sm:$0xff] %v6586_v41  ;;  %4539 = vmatmul.msk.bf16.gmra.mxu3 %vm1000_vm3, %v4746_v19  ;;  %v7351_v41 = vld [vmem:[#allocation60_spill] sm:$0xff] }
 0x291   :  { %v1651_v31 = vadd.f32 %v1650_v56, %v7351_v41  ;;  %v6602_v42 = vpack.c.b16 %v2020_v28, %v2019_v59  ;;  %v2684_v47 = vsel %vm4969_vm4, %v2679_v52, %v2683_v62  ;;  %v7354_v62 = vld [vmem:[#allocation34_spill] sm:$0xff] }
 0x292   :  { %v2819_v29 = vpop.f32.mrf.mxu0 }
 0x293   :  { %v2523_v35 = vpop.f32.mrf.mxu3  ;;  %v1653_v4 = vpop.f32.mrf.mxu1 }
 0x294   :  { %v2617_v3 = vadd.f32 %v2523_v35, %v2365_v6  ;;  %v2674_v6 = vsel %vm4969_vm4, %v2669_v46, %v2673_v7  ;;  %v7353_v46 = vld [vmem:[#allocation66_spill] sm:$0xff] }
 0x295   :  { %4571 = vmatmul.msk.bf16.gmra.mxu0 %vm1000_vm3, %v7350_v48  ;;  %v2687_v5 = vunpack.c.l.b16 %v2674_v6 }
 0x296   :  { %v2273_v1 = vpop.f32.mrf.mxu2  ;;  %4436 = vmatmul.msk.bf16.gmra.mxu1 %vm1000_vm3, %v4746_v19  ;;  %v6600_v2 = vadd.f32 %v2819_v29, %v2617_v3  ;;  %v4747_v19 = vld [vmem:[%s7136_s0 + $0x198] sm:$0xff]  ;;  %v2688_v29 = vunpack.c.l.b16 %v2684_v47 }
 0x297   :  { %v2366_v20 = vadd.f32 %v2273_v1, %v1651_v31  ;;  %v7352_v31 = vld [vmem:[#allocation64_spill] sm:$0xff] }
 0x298   :  { %v1654_v1 = vadd.f32 %v1653_v4, %v7352_v31  ;;  %v6617_v11 = vpack.c.b16 %v2688_v29, %v2687_v5  ;;  %v7355_v31 = vld [vmem:[#allocation24_spill] sm:$0xff] }
 0x29a   :  { %v2821_v58 = vpop.f32.mrf.mxu0 }
 0x29b   :  { %v2525_v38 = vpop.f32.mrf.mxu3  ;;  %4500 = vmatmul.msk.bf16.gmra.mxu2 %vm1000_vm3, %v6602_v42  ;;  %v1655_v41 = vpop.f32.mrf.mxu1 }
 0x29c   :  { %v2618_v56 = vadd.f32 %v2525_v38, %v2366_v20  ;;  %v1656_v52 = vadd.f32 %v1655_v41, %v7353_v46  ;;  %v4832_v38 = vld [vmem:[%s7136_s0 + $0x18] sm:$0xff] }
 0x29d   :  { %v7357_v46 = vld [vmem:[#allocation38_spill] sm:$0xff] }
 0x29e   :  { %v2276_v45 = vpop.f32.mrf.mxu2  ;;  %v6614_v60 = vadd.f32 %v2821_v58, %v2618_v56 }
 0x29f   :  { %v2367_v7 = vadd.f32 %v2276_v45, %v1654_v1  ;;  %v7356_v45 = vld [vmem:[#allocation12_spill] sm:$0xff] }
 0x2a0   :  { %4540 = vmatmul.msk.bf16.gmra.mxu3 %vm1000_vm3, %v4747_v19 }
 0x2a2   :  { %v2824_v35 = vpop.f32.mrf.mxu0 }
 0x2a3   :  { %v2528_v59 = vpop.f32.mrf.mxu3  ;;  %v1658_v28 = vpop.f32.mrf.mxu1 }
 0x2a4   :  { %v2619_v3 = vadd.f32 %v2528_v59, %v2367_v7  ;;  %v1659_v1 = vadd.f32 %v1658_v28, %v7355_v31 }
 0x2a5   :  { %4572 = vmatmul.msk.bf16.gmra.mxu0 %vm1000_vm3, %v6617_v11 }
 0x2a6   :  { %v2278_v4 = vpop.f32.mrf.mxu2  ;;  %4575 = vmatmul.msk.bf16.vlgmr.msra.gmra.mxu1 %vm1000_vm3, %v7354_v62  ;;  %v6624_v20 = vadd.f32 %v2824_v35, %v2619_v3 }
 0x2a7   :  { %v2368_v58 = vadd.f32 %v2278_v4, %v1656_v52  ;;  %v7358_v52 = vld [vmem:[#allocation28_spill] sm:$0xff] }
 0x2aa   :  { %v2826_v6 = vpop.f32.mrf.mxu0 }
 0x2ab   :  { %v2530_v47 = vpop.f32.mrf.mxu3  ;;  %4615 = vmatmul.msk.bf16.vlgmr.msra.gmra.mxu2 %vm1000_vm3, %v4832_v38  ;;  %v1660_v56 = vpop.f32.mrf.mxu1  ;;  %v4833_v38 = vld [vmem:[%s7136_s0 + $0x24] sm:$0xff] }
 0x2ac   :  { %v2620_v19 = vadd.f32 %v2530_v47, %v2368_v58  ;;  %v1661_v4 = vadd.f32 %v1660_v56, %v7358_v52 }
 0x2ae   :  { %v2281_v41 = vpop.f32.mrf.mxu2  ;;  %v6631_v5 = vadd.f32 %v2826_v6, %v2620_v19 }
 0x2af   :  { %v2369_v29 = vadd.f32 %v2281_v41, %v1659_v1  ;;  %v7360_v1 = vld [vmem:[#allocation31_spill] sm:$0xff] }
 0x2b0   :  { %4647 = vmatmul.msk.bf16.vlgmr.msra.gmra.mxu3 %vm1000_vm3, %v7356_v45 }
 0x2b2   :  { %v2829_v7 = vpop.f32.mrf.mxu0 }
 0x2b3   :  { %v2533_v35 = vpop.f32.mrf.mxu3  ;;  %v1663_v59 = vpop.f32.mrf.mxu1 }
 0x2b4   :  { %v2621_v3 = vadd.f32 %v2533_v35, %v2369_v29  ;;  %v1664_v41 = vadd.f32 %v1663_v59, %v7360_v1  ;;  %v7362_v35 = vld [vmem:[#allocation14_spill] sm:$0xff] }
 0x2b5   :  { %4681 = vmatmul.msk.bf16.vlgmr.msra.gmra.mxu0 %vm1000_vm3, %v7357_v46 }
 0x2b6   :  { %v2283_v62 = vpop.f32.mrf.mxu2  ;;  %4576 = vmatmul.msk.bf16.gmra.mxu1 %vm1000_vm3, %v7357_v46  ;;  %v6640_v28 = vadd.f32 %v2829_v7, %v2621_v3 }
 0x2b7   :  { %v2370_v58 = vadd.f32 %v2283_v62, %v1661_v4  ;;  %v7363_v4 = vld [vmem:[#allocation42_spill] sm:$0xff]  ;;  %v7364_v62 = vld [vmem:[#allocation33_spill] sm:$0xff] }
 0x2b8   :  { %7359 = vst [vmem:[#allocation27_spill] sm:$0xff] %v6640_v28 }
 0x2ba   :  { %v2831_v6 = vpop.f32.mrf.mxu0 }
 0x2bb   :  { %v2535_v47 = vpop.f32.mrf.mxu3  ;;  %4616 = vmatmul.msk.bf16.gmra.mxu2 %vm1000_vm3, %v4833_v38  ;;  %v1665_v19 = vpop.f32.mrf.mxu1 }
 0x2bc   :  { %v2622_v31 = vadd.f32 %v2535_v47, %v2370_v58  ;;  %v1666_v38 = vadd.f32 %v1665_v19, %v7364_v62 }
 0x2be   :  { %v2286_v56 = vpop.f32.mrf.mxu2  ;;  %v6647_v29 = vadd.f32 %v2831_v6, %v2622_v31  ;;  %v4834_v31 = vld [vmem:[%s7136_s0 + $0x30] sm:$0xff] }
 0x2bf   :  { %v2371_v45 = vadd.f32 %v2286_v56, %v1664_v41  ;;  %v7366_v56 = vld [vmem:[#allocation36_spill] sm:$0xff] }
 0x2c0   :  { %7361 = vst [vmem:[#allocation60_spill] sm:$0xff] %v6647_v29  ;;  %4648 = vmatmul.msk.bf16.gmra.mxu3 %vm1000_vm3, %v7362_v35 }
 0x2c2   :  { %v2834_v7 = vpop.f32.mrf.mxu0 }
 0x2c3   :  { %v2538_v3 = vpop.f32.mrf.mxu3  ;;  %v1668_v46 = vpop.f32.mrf.mxu1 }
 0x2c4   :  { %v2623_v52 = vadd.f32 %v2538_v3, %v2371_v45  ;;  %v1669_v45 = vadd.f32 %v1668_v46, %v7366_v56 }
 0x2c5   :  { %4682 = vmatmul.msk.bf16.gmra.mxu0 %vm1000_vm3, %v7363_v4 }
 0x2c6   :  { %v2288_v28 = vpop.f32.mrf.mxu2  ;;  %4577 = vmatmul.msk.bf16.gmra.mxu1 %vm1000_vm3, %v7363_v4  ;;  %v6656_v59 = vadd.f32 %v2834_v7, %v2623_v52  ;;  %v7368_v4 = vld [vmem:[#allocation16_spill] sm:$0xff] }
 0x2c7   :  { %v2372_v58 = vadd.f32 %v2288_v28, %v1666_v38  ;;  %v7369_v38 = vld [vmem:[#allocation46_spill] sm:$0xff] }
 0x2c8   :  { %7365 = vst [vmem:[#allocation64_spill] sm:$0xff] %v6656_v59  ;;  %v7370_v59 = vld [vmem:[#allocation39_spill] sm:$0xff] }
 0x2ca   :  { %v2836_v6 = vpop.f32.mrf.mxu0 }
 0x2cb   :  { %v2540_v47 = vpop.f32.mrf.mxu3  ;;  %4617 = vmatmul.msk.bf16.gmra.mxu2 %vm1000_vm3, %v4834_v31  ;;  %v1670_v1 = vpop.f32.mrf.mxu1 }
 0x2cc   :  { %v2624_v41 = vadd.f32 %v2540_v47, %v2372_v58  ;;  %v1671_v31 = vadd.f32 %v1670_v1, %v7370_v59 }
 0x2ce   :  { %v2291_v19 = vpop.f32.mrf.mxu2  ;;  %v6663_v35 = vadd.f32 %v2836_v6, %v2624_v41  ;;  %v4835_v41 = vld [vmem:[%s7136_s0 + $0x3c] sm:$0xff] }
 0x2cf   :  { %v2373_v3 = vadd.f32 %v2291_v19, %v1669_v45  ;;  %v7372_v19 = vld [vmem:[#allocation41_spill] sm:$0xff] }
 0x2d0   :  { %7367 = vst [vmem:[#allocation66_spill] sm:$0xff] %v6663_v35  ;;  %4649 = vmatmul.msk.bf16.gmra.mxu3 %vm1000_vm3, %v7368_v4 }
 0x2d2   :  { %v2839_v28 = vpop.f32.mrf.mxu0 }
 0x2d3   :  { %v2543_v7 = vpop.f32.mrf.mxu3  ;;  %v1673_v52 = vpop.f32.mrf.mxu1 }
 0x2d4   :  { %v2625_v62 = vadd.f32 %v2543_v7, %v2373_v3  ;;  %v1674_v3 = vadd.f32 %v1673_v52, %v7372_v19  ;;  %v7374_v7 = vld [vmem:[#allocation19_spill] sm:$0xff] }
 0x2d5   :  { %4683 = vmatmul.msk.bf16.gmra.mxu0 %vm1000_vm3, %v7369_v38 }
 0x2d6   :  { %v2293_v29 = vpop.f32.mrf.mxu2  ;;  %4578 = vmatmul.msk.bf16.gmra.mxu1 %vm1000_vm3, %v7369_v38  ;;  %v6672_v46 = vadd.f32 %v2839_v28, %v2625_v62 }
 0x2d7   :  { %v2374_v58 = vadd.f32 %v2293_v29, %v1671_v31  ;;  %v7375_v31 = vld [vmem:[#allocation51_spill] sm:$0xff] }
 0x2d8   :  { %7371 = vst [vmem:[#allocation34_spill] sm:$0xff] %v6672_v46  ;;  %v7376_v46 = vld [vmem:[#allocation44_spill] sm:$0xff] }
 0x2da   :  { %v2841_v6 = vpop.f32.mrf.mxu0 }
 0x2db   :  { %v2545_v47 = vpop.f32.mrf.mxu3  ;;  %4618 = vmatmul.msk.bf16.gmra.mxu2 %vm1000_vm3, %v4835_v41  ;;  %v1675_v56 = vpop.f32.mrf.mxu1 }
 0x2dc   :  { %v2626_v45 = vadd.f32 %v2545_v47, %v2374_v58  ;;  %v1676_v41 = vadd.f32 %v1675_v56, %v7376_v46 }
 0x2de   :  { %v2296_v59 = vpop.f32.mrf.mxu2  ;;  %v6679_v1 = vadd.f32 %v2841_v6, %v2626_v45  ;;  %v4836_v45 = vld [vmem:[%s7136_s0 + $0x48] sm:$0xff] }
 0x2df   :  { %v2375_v4 = vadd.f32 %v2296_v59, %v1674_v3  ;;  %v7378_v59 = vld [vmem:[#allocation47_spill] sm:$0xff] }
 0x2e0   :  { %7373 = vst [vmem:[#allocation24_spill] sm:$0xff] %v6679_v1  ;;  %4650 = vmatmul.msk.bf16.gmra.mxu3 %vm1000_vm3, %v7374_v7 }
 0x2e2   :  { %v2844_v29 = vpop.f32.mrf.mxu0 }
 0x2e3   :  { %v2548_v28 = vpop.f32.mrf.mxu3  ;;  %v1678_v62 = vpop.f32.mrf.mxu1 }
 0x2e4   :  { %v2627_v38 = vadd.f32 %v2548_v28, %v2375_v4  ;;  %v1679_v4 = vadd.f32 %v1678_v62, %v7378_v59  ;;  %v7380_v28 = vld [vmem:[#allocation22_spill] sm:$0xff] }
 0x2e5   :  { %4684 = vmatmul.msk.bf16.gmra.mxu0 %vm1000_vm3, %v7375_v31 }
 0x2e6   :  { %v2298_v35 = vpop.f32.mrf.mxu2  ;;  %4579 = vmatmul.msk.bf16.gmra.mxu1 %vm1000_vm3, %v7375_v31  ;;  %v6688_v52 = vadd.f32 %v2844_v29, %v2627_v38 }
 0x2e7   :  { %v2376_v58 = vadd.f32 %v2298_v35, %v1676_v41  ;;  %v7381_v41 = vld [vmem:[#allocation55_spill] sm:$0xff] }
 0x2e8   :  { %7377 = vst [vmem:[#allocation12_spill] sm:$0xff] %v6688_v52  ;;  %v7382_v52 = vld [vmem:[#allocation49_spill] sm:$0xff] }
 0x2ea   :  { %v2846_v6 = vpop.f32.mrf.mxu0 }
 0x2eb   :  { %v2550_v47 = vpop.f32.mrf.mxu3  ;;  %4619 = vmatmul.msk.bf16.gmra.mxu2 %vm1000_vm3, %v4836_v45  ;;  %v1680_v19 = vpop.f32.mrf.mxu1 }
 0x2ec   :  { %v2628_v3 = vadd.f32 %v2550_v47, %v2376_v58  ;;  %v1681_v45 = vadd.f32 %v1680_v19, %v7382_v52 }
 0x2ee   :  { %v2301_v46 = vpop.f32.mrf.mxu2  ;;  %v6695_v56 = vadd.f32 %v2846_v6, %v2628_v3  ;;  %v4837_v3 = vld [vmem:[%s7136_s0 + $0x54] sm:$0xff] }
 0x2ef   :  { %v2377_v7 = vadd.f32 %v2301_v46, %v1679_v4  ;;  %v7384_v46 = vld [vmem:[#allocation52_spill] sm:$0xff] }
 0x2f0   :  { %7379 = vst [vmem:[#allocation38_spill] sm:$0xff] %v6695_v56  ;;  %4651 = vmatmul.msk.bf16.gmra.mxu3 %vm1000_vm3, %v7380_v28 }
 0x2f2   :  { %v2849_v35 = vpop.f32.mrf.mxu0 }
 0x2f3   :  { %v2553_v29 = vpop.f32.mrf.mxu3  ;;  %v1683_v38 = vpop.f32.mrf.mxu1 }
 0x2f4   :  { %v2629_v31 = vadd.f32 %v2553_v29, %v2377_v7  ;;  %v1684_v7 = vadd.f32 %v1683_v38, %v7384_v46  ;;  %v7386_v29 = vld [vmem:[#allocation29_spill] sm:$0xff] }
 0x2f5   :  { %4685 = vmatmul.msk.bf16.gmra.mxu0 %vm1000_vm3, %v7381_v41 }
 0x2f6   :  { %v2303_v1 = vpop.f32.mrf.mxu2  ;;  %4580 = vmatmul.msk.bf16.gmra.mxu1 %vm1000_vm3, %v7381_v41  ;;  %v6704_v62 = vadd.f32 %v2849_v35, %v2629_v31 }
 0x2f7   :  { %v2378_v58 = vadd.f32 %v2303_v1, %v1681_v45  ;;  %v7387_v45 = vld [vmem:[#allocation61_spill] sm:$0xff] }
 0x2f8   :  { %7383 = vst [vmem:[#allocation28_spill] sm:$0xff] %v6704_v62  ;;  %v7388_v62 = vld [vmem:[#allocation54_spill] sm:$0xff] }
 0x2fa   :  { %v2851_v6 = vpop.f32.mrf.mxu0 }
 0x2fb   :  { %v2555_v47 = vpop.f32.mrf.mxu3  ;;  %4620 = vmatmul.msk.bf16.gmra.mxu2 %vm1000_vm3, %v4837_v3  ;;  %v1685_v59 = vpop.f32.mrf.mxu1 }
 0x2fc   :  { %v2630_v4 = vadd.f32 %v2555_v47, %v2378_v58  ;;  %v1686_v3 = vadd.f32 %v1685_v59, %v7388_v62 }
 0x2fe   :  { %v2306_v52 = vpop.f32.mrf.mxu2  ;;  %v6711_v19 = vadd.f32 %v2851_v6, %v2630_v4  ;;  %v4838_v4 = vld [vmem:[%s7136_s0 + $0x60] sm:$0xff] }
 0x2ff   :  { %v2379_v28 = vadd.f32 %v2306_v52, %v1684_v7  ;;  %v7390_v52 = vld [vmem:[#allocation58_spill] sm:$0xff] }
 0x300   :  { %7385 = vst [vmem:[#allocation31_spill] sm:$0xff] %v6711_v19  ;;  %4652 = vmatmul.msk.bf16.gmra.mxu3 %vm1000_vm3, %v7386_v29 }
 0x302   :  { %v2854_v1 = vpop.f32.mrf.mxu0 }
 0x303   :  { %v2558_v35 = vpop.f32.mrf.mxu3  ;;  %v1688_v31 = vpop.f32.mrf.mxu1 }
 0x304   :  { %v2631_v41 = vadd.f32 %v2558_v35, %v2379_v28  ;;  %v1689_v28 = vadd.f32 %v1688_v31, %v7390_v52  ;;  %v7391_v35 = vld [vmem:[#allocation8_spill] sm:$0xff] }
 0x305   :  { %4686 = vmatmul.msk.bf16.gmra.mxu0 %vm1000_vm3, %v7387_v45 }
 0x306   :  { %v2308_v56 = vpop.f32.mrf.mxu2  ;;  %4581 = vmatmul.msk.bf16.gmra.mxu1 %vm1000_vm3, %v7387_v45  ;;  %v6720_v38 = vadd.f32 %v2854_v1, %v2631_v41 }
 0x307   :  { %v2380_v58 = vadd.f32 %v2308_v56, %v1686_v3  ;;  %v7392_v3 = vld [vmem:[#allocation67_spill] sm:$0xff] }
 0x308   :  { %7389 = vst [vmem:[#allocation14_spill] sm:$0xff] %v6720_v38  ;;  %v7393_v38 = vld [vmem:[#allocation62_spill] sm:$0xff] }
 0x30a   :  { %v2856_v6 = vpop.f32.mrf.mxu0 }
 0x30b   :  { %v2560_v47 = vpop.f32.mrf.mxu3  ;;  %4621 = vmatmul.msk.bf16.gmra.mxu2 %vm1000_vm3, %v4838_v4  ;;  %v1690_v46 = vpop.f32.mrf.mxu1 }
 0x30c   :  { %v2632_v7 = vadd.f32 %v2560_v47, %v2380_v58  ;;  %v1691_v4 = vadd.f32 %v1690_v46, %v7393_v38 }
 0x30e   :  { %v2311_v62 = vpop.f32.mrf.mxu2  ;;  %v6727_v59 = vadd.f32 %v2856_v6, %v2632_v7  ;;  %v4839_v7 = vld [vmem:[%s7136_s0 + $0x6c] sm:$0xff] }
 0x30f   :  { %v2381_v29 = vadd.f32 %v2311_v62, %v1689_v28  ;;  %v7395_v62 = vld [vmem:[#allocation65_spill] sm:$0xff] }
 0x310   :  { %4653 = vmatmul.msk.bf16.gmra.mxu3 %vm1000_vm3, %v7391_v35 }
 0x312   :  { %v2859_v56 = vpop.f32.mrf.mxu0 }
 0x313   :  { %v2563_v1 = vpop.f32.mrf.mxu3  ;;  %v1693_v41 = vpop.f32.mrf.mxu1 }
 0x314   :  { %v2633_v45 = vadd.f32 %v2563_v1, %v2381_v29  ;;  %v1694_v29 = vadd.f32 %v1693_v41, %v7395_v62  ;;  %v4840_v62 = vld [vmem:[%s7136_s0 + $0x78] sm:$0xff] }
 0x315   :  { %4687 = vmatmul.msk.bf16.gmra.mxu0 %vm1000_vm3, %v7392_v3 }
 0x316   :  { %v2313_v19 = vpop.f32.mrf.mxu2  ;;  %4582 = vmatmul.msk.bf16.gmra.mxu1 %vm1000_vm3, %v7392_v3  ;;  %v6736_v31 = vadd.f32 %v2859_v56, %v2633_v45  ;;  %v7396_v3 = vld [vmem:[#allocation69_spill] sm:$0xff] }
 0x317   :  { %v2382_v58 = vadd.f32 %v2313_v19, %v1691_v4 }
 0x318   :  { %7394 = vst [vmem:[#allocation42_spill] sm:$0xff] %v6736_v31  ;;  %v7397_v31 = vld [vmem:[#allocation70_spill] sm:$0xff] }
 0x31a   :  { %v2861_v6 = vpop.f32.mrf.mxu0 }
 0x31b   :  { %v2565_v47 = vpop.f32.mrf.mxu3  ;;  %4622 = vmatmul.msk.bf16.gmra.mxu2 %vm1000_vm3, %v4839_v7  ;;  %v1695_v52 = vpop.f32.mrf.mxu1  ;;  %v7398_v7 = vld [vmem:[#allocation68_spill] sm:$0xff] }
 0x31c   :  { %v2634_v28 = vadd.f32 %v2565_v47, %v2382_v58  ;;  %v1696_v58 = vadd.f32 %v1695_v52, %v7398_v7 }
 0x31e   :  { %v2316_v38 = vpop.f32.mrf.mxu2  ;;  %v6743_v46 = vadd.f32 %v2861_v6, %v2634_v28 }
 0x31f   :  { %v2383_v35 = vadd.f32 %v2316_v38, %v1694_v29 }
 0x320   :  { %4654 = vmatmul.msk.bf16.gmra.mxu3 %vm1000_vm3, %v5064_v22 }
 0x322   :  { %v2864_v19 = vpop.f32.mrf.mxu0 }
 0x323   :  { %v2568_v56 = vpop.f32.mrf.mxu3  ;;  %v2973_v1 = vpop.f32.mrf.mxu1 }
 0x324   :  { %v2635_v45 = vadd.f32 %v2568_v56, %v2383_v35  ;;  %v3133_v4 = vadd.f32 %v2973_v1, %v7396_v3 }
 0x325   :  { %4688 = vmatmul.msk.bf16.gmra.mxu0 %vm1000_vm3, %v7397_v31 }
 0x326   :  { %v2318_v47 = vpop.f32.mrf.mxu2  ;;  %4583 = vmatmul.msk.bf16.gmra.mxu1 %vm1000_vm3, %v7397_v31  ;;  %v6753_v41 = vadd.f32 %v2864_v19, %v2635_v45 }
 0x327   :  { %v2384_v6 = vadd.f32 %v2318_v47, %v1696_v58  ;;  %v7400_v58 = vld [vmem:[#allocation71_spill] sm:$0xff] }
 0x32a   :  { %v2866_v28 = vpop.f32.mrf.mxu0 }
 0x32b   :  { %v2570_v22 = vpop.f32.mrf.mxu3  ;;  %4623 = vmatmul.msk.bf16.gmra.mxu2 %vm1000_vm3, %v4840_v62  ;;  %v2975_v29 = vpop.f32.mrf.mxu1 }
 0x32c   :  { %v2636_v38 = vadd.f32 %v2570_v22, %v2384_v6  ;;  %v3134_v35 = vadd.f32 %v2975_v29, %v5941_v34 }
 0x32e   :  { %v3225_v52 = vpop.f32.mrf.mxu2  ;;  %v6760_v56 = vadd.f32 %v2866_v28, %v2636_v38 }
 0x32f   :  { %v3385_v1 = vadd.f32 %v3225_v52, %v3133_v4 }
 0x330   :  { %7399 = vst [vmem:[#allocation33_spill] sm:$0xff] %v6760_v56  ;;  %4655 = vmatmul.msk.bf16.gmra.mxu3 %vm1000_vm3, %v5129_v49  ;;  %v4841_v49 = vld [vmem:[%s7136_s0 + $0x84] sm:$0xff] }
 0x331   :  { %v7401_v56 = vld [vmem:[#allocation72_spill] sm:$0xff] }
 0x332   :  { %v3785_v31 = vpop.f32.mrf.mxu0 }
 0x333   :  { %v3521_v19 = vpop.f32.mrf.mxu3  ;;  %v2978_v45 = vpop.f32.mrf.mxu1 }
 0x334   :  { %v3681_v3 = vadd.f32 %v3521_v19, %v3385_v1  ;;  %v3135_v7 = vadd.f32 %v2978_v45, %v5952_v12 }
 0x335   :  { %4689 = vmatmul.msk.bf16.gmra.mxu0 %vm1000_vm3, %v7400_v58 }
 0x336   :  { %v3945_v47 = vadd.f32 %v3785_v31, %v3681_v3  ;;  %v3227_v6 = vpop.f32.mrf.mxu2  ;;  %4584 = vmatmul.msk.bf16.gmra.mxu1 %vm1000_vm3, %v7400_v58 }
 0x337   :  { %v3386_v34 = vadd.f32 %v3227_v6, %v3134_v35 }
 0x338   :  { %v4079_v1 = vmul.f32 %v3945_v47, %v3945_v47 }
 0x33a   :  { %v3787_v28 = vpop.f32.mrf.mxu0 }
 0x33b   :  { %v3523_v4 = vpop.f32.mrf.mxu3  ;;  %4624 = vmatmul.msk.bf16.gmra.mxu2 %vm1000_vm3, %v4841_v49  ;;  %v2980_v22 = vpop.f32.mrf.mxu1 }
 0x33c   :  { %v3682_v62 = vadd.f32 %v3523_v4, %v3386_v34  ;;  %v3136_v12 = vadd.f32 %v2980_v22, %v5971_v0 }
 0x33e   :  { %v3946_v29 = vadd.f32 %v3787_v28, %v3682_v62  ;;  %v3230_v38 = vpop.f32.mrf.mxu2  ;;  %v4842_v62 = vld [vmem:[%s7136_s0 + $0x90] sm:$0xff] }
 0x33f   :  { %v3387_v52 = vadd.f32 %v3230_v38, %v3135_v7 }
 0x340   :  { %v4009_v31 = vadd.f32 %v3946_v29, %v3945_v47  ;;  %v4080_v19 = vmul.f32 %v3946_v29, %v3946_v29  ;;  %4656 = vmatmul.msk.bf16.gmra.mxu3 %vm1000_vm3, %v5202_v23 }
 0x342   :  { %v4143_v35 = vadd.f32 %v4080_v19, %v4079_v1  ;;  %v3790_v45 = vpop.f32.mrf.mxu0 }
 0x343   :  { %v3526_v3 = vpop.f32.mrf.mxu3  ;;  %v2983_v58 = vpop.f32.mrf.mxu1 }
 0x344   :  { %v3683_v6 = vadd.f32 %v3526_v3, %v3387_v52  ;;  %v3137_v49 = vadd.f32 %v2983_v58, %v5982_v54 }
 0x345   :  { %4690 = vmatmul.msk.bf16.gmra.mxu0 %vm1000_vm3, %v7401_v56 }
 0x346   :  { %v3947_v0 = vadd.f32 %v3790_v45, %v3683_v6  ;;  %v3232_v34 = vpop.f32.mrf.mxu2  ;;  %4585 = vmatmul.msk.bf16.gmra.mxu1 %vm1000_vm3, %v7401_v56 }
 0x347   :  { %v3388_v7 = vadd.f32 %v3232_v34, %v3136_v12 }
 0x348   :  { %v4010_v47 = vadd.f32 %v4009_v31, %v3947_v0  ;;  %v4081_v28 = vmul.f32 %v3947_v0, %v3947_v0  ;;  %v7402_v0 = vld [vmem:[#allocation73_spill] sm:$0xff] }
 0x34a   :  { %v4144_v4 = vadd.f32 %v4143_v35, %v4081_v28  ;;  %v3792_v23 = vpop.f32.mrf.mxu0 }
 0x34b   :  { %v3528_v22 = vpop.f32.mrf.mxu3  ;;  %4625 = vmatmul.msk.bf16.gmra.mxu2 %vm1000_vm3, %v4842_v62  ;;  %v2985_v54 = vpop.f32.mrf.mxu1 }
 0x34c   :  { %v3684_v29 = vadd.f32 %v3528_v22, %v3388_v7  ;;  %v3138_v38 = vadd.f32 %v2985_v54, %v6001_v32 }
 0x34e   :  { %v3948_v52 = vadd.f32 %v3792_v23, %v3684_v29  ;;  %v3235_v1 = vpop.f32.mrf.mxu2  ;;  %v4843_v23 = vld [vmem:[%s7136_s0 + $0x9c] sm:$0xff] }
 0x34f   :  { %v3389_v19 = vadd.f32 %v3235_v1, %v3137_v49 }
 0x350   :  { %v4011_v56 = vadd.f32 %v4010_v47, %v3948_v52  ;;  %v4082_v12 = vmul.f32 %v3948_v52, %v3948_v52  ;;  %4657 = vmatmul.msk.bf16.gmra.mxu3 %vm1000_vm3, %v5281_v9 }
 0x352   :  { %v4145_v31 = vadd.f32 %v4144_v4, %v4082_v12  ;;  %v3795_v35 = vpop.f32.mrf.mxu0 }
 0x353   :  { %v3531_v45 = vpop.f32.mrf.mxu3  ;;  %v2988_v3 = vpop.f32.mrf.mxu1 }
 0x354   :  { %v3685_v58 = vadd.f32 %v3531_v45, %v3389_v19  ;;  %v3139_v6 = vadd.f32 %v2988_v3, %v6012_v57  ;;  %v7403_v3 = vld [vmem:[#allocation74_spill] sm:$0xff] }
 0x355   :  { %4691 = vmatmul.msk.bf16.gmra.mxu0 %vm1000_vm3, %v7402_v0 }
 0x356   :  { %v3949_v34 = vadd.f32 %v3795_v35, %v3685_v58  ;;  %v3237_v32 = vpop.f32.mrf.mxu2  ;;  %4586 = vmatmul.msk.bf16.gmra.mxu1 %vm1000_vm3, %v7402_v0 }
 0x357   :  { %v3390_v49 = vadd.f32 %v3237_v32, %v3138_v38 }
 0x358   :  { %v4012_v7 = vadd.f32 %v4011_v56, %v3949_v34  ;;  %v4083_v47 = vmul.f32 %v3949_v34, %v3949_v34 }
 0x35a   :  { %v4146_v28 = vadd.f32 %v4145_v31, %v4083_v47  ;;  %v3797_v9 = vpop.f32.mrf.mxu0 }
 0x35b   :  { %v3533_v4 = vpop.f32.mrf.mxu3  ;;  %4626 = vmatmul.msk.bf16.gmra.mxu2 %vm1000_vm3, %v4843_v23  ;;  %v2990_v57 = vpop.f32.mrf.mxu1 }
 0x35c   :  { %v3686_v22 = vadd.f32 %v3533_v4, %v3390_v49  ;;  %v3140_v62 = vadd.f32 %v2990_v57, %v6031_v44 }
 0x35e   :  { %v3950_v54 = vadd.f32 %v3797_v9, %v3686_v22  ;;  %v3240_v29 = vpop.f32.mrf.mxu2 }
 0x35f   :  { %v3391_v52 = vadd.f32 %v3240_v29, %v3139_v6 }
 0x360   :  { %v4013_v1 = vadd.f32 %v4012_v7, %v3950_v54  ;;  %v4084_v38 = vmul.f32 %v3950_v54, %v3950_v54  ;;  %4658 = vmatmul.msk.bf16.gmra.mxu3 %vm1000_vm3, %v5360_v16  ;;  %v4844_v7 = vld [vmem:[%s7136_s0 + $0xa8] sm:$0xff] }
 0x362   :  { %v4147_v19 = vadd.f32 %v4146_v28, %v4084_v38  ;;  %v3800_v56 = vpop.f32.mrf.mxu0  ;;  %v7404_v38 = vld [vmem:[#allocation75_spill] sm:$0xff] }
 0x363   :  { %v3536_v12 = vpop.f32.mrf.mxu3  ;;  %v2993_v31 = vpop.f32.mrf.mxu1 }
 0x364   :  { %v3687_v35 = vadd.f32 %v3536_v12, %v3391_v52  ;;  %v3141_v45 = vadd.f32 %v2993_v31, %v6042_v61 }
 0x365   :  { %4692 = vmatmul.msk.bf16.gmra.mxu0 %vm1000_vm3, %v7403_v3 }
 0x366   :  { %v3951_v58 = vadd.f32 %v3800_v56, %v3687_v35  ;;  %v3242_v44 = vpop.f32.mrf.mxu2  ;;  %4587 = vmatmul.msk.bf16.gmra.mxu1 %vm1000_vm3, %v7403_v3  ;;  %v7405_v56 = vld [vmem:[#allocation76_spill] sm:$0xff] }
 0x367   :  { %v3392_v6 = vadd.f32 %v3242_v44, %v3140_v62  ;;  %v4845_v44 = vld [vmem:[%s7136_s0 + $0xb4] sm:$0xff] }
 0x368   :  { %v4014_v0 = vadd.f32 %v4013_v1, %v3951_v58  ;;  %v4085_v34 = vmul.f32 %v3951_v58, %v3951_v58 }
 0x36a   :  { %v4148_v32 = vadd.f32 %v4147_v19, %v4085_v34  ;;  %v3802_v16 = vpop.f32.mrf.mxu0 }
 0x36b   :  { %v3538_v49 = vpop.f32.mrf.mxu3  ;;  %4627 = vmatmul.msk.bf16.gmra.mxu2 %vm1000_vm3, %v4844_v7  ;;  %v2995_v61 = vpop.f32.mrf.mxu1 }
 0x36c   :  { %v3688_v47 = vadd.f32 %v3538_v49, %v3392_v6  ;;  %v3142_v28 = vadd.f32 %v2995_v61, %v6061_v25 }
 0x36e   :  { %v3952_v9 = vadd.f32 %v3802_v16, %v3688_v47  ;;  %v3245_v4 = vpop.f32.mrf.mxu2 }
 0x36f   :  { %v3393_v23 = vadd.f32 %v3245_v4, %v3141_v45 }
 0x370   :  { %v4015_v57 = vadd.f32 %v4014_v0, %v3952_v9  ;;  %v4086_v22 = vmul.f32 %v3952_v9, %v3952_v9  ;;  %4659 = vmatmul.msk.bf16.gmra.mxu3 %vm1000_vm3, %v5439_v53  ;;  %v4846_v9 = vld [vmem:[%s7136_s0 + $0xc4] sm:$0xf] }
 0x371   :  { %v2937_v4 = vrot.slane %v4846_v9, 5 }
 0x372   :  { %v4149_v62 = vadd.f32 %v4148_v32, %v4086_v22  ;;  %v3805_v54 = vpop.f32.mrf.mxu0 }
 0x373   :  { %v3541_v29 = vpop.f32.mrf.mxu3  ;;  %v2998_v52 = vpop.f32.mrf.mxu1 }
 0x374   :  { %v3689_v1 = vadd.f32 %v3541_v29, %v3393_v23  ;;  %v3143_v19 = vadd.f32 %v2998_v52, %v7404_v38  ;;  %v6830_v23 = vld [vmem:[%s7136_s0 + $0xcc] sm:$0xf] }
 0x375   :  { %4693 = vmatmul.msk.bf16.gmra.mxu0 %vm1000_vm3, %v7405_v56  ;;  %v3450_v52 = vshrl.u32 %v6830_v23, 16 }
 0x376   :  { %v3953_v12 = vadd.f32 %v3805_v54, %v3689_v1  ;;  %v3247_v25 = vpop.f32.mrf.mxu2  ;;  %4588 = vmatmul.msk.bf16.gmra.mxu1 %vm1000_vm3, %v7405_v56  ;;  %v4847_v54 = vld [vmem:[%s7136_s0 + $0xc0] sm:$0xf]  ;;  %v3453_v1 = vshll.u32 %v6830_v23, 16 }
 0x377   :  { %v3394_v31 = vadd.f32 %v3247_v25, %v3142_v28  ;;  %v4573_v29 = vrot.slane %v4847_v54, 9  ;;  %v4848_v25 = vld [vmem:[%s7136_s0 + $0xc8] sm:$0x1] }
 0x378   :  { %v4016_v35 = vadd.f32 %v4015_v57, %v3953_v12  ;;  %v4087_v45 = vmul.f32 %v3953_v12, %v3953_v12 }
 0x37a   :  { %v4150_v3 = vadd.f32 %v4149_v62, %v4087_v45  ;;  %v3807_v53 = vpop.f32.mrf.mxu0 }
 0x37b   :  { %v3543_v58 = vpop.f32.mrf.mxu3  ;;  %4628 = vmatmul.msk.bf16.gmra.mxu2 %vm1000_vm3, %v4845_v44  ;;  %v3000_v6 = vpop.f32.mrf.mxu1  ;;  %v3455_v44 = vrot.slane %v3453_v1, 5 }
 0x37c   :  { %v3690_v0 = vadd.f32 %v3543_v58, %v3394_v31  ;;  %v3144_v34 = vadd.f32 %v3000_v6, %v6091_v33  ;;  %v6835_v33 = vld [vmem:[%s7136_s0 + $0xd0] sm:$0xf]  ;;  %v2940_v31 = vrot.slane %v4848_v25, 5  ;;  %v3452_v58 = vrot.slane %v3450_v52, 4 }
 0x37d   :  { %v3459_v38 = vshll.u32 %v6835_v33, 16 }
 0x37e   :  { %v3954_v32 = vadd.f32 %v3807_v53, %v3690_v0  ;;  %v3250_v16 = vpop.f32.mrf.mxu2  ;;  %v2938_v53 = vsel %vm5588_vm7, %v4573_v29, %v2937_v4 }
 0x37f   :  { %v3395_v49 = vadd.f32 %v3250_v16, %v3143_v19  ;;  %v3463_v19 = vshrl.u32 %v6835_v33, 16  ;;  %v3461_v6 = vrot.slane %v3459_v38, 5  ;;  %v2949_v9 = vunpack.c.l.b16 %v2938_v53 }
 0x380   :  { %v4017_v7 = vadd.f32 %v4016_v35, %v3954_v32  ;;  %v4088_v61 = vmul.f32 %v3954_v32, %v3954_v32  ;;  %4660 = vmatmul.msk.bf16.gmra.mxu3 %vm1000_vm3, %v5531_v17 }
 0x381   :  { %v3465_v0 = vrot.slane %v3463_v19, 4 }
 0x382   :  { %v4151_v47 = vadd.f32 %v4150_v3, %v4088_v61  ;;  %v3810_v28 = vpop.f32.mrf.mxu0 }
 0x383   :  { %v3546_v57 = vpop.f32.mrf.mxu3  ;;  %v3003_v22 = vpop.f32.mrf.mxu1 }
 0x384   :  { %v3691_v17 = vadd.f32 %v3546_v57, %v3395_v49  ;;  %v3145_v62 = vadd.f32 %v3003_v22, %v6105_v40  ;;  %v2939_v40 = vrot.slane %v2937_v4, 4  ;;  %v69_v49 = vld [vmem:[%s7136_s0 + $0xd4] sm:$0x1]  ;;  %v3456_v57 = vor.u32 %v3455_v44, %v3452_v58 }
 0x385   :  { %4694 = vmatmul.msk.bf16.gmra.mxu0 %vm1000_vm3, %v6107_v14  ;;  %v3466_v22 = vor.u32 %v3465_v0, %v3461_v6  ;;  %v4679_v0 = vrot.slane %v6830_v23, 9 }
 0x386   :  { %v3955_v56 = vadd.f32 %v3810_v28, %v3691_v17  ;;  %v3252_v12 = vpop.f32.mrf.mxu2  ;;  %4589 = vmatmul.msk.bf16.gmra.mxu1 %vm1000_vm3, %v6107_v14  ;;  %v2941_v14 = vsel %vm5588_vm7, %v2939_v40, %v2940_v31  ;;  %v3469_v17 = vshll.u32 %v69_v49, 16 }
 0x387   :  { %v3396_v35 = vadd.f32 %v3252_v12, %v3144_v34  ;;  %v4849_v34 = vld [vmem:[%s7136_s0 + $0xc0] sm:$0xff]  ;;  %v2950_v4 = vunpack.c.l.b16 %v2941_v14  ;;  %v3467_v12 = vrot.slane %v3466_v22, 4 }
 0x388   :  { %v4018_v45 = vadd.f32 %v4017_v7, %v3955_v56  ;;  %v4089_v3 = vmul.f32 %v3955_v56, %v3955_v56  ;;  %v3457_v56 = vrot.slane %v3456_v57, 4  ;;  %v3471_v40 = vrot.slane %v3469_v17, 5 }
 0x389   :  { %v2953_v19 = vpack.c.b16 %v2950_v4, %v2949_v9 }
 0x38a   :  { %v4152_v32 = vadd.f32 %v4151_v47, %v4089_v3  ;;  %v3812_v16 = vpop.f32.mrf.mxu0 }
 0x38b   :  { %v3548_v61 = vpop.f32.mrf.mxu3  ;;  %4629 = vmatmul.msk.bf16.gmra.mxu2 %vm1000_vm3, %v4849_v34  ;;  %v3005_v7 = vpop.f32.mrf.mxu1 }
 0x38c   :  { %v3692_v28 = vadd.f32 %v3548_v61, %v3396_v35  ;;  %v3146_v47 = vadd.f32 %v3005_v7, %v6128_v21  ;;  %v3749_v21 = vrot.slane %v6835_v33, 5 }
 0x38e   :  { %v3956_v54 = vadd.f32 %v3812_v16, %v3692_v28  ;;  %v3255_v29 = vpop.f32.mrf.mxu2  ;;  %v3751_v33 = vrot.slane %v3749_v21, 4  ;;  %v3750_v9 = vsel %vm5588_vm7, %v4679_v0, %v3749_v21  ;;  %v4850_v0 = vld [vmem:[%s7136_s0 + $0xf0] sm:$0xff] }
 0x38f   :  { %v3397_v52 = vadd.f32 %v3255_v29, %v3145_v62  ;;  %v3462_v62 = vsel %vm4969_vm4, %v3457_v56, %v3461_v6  ;;  %v3761_v17 = vunpack.c.l.b16 %v3750_v9 }
 0x390   :  { %v4019_v1 = vadd.f32 %v4018_v45, %v3956_v54  ;;  %v4090_v38 = vmul.f32 %v3956_v54, %v3956_v54  ;;  %4661 = vmatmul.msk.bf16.gmra.mxu3 %vm1000_vm3, %v6135_v26  ;;  %v3472_v26 = vsel %vm4969_vm4, %v3467_v12, %v3471_v40  ;;  %v3497_v34 = vunpack.c.l.b16 %v3462_v62 }
 0x391   :  { %v3498_v6 = vunpack.c.l.b16 %v3472_v26 }
 0x392   :  { %v4153_v25 = vadd.f32 %v4152_v32, %v4090_v38  ;;  %v3815_v31 = vpop.f32.mrf.mxu0  ;;  %v3752_v32 = vrot.slane %v69_v49, 5 }
 0x393   :  { %v3551_v35 = vpop.f32.mrf.mxu3  ;;  %v3008_v3 = vpop.f32.mrf.mxu1  ;;  %v3501_v57 = vpack.c.b16 %v3498_v6, %v3497_v34 }
 0x394   :  { %v3693_v53 = vadd.f32 %v3551_v35, %v3397_v52  ;;  %v3147_v58 = vadd.f32 %v3008_v3, %v6144_v55  ;;  %v4730_v55 = vld [vmem:[%s7136_s0 + $0xcc] sm:$0xff]  ;;  %v3753_v4 = vsel %vm5588_vm7, %v3751_v33, %v3752_v32 }
 0x395   :  { %4695 = vmatmul.msk.bf16.gmra.mxu0 %vm1000_vm3, %v2953_v19  ;;  %v3762_v54 = vunpack.c.l.b16 %v3753_v4 }
 0x396   :  { %v3957_v45 = vadd.f32 %v3815_v31, %v3693_v53  ;;  %v3257_v44 = vpop.f32.mrf.mxu2  ;;  %4590 = vmatmul.msk.bf16.gmra.mxu1 %vm1000_vm3, %v2953_v19 }
 0x397   :  { %v3398_v16 = vadd.f32 %v3257_v44, %v3146_v47  ;;  %v3765_v56 = vpack.c.b16 %v3762_v54, %v3761_v17  ;;  %v4851_v54 = vld [vmem:[%s7136_s0 + $0xfc] sm:$0xff] }
 0x398   :  { %v4020_v14 = vadd.f32 %v4019_v1, %v3957_v45  ;;  %v4091_v61 = vmul.f32 %v3957_v45, %v3957_v45 }
 0x39a   :  { %v4154_v7 = vadd.f32 %v4153_v25, %v4091_v61  ;;  %v3817_v28 = vpop.f32.mrf.mxu0 }
 0x39b   :  { %v3553_v23 = vpop.f32.mrf.mxu3  ;;  %4630 = vmatmul.msk.bf16.gmra.mxu2 %vm1000_vm3, %v4730_v55  ;;  %v3010_v49 = vpop.f32.mrf.mxu1 }
 0x39c   :  { %v3694_v47 = vadd.f32 %v3553_v23, %v3398_v16  ;;  %v3148_v22 = vadd.f32 %v3010_v49, %v6160_v15 }
 0x39e   :  { %v3958_v29 = vadd.f32 %v3817_v28, %v3694_v47  ;;  %v3260_v52 = vpop.f32.mrf.mxu2 }
 0x39f   :  { %v3399_v1 = vadd.f32 %v3260_v52, %v3147_v58 }
 0x3a0   :  { %v4021_v38 = vadd.f32 %v4020_v14, %v3958_v29  ;;  %v4092_v19 = vmul.f32 %v3958_v29, %v3958_v29  ;;  %4662 = vmatmul.msk.bf16.gmra.mxu3 %vm1000_vm3, %v3501_v57 }
 0x3a2   :  { %v4155_v12 = vadd.f32 %v4154_v7, %v4092_v19  ;;  %v3820_v40 = vpop.f32.mrf.mxu0 }
 0x3a3   :  { %v3556_v25 = vpop.f32.mrf.mxu3  ;;  %v3013_v31 = vpop.f32.mrf.mxu1 }
 0x3a4   :  { %v3695_v21 = vadd.f32 %v3556_v25, %v3399_v1  ;;  %v3149_v35 = vadd.f32 %v3013_v31, %v6171_v13 }
 0x3a5   :  { %4696 = vmatmul.msk.bf16.gmra.mxu0 %vm1000_vm3, %v3765_v56 }
 0x3a6   :  { %v3959_v15 = vadd.f32 %v3820_v40, %v3695_v21  ;;  %v3262_v3 = vpop.f32.mrf.mxu2  ;;  %4591 = vmatmul.msk.bf16.gmra.mxu1 %vm1000_vm3, %v6173_v63 }
 0x3a7   :  { %v3400_v53 = vadd.f32 %v3262_v3, %v3148_v22 }
 0x3a8   :  { %v4022_v58 = vadd.f32 %v4021_v38, %v3959_v15  ;;  %v4093_v62 = vmul.f32 %v3959_v15, %v3959_v15 }
 0x3aa   :  { %v4156_v26 = vadd.f32 %v4155_v12, %v4093_v62  ;;  %v3822_v45 = vpop.f32.mrf.mxu0 }
 0x3ab   :  { %v3558_v44 = vpop.f32.mrf.mxu3  ;;  %4631 = vmatmul.msk.bf16.gmra.mxu2 %vm1000_vm3, %v4850_v0  ;;  %v3015_v13 = vpop.f32.mrf.mxu1 }
 0x3ac   :  { %v3696_v33 = vadd.f32 %v3558_v44, %v3400_v53  ;;  %v3150_v32 = vadd.f32 %v3015_v13, %v6190_v27 }
 0x3ae   :  { %v3960_v16 = vadd.f32 %v3822_v45, %v3696_v33  ;;  %v3265_v55 = vpop.f32.mrf.mxu2  ;;  %v4852_v45 = vld [vmem:[%s7136_s0 + $0x108] sm:$0xff] }
 0x3af   :  { %v3401_v14 = vadd.f32 %v3265_v55, %v3149_v35 }
 0x3b0   :  { %v4023_v63 = vadd.f32 %v4022_v58, %v3960_v16  ;;  %v4094_v61 = vmul.f32 %v3960_v16, %v3960_v16  ;;  %4663 = vmatmul.msk.bf16.gmra.mxu3 %vm1000_vm3, %v5149_v10 }
 0x3b2   :  { %v4157_v34 = vadd.f32 %v4156_v26, %v4094_v61  ;;  %v3825_v6 = vpop.f32.mrf.mxu0 }
 0x3b3   :  { %v3561_v7 = vpop.f32.mrf.mxu3  ;;  %v3018_v28 = vpop.f32.mrf.mxu1 }
 0x3b4   :  { %v3697_v9 = vadd.f32 %v3561_v7, %v3401_v14  ;;  %v3151_v4 = vadd.f32 %v3018_v28, %v6201_v37  ;;  %v7407_v28 = vld [vmem:[#allocation78_spill] sm:$0xff] }
 0x3b5   :  { %4697 = vmatmul.msk.bf16.gmra.mxu0 %vm1000_vm3, %v6203_v36 }
 0x3b6   :  { %v3961_v23 = vadd.f32 %v3825_v6, %v3697_v9  ;;  %v3267_v27 = vpop.f32.mrf.mxu2  ;;  %4592 = vmatmul.msk.bf16.gmra.mxu1 %vm1000_vm3, %v6203_v36  ;;  %v7406_v6 = vld [vmem:[#allocation77_spill] sm:$0xff] }
 0x3b7   :  { %v3402_v49 = vadd.f32 %v3267_v27, %v3150_v32 }
 0x3b8   :  { %v4024_v47 = vadd.f32 %v4023_v63, %v3961_v23  ;;  %v4095_v57 = vmul.f32 %v3961_v23, %v3961_v23 }
 0x3ba   :  { %v4158_v22 = vadd.f32 %v4157_v34, %v4095_v57  ;;  %v3827_v10 = vpop.f32.mrf.mxu0  ;;  %v4853_v57 = vld [vmem:[%s7136_s0 + $0x114] sm:$0xff] }
 0x3bb   :  { %v3563_v17 = vpop.f32.mrf.mxu3  ;;  %4632 = vmatmul.msk.bf16.gmra.mxu2 %vm1000_vm3, %v4851_v54  ;;  %v3020_v37 = vpop.f32.mrf.mxu1 }
 0x3bc   :  { %v3698_v29 = vadd.f32 %v3563_v17, %v3402_v49  ;;  %v3152_v52 = vadd.f32 %v3020_v37, %v6220_v50  ;;  %v7408_v17 = vld [vmem:[#allocation79_spill] sm:$0xff] }
 0x3be   :  { %v3962_v1 = vadd.f32 %v3827_v10, %v3698_v29  ;;  %v3270_v38 = vpop.f32.mrf.mxu2 }
 0x3bf   :  { %v3403_v19 = vadd.f32 %v3270_v38, %v3151_v4 }
 0x3c0   :  { %v4025_v36 = vadd.f32 %v4024_v47, %v3962_v1  ;;  %v4096_v56 = vmul.f32 %v3962_v1, %v3962_v1  ;;  %4664 = vmatmul.msk.bf16.gmra.mxu3 %vm1000_vm3, %v5228_v51 }
 0x3c2   :  { %v4159_v12 = vadd.f32 %v4158_v22, %v4096_v56  ;;  %v3830_v40 = vpop.f32.mrf.mxu0 }
 0x3c3   :  { %v3566_v25 = vpop.f32.mrf.mxu3  ;;  %v3023_v31 = vpop.f32.mrf.mxu1 }
 0x3c4   :  { %v3699_v21 = vadd.f32 %v3566_v25, %v3403_v19  ;;  %v3153_v35 = vadd.f32 %v3023_v31, %v6231_v18  ;;  %v7409_v19 = vld [vmem:[#allocation17_spill] sm:$0xff]  ;;  %v7410_v31 = vld [vmem:[#allocation80_spill] sm:$0xff] }
 0x3c5   :  { %4698 = vmatmul.msk.bf16.gmra.mxu0 %vm1000_vm3, %v6233_v8 }
 0x3c6   :  { %v3963_v15 = vadd.f32 %v3830_v40, %v3699_v21  ;;  %v3272_v50 = vpop.f32.mrf.mxu2  ;;  %4593 = vmatmul.msk.bf16.gmra.mxu1 %vm1000_vm3, %v6233_v8 }
 0x3c7   :  { %v3404_v3 = vadd.f32 %v3272_v50, %v3152_v52 }
 0x3c8   :  { %v4026_v53 = vadd.f32 %v4025_v36, %v3963_v15  ;;  %v4097_v58 = vmul.f32 %v3963_v15, %v3963_v15 }
 0x3ca   :  { %v4160_v62 = vadd.f32 %v4159_v12, %v4097_v58  ;;  %v3832_v51 = vpop.f32.mrf.mxu0 }
 0x3cb   :  { %v3568_v26 = vpop.f32.mrf.mxu3  ;;  %4633 = vmatmul.msk.bf16.gmra.mxu2 %vm1000_vm3, %v4852_v45  ;;  %v3025_v18 = vpop.f32.mrf.mxu1  ;;  %v4854_v45 = vld [vmem:[%s7136_s0 + $0x120] sm:$0xff] }
 0x3cc   :  { %v3700_v44 = vadd.f32 %v3568_v26, %v3404_v3  ;;  %v3154_v0 = vadd.f32 %v3025_v18, %v6250_v30 }
 0x3ce   :  { %v3964_v13 = vadd.f32 %v3832_v51, %v3700_v44  ;;  %v3275_v33 = vpop.f32.mrf.mxu2 }
 0x3cf   :  { %v3405_v32 = vadd.f32 %v3275_v33, %v3153_v35  ;;  %v7411_v35 = vld [vmem:[#allocation81_spill] sm:$0xff] }
 0x3d0   :  { %v4027_v8 = vadd.f32 %v4026_v53, %v3964_v13  ;;  %v4098_v16 = vmul.f32 %v3964_v13, %v3964_v13  ;;  %4665 = vmatmul.msk.bf16.gmra.mxu3 %vm1000_vm3, %v5307_v43 }
 0x3d2   :  { %v4161_v55 = vadd.f32 %v4160_v62, %v4098_v16  ;;  %v3835_v14 = vpop.f32.mrf.mxu0 }
 0x3d3   :  { %v3571_v63 = vpop.f32.mrf.mxu3  ;;  %v3028_v61 = vpop.f32.mrf.mxu1 }
 0x3d4   :  { %v3701_v34 = vadd.f32 %v3571_v63, %v3405_v32  ;;  %v3155_v7 = vadd.f32 %v3028_v61, %v7406_v6 }
 0x3d5   :  { %4699 = vmatmul.msk.bf16.gmra.mxu0 %vm1000_vm3, %v7407_v28 }
 0x3d6   :  { %v3965_v9 = vadd.f32 %v3835_v14, %v3701_v34  ;;  %v3277_v30 = vpop.f32.mrf.mxu2  ;;  %4594 = vmatmul.msk.bf16.gmra.mxu1 %vm1000_vm3, %v7407_v28  ;;  %v7413_v14 = vld [vmem:[#allocation20_spill] sm:$0xff]  ;;  %v7414_v28 = vld [vmem:[#allocation83_spill] sm:$0xff] }
 0x3d7   :  { %v3406_v4 = vadd.f32 %v3277_v30, %v3154_v0  ;;  %v7412_v0 = vld [vmem:[#allocation82_spill] sm:$0xff]  ;;  %v7415_v30 = vld [vmem:[#allocation84_spill] sm:$0xff] }
 0x3d8   :  { %v4028_v23 = vadd.f32 %v4027_v8, %v3965_v9  ;;  %v4099_v27 = vmul.f32 %v3965_v9, %v3965_v9 }
 0x3da   :  { %v4162_v49 = vadd.f32 %v4161_v55, %v4099_v27  ;;  %v3837_v43 = vpop.f32.mrf.mxu0 }
 0x3db   :  { %v3573_v47 = vpop.f32.mrf.mxu3  ;;  %4634 = vmatmul.msk.bf16.gmra.mxu2 %vm1000_vm3, %v4853_v57  ;;  %v3030_v22 = vpop.f32.mrf.mxu1 }
 0x3dc   :  { %v3702_v10 = vadd.f32 %v3573_v47, %v3406_v4  ;;  %v3156_v54 = vadd.f32 %v3030_v22, %v7408_v17 }
 0x3de   :  { %v3966_v37 = vadd.f32 %v3837_v43, %v3702_v10  ;;  %v3280_v29 = vpop.f32.mrf.mxu2  ;;  %v4855_v10 = vld [vmem:[%s7136_s0 + $0x12c] sm:$0xff] }
 0x3df   :  { %v3407_v52 = vadd.f32 %v3280_v29, %v3155_v7 }
 0x3e0   :  { %v4029_v1 = vadd.f32 %v4028_v23, %v3966_v37  ;;  %v4100_v38 = vmul.f32 %v3966_v37, %v3966_v37  ;;  %4666 = vmatmul.msk.bf16.gmra.mxu3 %vm1000_vm3, %v7409_v19  ;;  %v7416_v37 = vld [vmem:[#allocation85_spill] sm:$0xff] }
 0x3e2   :  { %v4163_v36 = vadd.f32 %v4162_v49, %v4100_v38  ;;  %v3840_v56 = vpop.f32.mrf.mxu0 }
 0x3e3   :  { %v3576_v12 = vpop.f32.mrf.mxu3  ;;  %v3033_v40 = vpop.f32.mrf.mxu1 }
 0x3e4   :  { %v3703_v25 = vadd.f32 %v3576_v12, %v3407_v52  ;;  %v3157_v21 = vadd.f32 %v3033_v40, %v7410_v31 }
 0x3e5   :  { %4700 = vmatmul.msk.bf16.gmra.mxu0 %vm1000_vm3, %v7411_v35 }
 0x3e6   :  { %v3967_v15 = vadd.f32 %v3840_v56, %v3703_v25  ;;  %v3282_v50 = vpop.f32.mrf.mxu2  ;;  %4595 = vmatmul.msk.bf16.gmra.mxu1 %vm1000_vm3, %v7411_v35  ;;  %v7417_v56 = vld [vmem:[#allocation25_spill] sm:$0xff]  ;;  %v7418_v35 = vld [vmem:[#allocation56_spill] sm:$0xff] }
 0x3e7   :  { %v3408_v3 = vadd.f32 %v3282_v50, %v3156_v54  ;;  %v7419_v50 = vld [vmem:[#allocation86_spill] sm:$0xff] }
 0x3e8   :  { %v4030_v53 = vadd.f32 %v4029_v1, %v3967_v15  ;;  %v4101_v58 = vmul.f32 %v3967_v15, %v3967_v15 }
 0x3ea   :  { %v4164_v62 = vadd.f32 %v4163_v36, %v4101_v58  ;;  %v3842_v51 = vpop.f32.mrf.mxu0 }
 0x3eb   :  { %v3578_v26 = vpop.f32.mrf.mxu3  ;;  %4635 = vmatmul.msk.bf16.gmra.mxu2 %vm1000_vm3, %v4854_v45  ;;  %v3035_v18 = vpop.f32.mrf.mxu1 }
 0x3ec   :  { %v3704_v44 = vadd.f32 %v3578_v26, %v3408_v3  ;;  %v3158_v13 = vadd.f32 %v3035_v18, %v7412_v0 }
 0x3ee   :  { %v3968_v33 = vadd.f32 %v3842_v51, %v3704_v44  ;;  %v3285_v32 = vpop.f32.mrf.mxu2  ;;  %v4856_v44 = vld [vmem:[%s7136_s0 + $0x138] sm:$0xff] }
 0x3ef   :  { %v3409_v8 = vadd.f32 %v3285_v32, %v3157_v21 }
 0x3f0   :  { %v4031_v16 = vadd.f32 %v4030_v53, %v3968_v33  ;;  %v4102_v55 = vmul.f32 %v3968_v33, %v3968_v33  ;;  %4667 = vmatmul.msk.bf16.gmra.mxu3 %vm1000_vm3, %v7413_v14  ;;  %v7420_v33 = vld [vmem:[#allocation59_spill] sm:$0xff] }
 0x3f2   :  { %v4165_v63 = vadd.f32 %v4164_v62, %v4102_v55  ;;  %v3845_v61 = vpop.f32.mrf.mxu0 }
 0x3f3   :  { %v3581_v34 = vpop.f32.mrf.mxu3  ;;  %v3038_v6 = vpop.f32.mrf.mxu1 }
 0x3f4   :  { %v3705_v7 = vadd.f32 %v3581_v34, %v3409_v8  ;;  %v3159_v9 = vadd.f32 %v3038_v6, %v7414_v28 }
 0x3f5   :  { %4701 = vmatmul.msk.bf16.gmra.mxu0 %vm1000_vm3, %v7415_v30 }
 0x3f6   :  { %v3969_v4 = vadd.f32 %v3845_v61, %v3705_v7  ;;  %v3287_v23 = vpop.f32.mrf.mxu2  ;;  %4596 = vmatmul.msk.bf16.gmra.mxu1 %vm1000_vm3, %v7415_v30  ;;  %v7421_v61 = vld [vmem:[#allocation9_spill] sm:$0xff]  ;;  %v7422_v30 = vld [vmem:[#allocation63_spill] sm:$0xff] }
 0x3f7   :  { %v3410_v27 = vadd.f32 %v3287_v23, %v3158_v13  ;;  %v7423_v23 = vld [vmem:[#allocation87_spill] sm:$0xff] }
 0x3f8   :  { %v4032_v49 = vadd.f32 %v4031_v16, %v3969_v4  ;;  %v4103_v43 = vmul.f32 %v3969_v4, %v3969_v4 }
 0x3fa   :  { %v4166_v47 = vadd.f32 %v4165_v63, %v4103_v43  ;;  %v3847_v57 = vpop.f32.mrf.mxu0 }
 0x3fb   :  { %v3583_v22 = vpop.f32.mrf.mxu3  ;;  %4636 = vmatmul.msk.bf16.gmra.mxu2 %vm1000_vm3, %v4855_v10  ;;  %v3040_v17 = vpop.f32.mrf.mxu1 }
 0x3fc   :  { %v3706_v54 = vadd.f32 %v3583_v22, %v3410_v27  ;;  %v3160_v29 = vadd.f32 %v3040_v17, %v7416_v37 }
 0x3fe   :  { %v3970_v52 = vadd.f32 %v3847_v57, %v3706_v54  ;;  %v3290_v1 = vpop.f32.mrf.mxu2  ;;  %v4857_v54 = vld [vmem:[%s7136_s0 + $0x144] sm:$0xff] }
 0x3ff   :  { %v3411_v38 = vadd.f32 %v3290_v1, %v3159_v9 }
 0x400   :  { %v4033_v19 = vadd.f32 %v4032_v49, %v3970_v52  ;;  %v4104_v36 = vmul.f32 %v3970_v52, %v3970_v52  ;;  %4668 = vmatmul.msk.bf16.gmra.mxu3 %vm1000_vm3, %v7417_v56  ;;  %v7424_v52 = vld [vmem:[#allocation23_spill] sm:$0xff] }
 0x402   :  { %v4167_v12 = vadd.f32 %v4166_v47, %v4104_v36  ;;  %v3850_v40 = vpop.f32.mrf.mxu0 }
 0x403   :  { %v3586_v25 = vpop.f32.mrf.mxu3  ;;  %v3043_v31 = vpop.f32.mrf.mxu1 }
 0x404   :  { %v3707_v21 = vadd.f32 %v3586_v25, %v3411_v38  ;;  %v3161_v15 = vadd.f32 %v3043_v31, %v7418_v35 }
 0x405   :  { %4702 = vmatmul.msk.bf16.gmra.mxu0 %vm1000_vm3, %v7419_v50 }
 0x406   :  { %v3971_v3 = vadd.f32 %v3850_v40, %v3707_v21  ;;  %v3292_v53 = vpop.f32.mrf.mxu2  ;;  %4597 = vmatmul.msk.bf16.gmra.mxu1 %vm1000_vm3, %v7419_v50  ;;  %v7425_v40 = vld [vmem:[#allocation10_spill] sm:$0xff] }
 0x407   :  { %v3412_v58 = vadd.f32 %v3292_v53, %v3160_v29  ;;  %v7426_v50 = vld [vmem:[#allocation26_spill] sm:$0xff]  ;;  %v7427_v53 = vld [vmem:[#allocation88_spill] sm:$0xff] }
 0x408   :  { %v4034_v62 = vadd.f32 %v4033_v19, %v3971_v3  ;;  %v4105_v51 = vmul.f32 %v3971_v3, %v3971_v3 }
 0x40a   :  { %v4168_v26 = vadd.f32 %v4167_v12, %v4105_v51  ;;  %v3852_v45 = vpop.f32.mrf.mxu0 }
 0x40b   :  { %v3588_v18 = vpop.f32.mrf.mxu3  ;;  %4637 = vmatmul.msk.bf16.gmra.mxu2 %vm1000_vm3, %v4856_v44  ;;  %v3045_v0 = vpop.f32.mrf.mxu1 }
 0x40c   :  { %v3708_v13 = vadd.f32 %v3588_v18, %v3412_v58  ;;  %v3162_v32 = vadd.f32 %v3045_v0, %v7420_v33 }
 0x40e   :  { %v3972_v8 = vadd.f32 %v3852_v45, %v3708_v13  ;;  %v3295_v16 = vpop.f32.mrf.mxu2  ;;  %v4858_v13 = vld [vmem:[%s7136_s0 + $0x150] sm:$0xff] }
 0x40f   :  { %v3413_v55 = vadd.f32 %v3295_v16, %v3161_v15 }
 0x410   :  { %v4035_v14 = vadd.f32 %v4034_v62, %v3972_v8  ;;  %v4106_v63 = vmul.f32 %v3972_v8, %v3972_v8  ;;  %4669 = vmatmul.msk.bf16.gmra.mxu3 %vm1000_vm3, %v7421_v61  ;;  %v7428_v8 = vld [vmem:[#allocation30_spill] sm:$0xff] }
 0x412   :  { %v4169_v34 = vadd.f32 %v4168_v26, %v4106_v63  ;;  %v3855_v6 = vpop.f32.mrf.mxu0 }
 0x413   :  { %v3591_v7 = vpop.f32.mrf.mxu3  ;;  %v3048_v28 = vpop.f32.mrf.mxu1 }
 0x414   :  { %v3709_v9 = vadd.f32 %v3591_v7, %v3413_v55  ;;  %v3163_v4 = vadd.f32 %v3048_v28, %v7422_v30 }
 0x415   :  { %4703 = vmatmul.msk.bf16.gmra.mxu0 %vm1000_vm3, %v7423_v23 }
 0x416   :  { %v3973_v27 = vadd.f32 %v3855_v6, %v3709_v9  ;;  %v3297_v49 = vpop.f32.mrf.mxu2  ;;  %4598 = vmatmul.msk.bf16.gmra.mxu1 %vm1000_vm3, %v7423_v23  ;;  %v7429_v6 = vld [vmem:[#allocation11_spill] sm:$0xff]  ;;  %v7430_v23 = vld [vmem:[#allocation32_spill] sm:$0xff] }
 0x417   :  { %v3414_v43 = vadd.f32 %v3297_v49, %v3162_v32  ;;  %v7431_v49 = vld [vmem:[#allocation89_spill] sm:$0xff] }
 0x418   :  { %v4036_v47 = vadd.f32 %v4035_v14, %v3973_v27  ;;  %v4107_v57 = vmul.f32 %v3973_v27, %v3973_v27 }
 0x41a   :  { %v4170_v22 = vadd.f32 %v4169_v34, %v4107_v57  ;;  %v3857_v10 = vpop.f32.mrf.mxu0 }
 0x41b   :  { %v3593_v17 = vpop.f32.mrf.mxu3  ;;  %4638 = vmatmul.msk.bf16.gmra.mxu2 %vm1000_vm3, %v4857_v54  ;;  %v3050_v37 = vpop.f32.mrf.mxu1 }
 0x41c   :  { %v3710_v29 = vadd.f32 %v3593_v17, %v3414_v43  ;;  %v3164_v1 = vadd.f32 %v3050_v37, %v7424_v52 }
 0x41e   :  { %v3974_v38 = vadd.f32 %v3857_v10, %v3710_v29  ;;  %v3300_v19 = vpop.f32.mrf.mxu2  ;;  %v4859_v29 = vld [vmem:[%s7136_s0 + $0x15c] sm:$0xff] }
 0x41f   :  { %v3415_v36 = vadd.f32 %v3300_v19, %v3163_v4 }
 0x420   :  { %v4037_v56 = vadd.f32 %v4036_v47, %v3974_v38  ;;  %v4108_v12 = vmul.f32 %v3974_v38, %v3974_v38  ;;  %4670 = vmatmul.msk.bf16.gmra.mxu3 %vm1000_vm3, %v7425_v40  ;;  %v7432_v38 = vld [vmem:[#allocation35_spill] sm:$0xff] }
 0x422   :  { %v4171_v25 = vadd.f32 %v4170_v22, %v4108_v12  ;;  %v3860_v31 = vpop.f32.mrf.mxu0 }
 0x423   :  { %v3596_v21 = vpop.f32.mrf.mxu3  ;;  %v3053_v35 = vpop.f32.mrf.mxu1 }
 0x424   :  { %v3711_v15 = vadd.f32 %v3596_v21, %v3415_v36  ;;  %v3165_v3 = vadd.f32 %v3053_v35, %v7426_v50 }
 0x425   :  { %4704 = vmatmul.msk.bf16.gmra.mxu0 %vm1000_vm3, %v7427_v53 }
 0x426   :  { %v3975_v58 = vadd.f32 %v3860_v31, %v3711_v15  ;;  %v3302_v62 = vpop.f32.mrf.mxu2  ;;  %4599 = vmatmul.msk.bf16.gmra.mxu1 %vm1000_vm3, %v7427_v53  ;;  %v7433_v31 = vld [vmem:[#allocation13_spill] sm:$0xff] }
 0x427   :  { %v3416_v51 = vadd.f32 %v3302_v62, %v3164_v1  ;;  %v7434_v53 = vld [vmem:[#allocation37_spill] sm:$0xff]  ;;  %v7435_v62 = vld [vmem:[#allocation90_spill] sm:$0xff] }
 0x428   :  { %v4038_v26 = vadd.f32 %v4037_v56, %v3975_v58  ;;  %v4109_v45 = vmul.f32 %v3975_v58, %v3975_v58 }
 0x42a   :  { %v4172_v18 = vadd.f32 %v4171_v25, %v4109_v45  ;;  %v3862_v44 = vpop.f32.mrf.mxu0 }
 0x42b   :  { %v3598_v0 = vpop.f32.mrf.mxu3  ;;  %4639 = vmatmul.msk.bf16.gmra.mxu2 %vm1000_vm3, %v4858_v13  ;;  %v3055_v33 = vpop.f32.mrf.mxu1 }
 0x42c   :  { %v3712_v32 = vadd.f32 %v3598_v0, %v3416_v51  ;;  %v3166_v16 = vadd.f32 %v3055_v33, %v7428_v8 }
 0x42e   :  { %v3976_v55 = vadd.f32 %v3862_v44, %v3712_v32  ;;  %v3305_v14 = vpop.f32.mrf.mxu2  ;;  %v4860_v32 = vld [vmem:[%s7136_s0 + $0x168] sm:$0xff] }
 0x42f   :  { %v3417_v63 = vadd.f32 %v3305_v14, %v3165_v3 }
 0x430   :  { %v4039_v61 = vadd.f32 %v4038_v26, %v3976_v55  ;;  %v4110_v34 = vmul.f32 %v3976_v55, %v3976_v55  ;;  %4671 = vmatmul.msk.bf16.gmra.mxu3 %vm1000_vm3, %v7429_v6  ;;  %v7436_v55 = vld [vmem:[#allocation40_spill] sm:$0xff] }
 0x432   :  { %v4173_v7 = vadd.f32 %v4172_v18, %v4110_v34  ;;  %v3865_v28 = vpop.f32.mrf.mxu0 }
 0x433   :  { %v3601_v9 = vpop.f32.mrf.mxu3  ;;  %v3058_v30 = vpop.f32.mrf.mxu1 }
 0x434   :  { %v3713_v4 = vadd.f32 %v3601_v9, %v3417_v63  ;;  %v3167_v27 = vadd.f32 %v3058_v30, %v7430_v23 }
 0x435   :  { %4705 = vmatmul.msk.bf16.gmra.mxu0 %vm1000_vm3, %v7431_v49 }
 0x436   :  { %v3977_v43 = vadd.f32 %v3865_v28, %v3713_v4  ;;  %v3307_v47 = vpop.f32.mrf.mxu2  ;;  %4600 = vmatmul.msk.bf16.gmra.mxu1 %vm1000_vm3, %v7431_v49  ;;  %v7437_v28 = vld [vmem:[#allocation15_spill] sm:$0xff] }
 0x437   :  { %v3418_v57 = vadd.f32 %v3307_v47, %v3166_v16  ;;  %v7438_v49 = vld [vmem:[#allocation43_spill] sm:$0xff] }
 0x438   :  { %v4040_v22 = vadd.f32 %v4039_v61, %v3977_v43  ;;  %v4111_v10 = vmul.f32 %v3977_v43, %v3977_v43  ;;  %v7439_v47 = vld [vmem:[#allocation91_spill] sm:$0xff] }
 0x43a   :  { %v4174_v17 = vadd.f32 %v4173_v7, %v4111_v10  ;;  %v3867_v54 = vpop.f32.mrf.mxu0 }
 0x43b   :  { %v3603_v37 = vpop.f32.mrf.mxu3  ;;  %4640 = vmatmul.msk.bf16.gmra.mxu2 %vm1000_vm3, %v4859_v29  ;;  %v3060_v52 = vpop.f32.mrf.mxu1 }
 0x43c   :  { %v3714_v1 = vadd.f32 %v3603_v37, %v3418_v57  ;;  %v3168_v19 = vadd.f32 %v3060_v52, %v7432_v38 }
 0x43e   :  { %v3978_v36 = vadd.f32 %v3867_v54, %v3714_v1  ;;  %v3310_v56 = vpop.f32.mrf.mxu2  ;;  %v4861_v1 = vld [vmem:[%s7136_s0 + $0x174] sm:$0xff] }
 0x43f   :  { %v3419_v12 = vadd.f32 %v3310_v56, %v3167_v27 }
 0x440   :  { %v4041_v40 = vadd.f32 %v4040_v22, %v3978_v36  ;;  %v4112_v25 = vmul.f32 %v3978_v36, %v3978_v36  ;;  %4672 = vmatmul.msk.bf16.gmra.mxu3 %vm1000_vm3, %v7433_v31  ;;  %v7440_v36 = vld [vmem:[#allocation45_spill] sm:$0xff] }
 0x442   :  { %v4175_v21 = vadd.f32 %v4174_v17, %v4112_v25  ;;  %v3870_v35 = vpop.f32.mrf.mxu0 }
 0x443   :  { %v3606_v15 = vpop.f32.mrf.mxu3  ;;  %v3063_v50 = vpop.f32.mrf.mxu1 }
 0x444   :  { %v3715_v3 = vadd.f32 %v3606_v15, %v3419_v12  ;;  %v3169_v58 = vadd.f32 %v3063_v50, %v7434_v53 }
 0x445   :  { %4706 = vmatmul.msk.bf16.gmra.mxu0 %vm1000_vm3, %v7435_v62 }
 0x446   :  { %v3979_v51 = vadd.f32 %v3870_v35, %v3715_v3  ;;  %v3312_v26 = vpop.f32.mrf.mxu2  ;;  %4601 = vmatmul.msk.bf16.gmra.mxu1 %vm1000_vm3, %v7435_v62  ;;  %v7441_v35 = vld [vmem:[#allocation18_spill] sm:$0xff]  ;;  %v7442_v62 = vld [vmem:[#allocation48_spill] sm:$0xff] }
 0x447   :  { %v3420_v45 = vadd.f32 %v3312_v26, %v3168_v19  ;;  %v7443_v26 = vld [vmem:[#allocation92_spill] sm:$0xff] }
 0x448   :  { %v4042_v18 = vadd.f32 %v4041_v40, %v3979_v51  ;;  %v4113_v44 = vmul.f32 %v3979_v51, %v3979_v51 }
 0x44a   :  { %v4176_v0 = vadd.f32 %v4175_v21, %v4113_v44  ;;  %v3872_v13 = vpop.f32.mrf.mxu0 }
 0x44b   :  { %v3608_v33 = vpop.f32.mrf.mxu3  ;;  %4641 = vmatmul.msk.bf16.gmra.mxu2 %vm1000_vm3, %v4860_v32  ;;  %v3065_v8 = vpop.f32.mrf.mxu1 }
 0x44c   :  { %v3716_v16 = vadd.f32 %v3608_v33, %v3420_v45  ;;  %v3170_v14 = vadd.f32 %v3065_v8, %v7436_v55 }
 0x44e   :  { %v3980_v63 = vadd.f32 %v3872_v13, %v3716_v16  ;;  %v3315_v61 = vpop.f32.mrf.mxu2  ;;  %v4862_v16 = vld [vmem:[%s7136_s0 + $0x180] sm:$0xff] }
 0x44f   :  { %v3421_v34 = vadd.f32 %v3315_v61, %v3169_v58 }
 0x450   :  { %v4043_v6 = vadd.f32 %v4042_v18, %v3980_v63  ;;  %v4114_v7 = vmul.f32 %v3980_v63, %v3980_v63  ;;  %4673 = vmatmul.msk.bf16.gmra.mxu3 %vm1000_vm3, %v7437_v28  ;;  %v7444_v63 = vld [vmem:[#allocation50_spill] sm:$0xff] }
 0x452   :  { %v4177_v9 = vadd.f32 %v4176_v0, %v4114_v7  ;;  %v3875_v30 = vpop.f32.mrf.mxu0 }
 0x453   :  { %v3611_v4 = vpop.f32.mrf.mxu3  ;;  %v3068_v23 = vpop.f32.mrf.mxu1 }
 0x454   :  { %v3717_v27 = vadd.f32 %v3611_v4, %v3421_v34  ;;  %v3171_v43 = vadd.f32 %v3068_v23, %v7438_v49 }
 0x455   :  { %4707 = vmatmul.msk.bf16.gmra.mxu0 %vm1000_vm3, %v7439_v47 }
 0x456   :  { %v3981_v57 = vadd.f32 %v3875_v30, %v3717_v27  ;;  %v3317_v22 = vpop.f32.mrf.mxu2  ;;  %4602 = vmatmul.msk.bf16.gmra.mxu1 %vm1000_vm3, %v7439_v47  ;;  %v7445_v30 = vld [vmem:[#allocation21_spill] sm:$0xff] }
 0x457   :  { %v3422_v10 = vadd.f32 %v3317_v22, %v3170_v14  ;;  %v7446_v47 = vld [vmem:[#allocation53_spill] sm:$0xff] }
 0x458   :  { %v4044_v17 = vadd.f32 %v4043_v6, %v3981_v57  ;;  %v4115_v54 = vmul.f32 %v3981_v57, %v3981_v57  ;;  %v7447_v22 = vld [vmem:[#allocation93_spill] sm:$0xff] }
 0x45a   :  { %v4178_v37 = vadd.f32 %v4177_v9, %v4115_v54  ;;  %v3877_v29 = vpop.f32.mrf.mxu0 }
 0x45b   :  { %v3613_v52 = vpop.f32.mrf.mxu3  ;;  %4642 = vmatmul.msk.bf16.gmra.mxu2 %vm1000_vm3, %v4861_v1  ;;  %v3070_v38 = vpop.f32.mrf.mxu1 }
 0x45c   :  { %v3718_v19 = vadd.f32 %v3613_v52, %v3422_v10  ;;  %v3172_v56 = vadd.f32 %v3070_v38, %v7440_v36 }
 0x45e   :  { %v3982_v12 = vadd.f32 %v3877_v29, %v3718_v19  ;;  %v3320_v40 = vpop.f32.mrf.mxu2  ;;  %v4863_v19 = vld [vmem:[%s7136_s0 + $0x18c] sm:$0xff] }
 0x45f   :  { %v3423_v25 = vadd.f32 %v3320_v40, %v3171_v43 }
 0x460   :  { %v4045_v31 = vadd.f32 %v4044_v17, %v3982_v12  ;;  %v4116_v21 = vmul.f32 %v3982_v12, %v3982_v12  ;;  %4674 = vmatmul.msk.bf16.gmra.mxu3 %vm1000_vm3, %v7441_v35  ;;  %v7448_v12 = vld [vmem:[#allocation57_spill] sm:$0xff] }
 0x462   :  { %v4179_v15 = vadd.f32 %v4178_v37, %v4116_v21  ;;  %v3880_v50 = vpop.f32.mrf.mxu0 }
 0x463   :  { %v3616_v3 = vpop.f32.mrf.mxu3  ;;  %v3073_v53 = vpop.f32.mrf.mxu1 }
 0x464   :  { %v3719_v58 = vadd.f32 %v3616_v3, %v3423_v25  ;;  %v3173_v51 = vadd.f32 %v3073_v53, %v7442_v62  ;;  %v4864_v53 = vld [vmem:[%s7136_s0 + $0x19c] sm:$0xf]  ;;  %v7058_v62 = vld [vmem:[%s7136_s0 + $0x1a4] sm:$0xf] }
 0x465   :  { %4708 = vmatmul.msk.bf16.gmra.mxu0 %vm1000_vm3, %v7443_v26 }
 0x466   :  { %v3983_v45 = vadd.f32 %v3880_v50, %v3719_v58  ;;  %v3322_v18 = vpop.f32.mrf.mxu2  ;;  %4603 = vmatmul.msk.bf16.gmra.mxu1 %vm1000_vm3, %v7443_v26  ;;  %v2944_v58 = vrot.slane %v4864_v53, 5 }
 0x467   :  { %v3424_v44 = vadd.f32 %v3322_v18, %v3172_v56 }
 0x468   :  { %v4046_v0 = vadd.f32 %v4045_v31, %v3983_v45  ;;  %v4117_v13 = vmul.f32 %v3983_v45, %v3983_v45 }
 0x46a   :  { %v4180_v33 = vadd.f32 %v4179_v15, %v4117_v13  ;;  %v3882_v32 = vpop.f32.mrf.mxu0  ;;  %v3474_v13 = vshrl.u32 %v7058_v62, 16 }
 0x46b   :  { %v3618_v8 = vpop.f32.mrf.mxu3  ;;  %4643 = vmatmul.msk.bf16.gmra.mxu2 %vm1000_vm3, %v4862_v16  ;;  %v3075_v55 = vpop.f32.mrf.mxu1 }
 0x46c   :  { %v3720_v14 = vadd.f32 %v3618_v8, %v3424_v44  ;;  %v3174_v61 = vadd.f32 %v3075_v55, %v7444_v63  ;;  %v4865_v44 = vld [vmem:[%s7136_s0 + $0x198] sm:$0xf] }
 0x46e   :  { %v3984_v34 = vadd.f32 %v3882_v32, %v3720_v14  ;;  %v3325_v6 = vpop.f32.mrf.mxu2  ;;  %v4866_v14 = vld [vmem:[%s7136_s0 + $0x1a0] sm:$0x1] }
 0x46f   :  { %v3425_v7 = vadd.f32 %v3325_v6, %v3173_v51  ;;  %v7063_v51 = vld [vmem:[%s7136_s0 + $0x1a8] sm:$0xf]  ;;  %v2947_v63 = vrot.slane %v4866_v14, 5 }
 0x470   :  { %v4047_v28 = vadd.f32 %v4046_v0, %v3984_v34  ;;  %v4118_v9 = vmul.f32 %v3984_v34, %v3984_v34  ;;  %4675 = vmatmul.msk.bf16.gmra.mxu3 %vm1000_vm3, %v7445_v30  ;;  %v4574_v0 = vrot.slane %v4865_v44, 9  ;;  %v3483_v32 = vshll.u32 %v7063_v51, 16 }
 0x471   :  { %v3487_v8 = vshrl.u32 %v7063_v51, 16 }
 0x472   :  { %v4181_v4 = vadd.f32 %v4180_v33, %v4118_v9  ;;  %v3885_v23 = vpop.f32.mrf.mxu0  ;;  %v3477_v33 = vshll.u32 %v7058_v62, 16  ;;  %v3485_v30 = vrot.slane %v3483_v32, 5 }
 0x473   :  { %v3621_v27 = vpop.f32.mrf.mxu3  ;;  %v3078_v49 = vpop.f32.mrf.mxu1 }
 0x474   :  { %v3721_v43 = vadd.f32 %v3621_v27, %v3425_v7  ;;  %v3175_v57 = vadd.f32 %v3078_v49, %v7446_v47  ;;  %v2945_v7 = vsel %vm5588_vm7, %v4574_v0, %v2944_v58  ;;  %v3479_v9 = vrot.slane %v3477_v33, 5  ;;  %v123_v49 = vld [vmem:[%s7136_s0 + $0x1ac] sm:$0x1]  ;;  %v4867_v47 = vld [vmem:[%s7136_s0 + $0x198] sm:$0xff] }
 0x475   :  { %4709 = vmatmul.msk.bf16.gmra.mxu0 %vm1000_vm3, %v7447_v22 }
 0x476   :  { %v3985_v10 = vadd.f32 %v3885_v23, %v3721_v43  ;;  %v3327_v17 = vpop.f32.mrf.mxu2  ;;  %4604 = vmatmul.msk.bf16.gmra.mxu1 %vm1000_vm3, %v7447_v22 }
 0x477   :  { %v3426_v54 = vadd.f32 %v3327_v17, %v3174_v61 }
 0x478   :  { %v4048_v37 = vadd.f32 %v4047_v28, %v3985_v10  ;;  %v4119_v29 = vmul.f32 %v3985_v10, %v3985_v10  ;;  %v3476_v28 = vrot.slane %v3474_v13, 4  ;;  %v2951_v10 = vunpack.c.l.b16 %v2945_v7 }
 0x47a   :  { %v4182_v52 = vadd.f32 %v4181_v4, %v4119_v29  ;;  %v3887_v1 = vpop.f32.mrf.mxu0  ;;  %v3489_v4 = vrot.slane %v3487_v8, 4 }
 0x47b   :  { %v3623_v38 = vpop.f32.mrf.mxu3  ;;  %4644 = vmatmul.msk.bf16.gmra.mxu2 %vm1000_vm3, %v4863_v19  ;;  %v3080_v36 = vpop.f32.mrf.mxu1 }
 0x47c   :  { %v3722_v56 = vadd.f32 %v3623_v38, %v3426_v54  ;;  %v3176_v40 = vadd.f32 %v3080_v36, %v7448_v12  ;;  %v3490_v29 = vor.u32 %v3489_v4, %v3485_v30 }
 0x47e   :  { %v3986_v25 = vadd.f32 %v3887_v1, %v3722_v56  ;;  %v3330_v31 = vpop.f32.mrf.mxu2 }
 0x47f   :  { %v3427_v21 = vadd.f32 %v3330_v31, %v3175_v57 }
 0x480   :  { %v4049_v35 = vadd.f32 %v4048_v37, %v3986_v25  ;;  %v4120_v15 = vmul.f32 %v3986_v25, %v3986_v25  ;;  %4676 = vmatmul.msk.bf16.gmra.mxu3 %vm1000_vm3, %v7350_v48  ;;  %v3480_v37 = vor.u32 %v3479_v9, %v3476_v28  ;;  %v3491_v25 = vrot.slane %v3490_v29, 4 }
 0x482   :  { %v4183_v50 = vadd.f32 %v4182_v52, %v4120_v15  ;;  %v3890_v3 = vpop.f32.mrf.mxu0  ;;  %v3493_v52 = vshll.u32 %v123_v49, 16 }
 0x483   :  { %v3626_v26 = vpop.f32.mrf.mxu3  ;;  %v3083_v45 = vpop.f32.mrf.mxu1 }
 0x484   :  { %v3723_v48 = vadd.f32 %v3626_v26, %v3427_v21  ;;  %v3177_v18 = vadd.f32 %v3083_v45, %v6600_v2  ;;  %v2946_v2 = vrot.slane %v2944_v58, 4  ;;  %v3495_v31 = vrot.slane %v3493_v52, 5 }
 0x485   :  { %4710 = vmatmul.msk.bf16.gmra.mxu0 %vm1000_vm3, %v6602_v42 }
 0x486   :  { %v3987_v16 = vadd.f32 %v3890_v3, %v3723_v48  ;;  %v3332_v55 = vpop.f32.mrf.mxu2  ;;  %4605 = vmatmul.msk.bf16.gmra.mxu1 %vm1000_vm3, %v6602_v42  ;;  %v2948_v42 = vsel %vm5588_vm7, %v2946_v2, %v2947_v63  ;;  %v4680_v48 = vrot.slane %v7058_v62, 9 }
 0x487   :  { %v3428_v61 = vadd.f32 %v3332_v55, %v3176_v40  ;;  %v2952_v54 = vunpack.c.l.b16 %v2948_v42  ;;  %v3481_v40 = vrot.slane %v3480_v37, 4 }
 0x488   :  { %v4050_v34 = vadd.f32 %v4049_v35, %v3987_v16  ;;  %v4121_v6 = vmul.f32 %v3987_v16, %v3987_v16 }
 0x489   :  { %v2954_v12 = vpack.c.b16 %v2952_v54, %v2951_v10  ;;  %v3486_v58 = vsel %vm4969_vm4, %v3481_v40, %v3485_v30 }
 0x48a   :  { %v4184_v23 = vadd.f32 %v4183_v50, %v4121_v6  ;;  %v3892_v27 = vpop.f32.mrf.mxu0  ;;  %v3499_v33 = vunpack.c.l.b16 %v3486_v58 }
 0x48b   :  { %v3628_v43 = vpop.f32.mrf.mxu3  ;;  %4645 = vmatmul.msk.bf16.gmra.mxu2 %vm1000_vm3, %v4867_v47  ;;  %v3085_v57 = vpop.f32.mrf.mxu1  ;;  %v7449_v47 = vld [vmem:[#allocation27_spill] sm:$0xff] }
 0x48c   :  { %v3724_v22 = vadd.f32 %v3628_v43, %v3428_v61  ;;  %v3178_v17 = vadd.f32 %v3085_v57, %v6614_v60  ;;  %v3756_v60 = vrot.slane %v7063_v51, 5 }
 0x48e   :  { %v3988_v1 = vadd.f32 %v3892_v27, %v3724_v22  ;;  %v3335_v38 = vpop.f32.mrf.mxu2  ;;  %v3758_v51 = vrot.slane %v3756_v60, 4  ;;  %v3757_v16 = vsel %vm5588_vm7, %v4680_v48, %v3756_v60 }
 0x48f   :  { %v3429_v19 = vadd.f32 %v3335_v38, %v3177_v18  ;;  %v3759_v18 = vrot.slane %v123_v49, 5 }
 0x490   :  { %v4051_v36 = vadd.f32 %v4050_v34, %v3988_v1  ;;  %v4122_v56 = vmul.f32 %v3988_v1, %v3988_v1  ;;  %4677 = vmatmul.msk.bf16.gmra.mxu3 %vm1000_vm3, %v6617_v11  ;;  %v3496_v11 = vsel %vm4969_vm4, %v3491_v25, %v3495_v31  ;;  %v3763_v34 = vunpack.c.l.b16 %v3757_v16 }
 0x491   :  { %v3500_v32 = vunpack.c.l.b16 %v3496_v11  ;;  %v3760_v55 = vsel %vm5588_vm7, %v3758_v51, %v3759_v18 }
 0x492   :  { %v4185_v21 = vadd.f32 %v4184_v23, %v4122_v56  ;;  %v3895_v35 = vpop.f32.mrf.mxu0  ;;  %v3764_v6 = vunpack.c.l.b16 %v3760_v55 }
 0x493   :  { %v3631_v15 = vpop.f32.mrf.mxu3  ;;  %v3088_v50 = vpop.f32.mrf.mxu1  ;;  %v3502_v63 = vpack.c.b16 %v3500_v32, %v3499_v33 }
 0x494   :  { %v3725_v3 = vadd.f32 %v3631_v15, %v3429_v19  ;;  %v3179_v53 = vadd.f32 %v3088_v50, %v6624_v20  ;;  %v4748_v20 = vld [vmem:[%s7136_s0 + $0x1a4] sm:$0xff]  ;;  %v3766_v23 = vpack.c.b16 %v3764_v6, %v3763_v34  ;;  %v7453_v34 = vld [vmem:[#allocation34_spill] sm:$0xff]  ;;  %s4920_s0 = smov [#allocation2]  }
 0x495   :  { %4711 = vmatmul.msk.bf16.gmra.mxu0 %vm1000_vm3, %v2954_v12  ;;  %v7450_v19 = vld [vmem:[#allocation60_spill] sm:$0xff]  ;;  %s4218_s21 = sshll.u32 %s4920_s0, 4  ;;  %s4219_s21 = int_to_ptr.vmem [resolvable:$true] %s4218_s21 }
 0x496   :  { %v3989_v26 = vadd.f32 %v3895_v35, %v3725_v3  ;;  %v3337_v45 = vpop.f32.mrf.mxu2  ;;  %4606 = vmatmul.msk.bf16.gmra.mxu1 %vm1000_vm3, %v2954_v12  ;;  %v7451_v3 = vld [vmem:[#allocation64_spill] sm:$0xff] }
 0x497   :  { %v3430_v44 = vadd.f32 %v3337_v45, %v3178_v17 }
 0x498   :  { %v4052_v0 = vadd.f32 %v4051_v36, %v3989_v26  ;;  %v4123_v13 = vmul.f32 %v3989_v26, %v3989_v26 }
 0x49a   :  { %v4186_v8 = vadd.f32 %v4185_v21, %v4123_v13  ;;  %v3897_v24 = vpop.f32.mrf.mxu0  ;;  %v7452_v13 = vld [vmem:[#allocation66_spill] sm:$0xff] }
 0x49b   :  { %v3633_v62 = vpop.f32.mrf.mxu3  ;;  %4646 = vmatmul.msk.bf16.gmra.mxu2 %vm1000_vm3, %v4748_v20  ;;  %v3090_v2 = vpop.f32.mrf.mxu1 }
 0x49c   :  { %v3726_v14 = vadd.f32 %v3633_v62, %v3430_v44  ;;  %v3180_v61 = vadd.f32 %v3090_v2, %v6631_v5 }
 0x49e   :  { %v3990_v7 = vadd.f32 %v3897_v24, %v3726_v14  ;;  %v3340_v28 = vpop.f32.mrf.mxu2 }
 0x49f   :  { %v3431_v9 = vadd.f32 %v3340_v28, %v3179_v53 }
 0x4a0   :  { %v4053_v30 = vadd.f32 %v4052_v0, %v3990_v7  ;;  %v4124_v4 = vmul.f32 %v3990_v7, %v3990_v7  ;;  %4678 = vmatmul.msk.bf16.gmra.mxu3 %vm1000_vm3, %v3502_v63 }
 0x4a2   :  { %v4187_v39 = vadd.f32 %v4186_v8, %v4124_v4  ;;  %v3900_v27 = vpop.f32.mrf.mxu0 }
 0x4a3   :  { %v3636_v42 = vpop.f32.mrf.mxu3  ;;  %v3093_v49 = vpop.f32.mrf.mxu1 }
 0x4a4   :  { %v3727_v43 = vadd.f32 %v3636_v42, %v3431_v9  ;;  %v3181_v57 = vadd.f32 %v3093_v49, %v7449_v47 }
 0x4a5   :  { %4712 = vmatmul.msk.bf16.gmra.mxu0 %vm1000_vm3, %v3766_v23 }
 0x4a6   :  { %v3991_v5 = vadd.f32 %v3900_v27, %v3727_v43  ;;  %v3342_v22 = vpop.f32.mrf.mxu2 }
 0x4a7   :  { %v3432_v10 = vadd.f32 %v3342_v22, %v3180_v61 }
 0x4a8   :  { %v4054_v17 = vadd.f32 %v4053_v30, %v3991_v5  ;;  %v4125_v54 = vmul.f32 %v3991_v5, %v3991_v5 }
 0x4aa   :  { %v4188_v37 = vadd.f32 %v4187_v39, %v4125_v54  ;;  %v3902_v29 = vpop.f32.mrf.mxu0 }
 0x4ab   :  { %v3638_v52 = vpop.f32.mrf.mxu3  ;;  %v3095_v1 = vpop.f32.mrf.mxu1 }
 0x4ac   :  { %v3728_v38 = vadd.f32 %v3638_v52, %v3432_v10  ;;  %v3182_v36 = vadd.f32 %v3095_v1, %v7450_v19  ;;  %v7454_v1 = vld [vmem:[#allocation24_spill] sm:$0xff] }
 0x4ae   :  { %v3992_v56 = vadd.f32 %v3902_v29, %v3728_v38  ;;  %v3345_v12 = vpop.f32.mrf.mxu2 }
 0x4af   :  { %v3433_v40 = vadd.f32 %v3345_v12, %v3181_v57 }
 0x4b0   :  { %v4055_v25 = vadd.f32 %v4054_v17, %v3992_v56  ;;  %v4126_v31 = vmul.f32 %v3992_v56, %v3992_v56 }
 0x4b2   :  { %v4189_v21 = vadd.f32 %v4188_v37, %v4126_v31  ;;  %v3905_v35 = vpop.f32.mrf.mxu0 }
 0x4b3   :  { %v3641_v60 = vpop.f32.mrf.mxu3  ;;  %v3098_v15 = vpop.f32.mrf.mxu1 }
 0x4b4   :  { %v3729_v50 = vadd.f32 %v3641_v60, %v3433_v40  ;;  %v3183_v53 = vadd.f32 %v3098_v15, %v7451_v3  ;;  %v7455_v15 = vld [vmem:[#allocation12_spill] sm:$0xff] }
 0x4b6   :  { %v3993_v58 = vadd.f32 %v3905_v35, %v3729_v50  ;;  %v3347_v11 = vpop.f32.mrf.mxu2 }
 0x4b7   :  { %v3434_v26 = vadd.f32 %v3347_v11, %v3182_v36 }
 0x4b8   :  { %v4056_v45 = vadd.f32 %v4055_v25, %v3993_v58  ;;  %v4127_v48 = vmul.f32 %v3993_v58, %v3993_v58 }
 0x4ba   :  { %v4190_v51 = vadd.f32 %v4189_v21, %v4127_v48  ;;  %v3907_v18 = vpop.f32.mrf.mxu0 }
 0x4bb   :  { %v3643_v44 = vpop.f32.mrf.mxu3  ;;  %v3100_v20 = vpop.f32.mrf.mxu1 }
 0x4bc   :  { %v3730_v0 = vadd.f32 %v3643_v44, %v3434_v26  ;;  %v3184_v33 = vadd.f32 %v3100_v20, %v7452_v13  ;;  %v7456_v20 = vld [vmem:[#allocation38_spill] sm:$0xff] }
 0x4be   :  { %v3994_v32 = vadd.f32 %v3907_v18, %v3730_v0  ;;  %v3350_v8 = vpop.f32.mrf.mxu2 }
 0x4bf   :  { %v3435_v24 = vadd.f32 %v3350_v8, %v3183_v53 }
 0x4c0   :  { %v4057_v16 = vadd.f32 %v4056_v45, %v3994_v32  ;;  %v4128_v55 = vmul.f32 %v3994_v32, %v3994_v32 }
 0x4c2   :  { %v4191_v62 = vadd.f32 %v4190_v51, %v4128_v55  ;;  %v3910_v2 = vpop.f32.mrf.mxu0 }
 0x4c3   :  { %v3646_v14 = vpop.f32.mrf.mxu3  ;;  %v3103_v63 = vpop.f32.mrf.mxu1 }
 0x4c4   :  { %v3731_v61 = vadd.f32 %v3646_v14, %v3435_v24  ;;  %v3185_v6 = vadd.f32 %v3103_v63, %v7453_v34  ;;  %v7457_v63 = vld [vmem:[#allocation28_spill] sm:$0xff] }
 0x4c6   :  { %v3995_v7 = vadd.f32 %v3910_v2, %v3731_v61  ;;  %v3352_v28 = vpop.f32.mrf.mxu2 }
 0x4c7   :  { %v3436_v9 = vadd.f32 %v3352_v28, %v3184_v33 }
 0x4c8   :  { %v4058_v30 = vadd.f32 %v4057_v16, %v3995_v7  ;;  %v4129_v4 = vmul.f32 %v3995_v7, %v3995_v7 }
 0x4ca   :  { %v4192_v23 = vadd.f32 %v4191_v62, %v4129_v4  ;;  %v3912_v39 = vpop.f32.mrf.mxu0 }
 0x4cb   :  { %v3648_v27 = vpop.f32.mrf.mxu3  ;;  %v3105_v42 = vpop.f32.mrf.mxu1 }
 0x4cc   :  { %v3732_v49 = vadd.f32 %v3648_v27, %v3436_v9  ;;  %v3186_v38 = vadd.f32 %v3105_v42, %v7454_v1  ;;  %v7458_v42 = vld [vmem:[#allocation31_spill] sm:$0xff] }
 0x4ce   :  { %v3996_v43 = vadd.f32 %v3912_v39, %v3732_v49  ;;  %v3355_v47 = vpop.f32.mrf.mxu2 }
 0x4cf   :  { %v3437_v57 = vadd.f32 %v3355_v47, %v3185_v6 }
 0x4d0   :  { %v4059_v5 = vadd.f32 %v4058_v30, %v3996_v43  ;;  %v4130_v22 = vmul.f32 %v3996_v43, %v3996_v43 }
 0x4d2   :  { %v4193_v10 = vadd.f32 %v4192_v23, %v4130_v22  ;;  %v3915_v17 = vpop.f32.mrf.mxu0 }
 0x4d3   :  { %v3651_v54 = vpop.f32.mrf.mxu3  ;;  %v3108_v37 = vpop.f32.mrf.mxu1 }
 0x4d4   :  { %v3733_v29 = vadd.f32 %v3651_v54, %v3437_v57  ;;  %v3187_v50 = vadd.f32 %v3108_v37, %v7455_v15 }
 0x4d6   :  { %v3997_v52 = vadd.f32 %v3915_v17, %v3733_v29  ;;  %v3357_v19 = vpop.f32.mrf.mxu2 }
 0x4d7   :  { %v3438_v12 = vadd.f32 %v3357_v19, %v3186_v38 }
 0x4d8   :  { %v4060_v36 = vadd.f32 %v4059_v5, %v3997_v52  ;;  %v4131_v56 = vmul.f32 %v3997_v52, %v3997_v52  ;;  %v7459_v52 = vld [vmem:[#allocation14_spill] sm:$0xff] }
 0x4da   :  { %v4194_v40 = vadd.f32 %v4193_v10, %v4131_v56  ;;  %v3917_v25 = vpop.f32.mrf.mxu0 }
 0x4db   :  { %v3653_v31 = vpop.f32.mrf.mxu3  ;;  %v3110_v21 = vpop.f32.mrf.mxu1 }
 0x4dc   :  { %v3734_v35 = vadd.f32 %v3653_v31, %v3438_v12  ;;  %v3188_v0 = vadd.f32 %v3110_v21, %v7456_v20 }
 0x4de   :  { %v3998_v60 = vadd.f32 %v3917_v25, %v3734_v35  ;;  %v3360_v3 = vpop.f32.mrf.mxu2 }
 0x4df   :  { %v3439_v11 = vadd.f32 %v3360_v3, %v3187_v50 }
 0x4e0   :  { %v4061_v53 = vadd.f32 %v4060_v36, %v3998_v60  ;;  %v4132_v58 = vmul.f32 %v3998_v60, %v3998_v60 }
 0x4e2   :  { %v4195_v26 = vadd.f32 %v4194_v40, %v4132_v58  ;;  %v3920_v45 = vpop.f32.mrf.mxu0 }
 0x4e3   :  { %v3656_v48 = vpop.f32.mrf.mxu3  ;;  %v3113_v51 = vpop.f32.mrf.mxu1 }
 0x4e4   :  { %v3735_v18 = vadd.f32 %v3656_v48, %v3439_v11  ;;  %v3189_v61 = vadd.f32 %v3113_v51, %v7457_v63  ;;  %v7460_v51 = vld [vmem:[#allocation42_spill] sm:$0xff] }
 0x4e6   :  { %v3999_v44 = vadd.f32 %v3920_v45, %v3735_v18  ;;  %v3362_v13 = vpop.f32.mrf.mxu2 }
 0x4e7   :  { %v3440_v8 = vadd.f32 %v3362_v13, %v3188_v0 }
 0x4e8   :  { %v4062_v33 = vadd.f32 %v4061_v53, %v3999_v44  ;;  %v4133_v32 = vmul.f32 %v3999_v44, %v3999_v44 }
 0x4ea   :  { %v4196_v24 = vadd.f32 %v4195_v26, %v4133_v32  ;;  %v3922_v16 = vpop.f32.mrf.mxu0 }
 0x4eb   :  { %v3658_v55 = vpop.f32.mrf.mxu3  ;;  %v3115_v62 = vpop.f32.mrf.mxu1 }
 0x4ec   :  { %v3736_v2 = vadd.f32 %v3658_v55, %v3440_v8  ;;  %v3190_v49 = vadd.f32 %v3115_v62, %v7458_v42 }
 0x4ee   :  { %v4000_v14 = vadd.f32 %v3922_v16, %v3736_v2  ;;  %v3365_v34 = vpop.f32.mrf.mxu2 }
 0x4ef   :  { %v3441_v28 = vadd.f32 %v3365_v34, %v3189_v61 }
 0x4f0   :  { %v4063_v6 = vadd.f32 %v4062_v33, %v4000_v14  ;;  %v4134_v7 = vmul.f32 %v4000_v14, %v4000_v14 }
 0x4f2   :  { %v4197_v9 = vadd.f32 %v4196_v24, %v4134_v7  ;;  %v3925_v30 = vpop.f32.mrf.mxu0 }
 0x4f3   :  { %v3661_v4 = vpop.f32.mrf.mxu3  ;;  %v3118_v23 = vpop.f32.mrf.mxu1 }
 0x4f4   :  { %v3737_v39 = vadd.f32 %v3661_v4, %v3441_v28  ;;  %v3191_v1 = vadd.f32 %v3118_v23, %v7459_v52 }
 0x4f6   :  { %v4001_v27 = vadd.f32 %v3925_v30, %v3737_v39  ;;  %v3367_v43 = vpop.f32.mrf.mxu2 }
 0x4f7   :  { %v3442_v5 = vadd.f32 %v3367_v43, %v3190_v49 }
 0x4f8   :  { %v4064_v47 = vadd.f32 %v4063_v6, %v4001_v27  ;;  %v4135_v57 = vmul.f32 %v4001_v27, %v4001_v27 }
 0x4fa   :  { %v4198_v22 = vadd.f32 %v4197_v9, %v4135_v57  ;;  %v3927_v10 = vpop.f32.mrf.mxu0 }
 0x4fb   :  { %v3663_v17 = vpop.f32.mrf.mxu3  ;;  %v3120_v54 = vpop.f32.mrf.mxu1 }
 0x4fc   :  { %v3738_v37 = vadd.f32 %v3663_v17, %v3442_v5  ;;  %v3192_v60 = vadd.f32 %v3120_v54, %v6727_v59  ;;  %v7461_v5 = vld [vmem:[#allocation33_spill] sm:$0xff] }
 0x4fe   :  { %v4002_v29 = vadd.f32 %v3927_v10, %v3738_v37  ;;  %v3370_v38 = vpop.f32.mrf.mxu2 }
 0x4ff   :  { %v3443_v56 = vadd.f32 %v3370_v38, %v3191_v1 }
 0x500   :  { %v4065_v19 = vadd.f32 %v4064_v47, %v4002_v29  ;;  %v4136_v36 = vmul.f32 %v4002_v29, %v4002_v29 }
 0x502   :  { %v4199_v12 = vadd.f32 %v4198_v22, %v4136_v36  ;;  %v3930_v40 = vpop.f32.mrf.mxu0 }
 0x503   :  { %v3666_v25 = vpop.f32.mrf.mxu3  ;;  %v3123_v21 = vpop.f32.mrf.mxu1 }
 0x504   :  { %v3739_v31 = vadd.f32 %v3666_v25, %v3443_v56  ;;  %v3193_v18 = vadd.f32 %v3123_v21, %v7460_v51 }
 0x506   :  { %v4003_v35 = vadd.f32 %v3930_v40, %v3739_v31  ;;  %v3372_v15 = vpop.f32.mrf.mxu2 }
 0x507   :  { %v3444_v53 = vadd.f32 %v3372_v15, %v3192_v60 }
 0x508   :  { %v4066_v50 = vadd.f32 %v4065_v19, %v4003_v35  ;;  %v4137_v3 = vmul.f32 %v4003_v35, %v4003_v35 }
 0x50a   :  { %v4200_v58 = vadd.f32 %v4199_v12, %v4137_v3  ;;  %v3932_v11 = vpop.f32.mrf.mxu0 }
 0x50b   :  { %v3668_v26 = vpop.f32.mrf.mxu3  ;;  %v3125_v20 = vpop.f32.mrf.mxu1 }
 0x50c   :  { %v3740_v45 = vadd.f32 %v3668_v26, %v3444_v53  ;;  %v3194_v55 = vadd.f32 %v3125_v20, %v6743_v46 }
 0x50e   :  { %v4004_v48 = vadd.f32 %v3932_v11, %v3740_v45  ;;  %v3375_v44 = vpop.f32.mrf.mxu2 }
 0x50f   :  { %v3445_v33 = vadd.f32 %v3375_v44, %v3193_v18 }
 0x510   :  { %v4067_v0 = vadd.f32 %v4066_v50, %v4004_v48  ;;  %v4138_v13 = vmul.f32 %v4004_v48, %v4004_v48 }
 0x512   :  { %v4201_v32 = vadd.f32 %v4200_v58, %v4138_v13  ;;  %v3935_v8 = vpop.f32.mrf.mxu0 }
 0x513   :  { %v3671_v24 = vpop.f32.mrf.mxu3  ;;  %v3128_v61 = vpop.f32.mrf.mxu1 }
 0x514   :  { %v3741_v59 = vadd.f32 %v3671_v24, %v3445_v33  ;;  %v3195_v30 = vadd.f32 %v3128_v61, %v6753_v41 }
 0x516   :  { %v4005_v16 = vadd.f32 %v3935_v8, %v3741_v59  ;;  %v3377_v62 = vpop.f32.mrf.mxu2 }
 0x517   :  { %v3446_v63 = vadd.f32 %v3377_v62, %v3194_v55 }
 0x518   :  { %v4068_v2 = vadd.f32 %v4067_v0, %v4005_v16  ;;  %v4139_v14 = vmul.f32 %v4005_v16, %v4005_v16 }
 0x51a   :  { %v4202_v34 = vadd.f32 %v4201_v32, %v4139_v14  ;;  %v3937_v6 = vpop.f32.mrf.mxu0 }
 0x51b   :  { %v3673_v7 = vpop.f32.mrf.mxu3  ;;  %v3130_v49 = vpop.f32.mrf.mxu1 }
 0x51c   :  { %v3742_v28 = vadd.f32 %v3673_v7, %v3446_v63  ;;  %v3196_v22 = vadd.f32 %v3130_v49, %v7461_v5 }
 0x51e   :  { %v4006_v9 = vadd.f32 %v3937_v6, %v3742_v28  ;;  %v3380_v4 = vpop.f32.mrf.mxu2 }
 0x51f   :  { %v3447_v27 = vadd.f32 %v3380_v4, %v3195_v30 }
 0x520   :  { %v4069_v23 = vadd.f32 %v4068_v2, %v4006_v9  ;;  %v4140_v39 = vmul.f32 %v4006_v9, %v4006_v9 }
 0x522   :  { %v4203_v42 = vadd.f32 %v4202_v34, %v4140_v39  ;;  %v3940_v43 = vpop.f32.mrf.mxu0 }
 0x523   :  { %v3676_v46 = vpop.f32.mrf.mxu3 }
 0x524   :  { %v3743_v47 = vadd.f32 %v3676_v46, %v3447_v27 }
 0x526   :  { %v4007_v57 = vadd.f32 %v3940_v43, %v3743_v47  ;;  %v3382_v10 = vpop.f32.mrf.mxu2 }
 0x527   :  { %v3448_v37 = vadd.f32 %v3382_v10, %v3196_v22 }
 0x528   :  { %v4070_v17 = vadd.f32 %v4069_v23, %v4007_v57  ;;  %v4141_v54 = vmul.f32 %v4007_v57, %v4007_v57 }
 0x52a   :  { %v4204_v29 = vadd.f32 %v4203_v42, %v4141_v54  ;;  %v3942_v41 = vpop.f32.mrf.mxu0 }
 0x52b   :  { %v3678_v52 = vpop.f32.mrf.mxu3 }
 0x52c   :  { %v3744_v1 = vadd.f32 %v3678_v52, %v3448_v37 }
 0x52e   :  { %v4008_v38 = vadd.f32 %v3942_v41, %v3744_v1 }
 0x530   :  { %v4071_v19 = vadd.f32 %v4070_v17, %v4008_v38  ;;  %v4142_v36 = vmul.f32 %v4008_v38, %v4008_v38 }
 0x532   :  { %v4072_v56 = vrot.slane %v4071_v19, 4  ;;  %v4205_v12 = vadd.f32 %v4204_v29, %v4142_v36 }
 0x534   :  { %v4206_v40 = vrot.slane %v4205_v12, 4  ;;  %v4073_v25 = vadd.f32 %v4072_v56, %v4071_v19 }
 0x536   :  { %v4074_v31 = vrot.slane %v4073_v25, 2  ;;  %v4207_v21 = vadd.f32 %v4206_v40, %v4205_v12 }
 0x538   :  { %v4075_v35 = vadd.f32 %v4074_v31, %v4073_v25  ;;  %v4208_v60 = vrot.slane %v4207_v21, 2 }
 0x53a   :  { %v4076_v15 = vrot.slane %v4075_v35, 1  ;;  %v4209_v50 = vadd.f32 %v4208_v60, %v4207_v21 }
 0x53c   :  { %v4077_v3 = vadd.f32 %v4076_v15, %v4075_v35  ;;  %v4210_v53 = vrot.slane %v4209_v50, 1 }
 0x53e   :  { %4078 = vst [vmem:[#allocation2] sm:$0x1] %v4077_v3  ;;  %v4211_v58 = vadd.f32 %v4210_v53, %v4209_v50 }
 0x53f   :  { %4223 = dma.vmem_to_hbm [thread:$0]  %s4219_s21, 16, %s4221_s24, [#allocation3]  }
 0x540   :  { %4212 = vst [vmem:[#allocation4] sm:$0x1] %v4211_v58 }
 0x541   :  { %4234 = dma.vmem_to_hbm [thread:$0]  %s4230_s26, 16, %s4232_s29, [#allocation5]  }
 0x542   :  { %4916 = dma.done.wait [#allocation3], 16  }
 0x543   :  { %4917 = vsyncadd [#allocation3], 4294967280 }
 0x544   :  { %4918 = dma.done.wait [#allocation5], 16  }
 0x545   :  { %4919 = vsyncadd [#allocation5], 4294967280 }
 0x546   :  { %4243 = vsyncpa [#allocation3], 1 }
 0x547   :  { %4244 = vsyncpa [#allocation5], 1 }

</bundles_post_ra>
